<compile_context>
chip_gen: v6e
topology: v6e:2x2x1
jax: 0.10.0
libtpu: 0.0.40
codegen_flags: <defaults>
</compile_context>

<pallas_src>
import functools

import numpy as np
import jax
import jax.numpy as jnp
from jax.experimental import pallas as pl
from jax.experimental.pallas import tpu as pltpu


def _round_up(x, m):
    return ((x + m - 1) // m) * m


# ----------------------------------------------------------------------------
# Pallas kernels
# ----------------------------------------------------------------------------
def _apply_act(x, act):
    if act == "relu":
        return jnp.maximum(x, 0.0)
    if act == "sigmoid":
        return 1.0 / (1.0 + jnp.exp(-x))     # exact sigmoid (final layer only)
    return x


def _matmul_bias_act_kernel(x_ref, w_ref, b_ref, o_ref, *, act):
    # bf16 operands -> f32 MXU accumulation; bias + activation in f32.
    acc = jnp.dot(x_ref[...], w_ref[...], preferred_element_type=jnp.float32)
    o_ref[...] = _apply_act(acc + b_ref[...], act).astype(o_ref.dtype)


def _fc_chain_kernel(x_ref, w1, b1, w2, b2, w3, b3, w4, b4, z_ref, d_ref):
    # enc_fc1 -> relu -> enc_fc2 (= z) -> dec_fc1 -> relu -> dec_fc2 -> relu,
    # all in one kernel; the 256-wide hiddens and z never leave VMEM/vregs.
    h = jnp.dot(x_ref[...], w1[...], preferred_element_type=jnp.float32)
    h = jnp.maximum(h + b1[...], 0.0)
    z = jnp.dot(h.astype(jnp.bfloat16), w2[...],
                preferred_element_type=jnp.float32) + b2[...]
    z_ref[...] = z
    g = jnp.dot(z.astype(jnp.bfloat16), w3[...],
                preferred_element_type=jnp.float32)
    g = jnp.maximum(g + b3[...], 0.0)
    d = jnp.dot(g.astype(jnp.bfloat16), w4[...],
                preferred_element_type=jnp.float32)
    d_ref[...] = jnp.maximum(d + b4[...], 0.0).astype(d_ref.dtype)


# ----------------------------------------------------------------------------
# Pallas wrappers
# ----------------------------------------------------------------------------
def _row_tiling(M):
    """(TM, Mp, grid): bounded per-block VMEM, >=2 'parallel' blocks when M>=32."""
    if M >= 1024:
        TM = min(512, _round_up((M + 1) // 2, 16))
    elif M >= 32:
        TM = _round_up((M + 1) // 2, 16)
    else:
        return M, M, (1,)
    Mp = _round_up(M, TM)
    return TM, Mp, (Mp // TM,)


def matmul_bias_act(x, w, b, act="none", out_dtype=jnp.bfloat16):
    """out = act(x @ w + b).

    x: (M, K) bf16; w: (K, Np) bf16 with Np a multiple of 128 (pre-padded at
    param-prep time); b: (1, Np) f32.  Returns (M, Np) in out_dtype.
    """
    M, K = x.shape
    Kw, Np = w.shape
    assert K == Kw and Np % 128 == 0, (K, Kw, Np)

    TM, Mp, grid = _row_tiling(M)
    if Mp != M:
        x = jnp.pad(x, ((0, Mp - M), (0, 0)))

    out = pl.pallas_call(
        functools.partial(_matmul_bias_act_kernel, act=act),
        out_shape=jax.ShapeDtypeStruct((Mp, Np), out_dtype),
        grid_spec=pltpu.PrefetchScalarGridSpec(
            num_scalar_prefetch=0,
            grid=grid,
            in_specs=[
                pl.BlockSpec((TM, K), lambda i: (i, 0)),
                pl.BlockSpec((K, Np), lambda i: (0, 0)),   # weight stays VMEM-resident
                pl.BlockSpec((1, Np), lambda i: (0, 0)),
            ],
            out_specs=pl.BlockSpec((TM, Np), lambda i: (i, 0)),
        ),
        compiler_params=pltpu.CompilerParams(
            dimension_semantics=("parallel",)),
    )(x, w, b)
    return out if Mp == M else out[:M]


def fc_chain(h, fc, encode_dim):
    """Fused enc_fc1 + enc_fc2 + dec_fc1 + dec_fc2 in one pallas_call.

    h: (B, 1024) bf16, NHWC-flattened conv4 output (the NCHW View() permutation
    is already folded into the prepared weights).  Returns z (B, encode_dim)
    f32 and the decoder seed d (B, 1024) bf16 in NHWC-flattened order.
    """
    B = h.shape[0]
    Zp = fc["w2"].shape[1]
    # TODO(synk): M = batch is tiny here, so the second v7x TensorCore idles
    # for this one launch; a row split only pays off once B >= 32.
    z_pad, d = pl.pallas_call(
        _fc_chain_kernel,
        out_shape=(jax.ShapeDtypeStruct((B, Zp), jnp.float32),
                   jax.ShapeDtypeStruct((B, 1024), jnp.bfloat16)),
        grid_spec=pltpu.PrefetchScalarGridSpec(
            num_scalar_prefetch=0,
            grid=(1,),
            in_specs=[
                pl.BlockSpec((B, 1024), lambda i: (0, 0)),
                pl.BlockSpec(fc["w1"].shape, lambda i: (0, 0)),
                pl.BlockSpec(fc["b1"].shape, lambda i: (0, 0)),
                pl.BlockSpec(fc["w2"].shape, lambda i: (0, 0)),
                pl.BlockSpec(fc["b2"].shape, lambda i: (0, 0)),
                pl.BlockSpec(fc["w3"].shape, lambda i: (0, 0)),
                pl.BlockSpec(fc["b3"].shape, lambda i: (0, 0)),
                pl.BlockSpec(fc["w4"].shape, lambda i: (0, 0)),
                pl.BlockSpec(fc["b4"].shape, lambda i: (0, 0)),
            ],
            out_specs=[pl.BlockSpec((B, Zp), lambda i: (0, 0)),
                       pl.BlockSpec((B, 1024), lambda i: (0, 0))],
        ),
        compiler_params=pltpu.CompilerParams(
            dimension_semantics=("arbitrary",)),
    )(h, fc["w1"], fc["b1"], fc["w2"], fc["b2"],
      fc["w3"], fc["b3"], fc["w4"], fc["b4"])
    return z_pad[:, :encode_dim], d


# ----------------------------------------------------------------------------
# JAX glue: static-slice patch extraction, conv / sub-pixel deconv
# ----------------------------------------------------------------------------
def _extract_patches(x, k, stride, pad):
    """x: (B,H,W,C) -> (B*Ho*Wo, k*k*C); feature order (kh, kw, c).

    Static strided slices + one concat (no XLA gathers)."""
    B, H, W, C = x.shape
    Ho = (H + 2 * pad - k) // stride + 1
    Wo = (W + 2 * pad - k) // stride + 1
    xp = jnp.pad(x, ((0, 0), (pad, pad), (pad, pad), (0, 0)))
    slabs = []
    for kh in range(k):
        for kw in range(k):
            slabs.append(jax.lax.slice(
                xp,
                (0, kh, kw, 0),
                (B, kh + (Ho - 1) * stride + 1, kw + (Wo - 1) * stride + 1, C),
                (1, stride, stride, 1)))
    cols = jnp.concatenate(slabs, axis=-1)            # (B, Ho, Wo, k*k*C)
    return cols.reshape(B * Ho * Wo, k * k * C), Ho, Wo


def conv2d(x, w, b, cout, act, k=4, stride=2, pad=1):
    """PyTorch Conv2d on NHWC bf16 activations; w/b are kernel-ready."""
    B = x.shape[0]
    cols, Ho, Wo = _extract_patches(x, k, stride, pad)
    out = matmul_bias_act(cols, w, b, act)            # (M, Np) bf16
    return out[:, :cout].reshape(B, Ho, Wo, cout)


def deconv2d(x, w, b, cout, act):
    """PyTorch ConvTranspose2d(k=4, s=2, p=1) via the zero-free sub-pixel form.

    Output pixel (2p+r, 2q+c) is a stride-1 2x2 conv of the 1-padded input with
    sub-kernel w[ci, co, 3-r-2*dh, 3-c-2*dw]; the four sub-kernels are stacked
    (at param-prep time) into one (4*Cin, 4*Cout) matmul — no zero dilation.
    """
    B, H, W, _ = x.shape
    cols, Ho, Wo = _extract_patches(x, 2, 1, 1)       # (B*(H+1)*(W+1), 4*Cin)
    out = matmul_bias_act(cols, w, b, act)            # (M, Np) bf16
    out = out[:, :4 * cout].reshape(B, Ho, Wo, 2, 2, cout)
    # Sub-pixel interleave: y[:, 2p+r, 2q+c, :] = out[:, p+r, q+c, r, c, :]
    # TODO(synk): fold this interleave into the kernel store path (strided
    # sublane writes) once the 6-D output view reshape lowers in Mosaic.
    rows = []
    for r in range(2):
        sub = [out[:, r:r + H, c:c + W, r, c, :] for c in range(2)]
        rows.append(jnp.stack(sub, axis=3))           # (B, H, W, 2, cout)
    y = jnp.stack(rows, axis=2)                       # (B, H, 2, W, 2, cout)
    return y.reshape(B, 2 * H, 2 * W, cout)


# ----------------------------------------------------------------------------
# Parameters: PyTorch-layout init + one-time kernel-layout preparation
# ----------------------------------------------------------------------------
def init_params(key, encode_dim):
    def nxt():
        nonlocal key
        key, sub = jax.random.split(key)
        return sub

    def conv_p(cin, cout, k=4):
        scale = 1.0 / jnp.sqrt(cin * k * k)
        return (jax.random.normal(nxt(), (cout, cin, k, k), jnp.float32) * scale,
                jax.random.normal(nxt(), (cout,), jnp.float32) * scale)

    def deconv_p(cin, cout, k=4):
        scale = 1.0 / jnp.sqrt(cin * k * k)
        return (jax.random.normal(nxt(), (cin, cout, k, k), jnp.float32) * scale,
                jax.random.normal(nxt(), (cout,), jnp.float32) * scale)

    def lin_p(fin, fout):
        scale = 1.0 / jnp.sqrt(fin)
        return (jax.random.normal(nxt(), (fout, fin), jnp.float32) * scale,
                jax.random.normal(nxt(), (fout,), jnp.float32) * scale)

    return {
        "enc_conv1": conv_p(1, 32),
        "enc_conv2": conv_p(32, 32),
        "enc_conv3": conv_p(32, 64),
        "enc_conv4": conv_p(64, 64),
        "enc_fc1": lin_p(64 * 4 * 4, 256),
        "enc_fc2": lin_p(256, encode_dim),
        "dec_fc1": lin_p(encode_dim, 256),
        "dec_fc2": lin_p(256, 64 * 4 * 4),
        "dec_deconv1": deconv_p(64, 64),
        "dec_deconv2": deconv_p(64, 32),
        "dec_deconv3": deconv_p(32, 32),
        "dec_deconv4": deconv_p(32, 1),
    }


def prepare_kernel_params(params, encode_dim):
    """One-time conversion of PyTorch-layout params to kernel-ready tensors:
    matmul layout, lane padding to 128, bf16 weights / f32 biases, deconv
    sub-pixel stacking, and the View() permutations folded into the FC
    weights.  Run once, outside the jitted forward."""

    def prep_conv(w, b):
        cout, cin, k, _ = w.shape
        npad = _round_up(cout, 128)
        wm = jnp.transpose(w, (2, 3, 1, 0)).reshape(k * k * cin, cout)  # (kh,kw,ci) x co
        wm = jnp.pad(wm, ((0, 0), (0, npad - cout))).astype(jnp.bfloat16)
        bm = jnp.pad(b, (0, npad - cout)).reshape(1, npad).astype(jnp.float32)
        return wm, bm

    def prep_deconv(w, b):
        cin, cout = w.shape[0], w.shape[1]
        # sub-pixel (r, c) and tap (dh, dw) select kernel index 3 - r - 2*dh
        sub_idx = 3 - np.arange(2)[:, None] - 2 * np.arange(2)[None, :]
        wt = w[:, :, sub_idx, :]                 # (ci, co, r, dh, kw)
        wt = wt[:, :, :, :, sub_idx]             # (ci, co, r, dh, c, dw)
        wall = jnp.transpose(wt, (3, 5, 0, 2, 4, 1)).reshape(4 * cin, 4 * cout)
        n = 4 * cout
        npad = _round_up(n, 128)
        wall = jnp.pad(wall, ((0, 0), (0, npad - n))).astype(jnp.bfloat16)
        ball = jnp.pad(jnp.tile(b, 4), (0, npad - n)).reshape(1, npad).astype(jnp.float32)
        return wall, ball

    # Permutation absorbing View((-1, 64*4*4)) / View((-1, 64, 4, 4)) (NCHW
    # flatten order) into the FC weights so activations can stay NHWC.
    C, Hh, Ww = 64, 4, 4
    hh, ww, cc = np.meshgrid(np.arange(Hh), np.arange(Ww), np.arange(C), indexing="ij")
    nchw_of_nhwc = (cc * Hh * Ww + hh * Ww + ww).reshape(-1)      # (1024,)

    w_e1, b_e1 = params["enc_fc1"]
    w_e2, b_e2 = params["enc_fc2"]
    w_d1, b_d1 = params["dec_fc1"]
    w_d2, b_d2 = params["dec_fc2"]
    zp = _round_up(encode_dim, 128)
    fc = {
        "w1": w_e1[:, nchw_of_nhwc].T.astype(jnp.bfloat16),                    # (1024, 256)
        "b1": b_e1.reshape(1, -1).astype(jnp.float32),
        "w2": jnp.pad(w_e2.T, ((0, 0), (0, zp - encode_dim))).astype(jnp.bfloat16),  # (256, zp)
        "b2": jnp.pad(b_e2, (0, zp - encode_dim)).reshape(1, zp).astype(jnp.float32),
        "w3": jnp.pad(w_d1.T, ((0, zp - encode_dim), (0, 0))).astype(jnp.bfloat16),  # (zp, 256)
        "b3": b_d1.reshape(1, -1).astype(jnp.float32),
        "w4": w_d2[nchw_of_nhwc, :].T.astype(jnp.bfloat16),                    # (256, 1024)
        "b4": b_d2[nchw_of_nhwc].reshape(1, -1).astype(jnp.float32),
    }

    return {
        "enc_conv1": prep_conv(*params["enc_conv1"]),
        "enc_conv2": prep_conv(*params["enc_conv2"]),
        "enc_conv3": prep_conv(*params["enc_conv3"]),
        "enc_conv4": prep_conv(*params["enc_conv4"]),
        "fc": fc,
        "dec_deconv1": prep_deconv(*params["dec_deconv1"]),
        "dec_deconv2": prep_deconv(*params["dec_deconv2"]),
        "dec_deconv3": prep_deconv(*params["dec_deconv3"]),
        "dec_deconv4": prep_deconv(*params["dec_deconv4"]),
    }


# ----------------------------------------------------------------------------
# CAE forward / loss
# ----------------------------------------------------------------------------
def cae_forward(kp, x, encode_dim):
    """x: (B, 1, 64, 64) NCHW f32 -> {'x_recon': (B,1,64,64) f32, 'z': (B, D) f32}."""
    B = x.shape[0]

    # module boundary NCHW -> internal NHWC bf16 (channels on the lane axis)
    h = jnp.transpose(x, (0, 2, 3, 1)).astype(jnp.bfloat16)      # (B, 64, 64, 1)

    # encoder
    h = conv2d(h, *kp["enc_conv1"], cout=32, act="relu")         # (B, 32, 32, 32)
    h = conv2d(h, *kp["enc_conv2"], cout=32, act="relu")         # (B, 16, 16, 32)
    h = conv2d(h, *kp["enc_conv3"], cout=64, act="relu")         # (B,  8,  8, 64)
    h = conv2d(h, *kp["enc_conv4"], cout=64, act="relu")         # (B,  4,  4, 64)
    h = h.reshape(B, 64 * 4 * 4)          # NHWC flatten; NCHW View() folded into fc w1

    # fused enc_fc1/enc_fc2/dec_fc1/dec_fc2 (single pallas_call)
    z, d = fc_chain(h, kp["fc"], encode_dim)                     # z f32, d bf16 (B,1024)

    # decoder
    d = d.reshape(B, 4, 4, 64)                                   # NHWC decoder seed
    d = deconv2d(d, *kp["dec_deconv1"], cout=64, act="relu")     # (B,  8,  8, 64)
    d = deconv2d(d, *kp["dec_deconv2"], cout=32, act="relu")     # (B, 16, 16, 32)
    d = deconv2d(d, *kp["dec_deconv3"], cout=32, act="relu")     # (B, 32, 32, 32)
    d = deconv2d(d, *kp["dec_deconv4"], cout=1, act="sigmoid")   # (B, 64, 64,  1)
    x_recon = jnp.transpose(d, (0, 3, 1, 2)).astype(jnp.float32)

    return {"x_recon": x_recon, "z": z}


def cae_loss(outputs, x):
    # nn.MSELoss() -> mean squared error over all elements
    x_recon = outputs["x_recon"]
    return {"loss": jnp.mean((x - x_recon) ** 2)}


if __name__ == "__main__":
    key = jax.random.PRNGKey(0)
    pkey, xkey = jax.random.split(key)

    encode_dim = 32
    params = init_params(pkey, encode_dim)
    # One-time weight reformatting, hoisted out of the jitted forward.
    kparams = jax.block_until_ready(prepare_kernel_params(params, encode_dim))

    # CAE architecture implies 64x64 single-channel input (4 stride-2 convs -> 4x4)
    B = 2
    x = jax.random.uniform(xkey, (B, 1, 64, 64), dtype=jnp.float32)

    fwd = jax.jit(functools.partial(cae_forward, encode_dim=encode_dim))
    outputs = jax.block_until_ready(fwd(kparams, x))

    assert outputs["x_recon"].shape == (B, 1, 64, 64), outputs["x_recon"].shape
    assert outputs["z"].shape == (B, encode_dim), outputs["z"].shape
    assert bool(jnp.all(jnp.isfinite(outputs["x_recon"])))
    assert bool(jnp.all(jnp.isfinite(outputs["z"])))

    loss = jax.block_until_ready(cae_loss(outputs, x)["loss"])
    assert bool(jnp.isfinite(loss))

    print("KERNEL_OK")
</pallas_src>

<mosaic_0001>
module attributes {stable_mosaic.version = 11 : i64} {
  func.func @_matmul_bias_act_kernel(%arg0: i32, %arg1: memref<512x16xbf16, #tpu.memory_space<vmem>>, %arg2: memref<16x128xbf16, #tpu.memory_space<vmem>>, %arg3: memref<1x128xf32, #tpu.memory_space<vmem>>, %arg4: memref<512x128xbf16, #tpu.memory_space<vmem>>) attributes {dimension_semantics = [#tpu.dimension_semantics<parallel>], iteration_bounds = array<i64: 4>, scalar_prefetch = 0 : i64, scratch_operands = 0 : i64, tpu.core_type = #tpu.core_type<tc>, window_params = [{transform_indices = @transform_0, window_bounds = array<i64: 512, 16>}, {pipeline_mode = #tpu.pipeline_mode<synchronous>, transform_indices = @transform_1, window_bounds = array<i64: 16, 128>}, {pipeline_mode = #tpu.pipeline_mode<synchronous>, transform_indices = @transform_2, window_bounds = array<i64: 1, 128>}, {transform_indices = @transform_3, window_bounds = array<i64: 512, 128>}]} {
    %c0 = arith.constant 0 : index
    %c0_0 = arith.constant 0 : index
    %0 = vector.load %arg1[%c0, %c0_0] : memref<512x16xbf16, #tpu.memory_space<vmem>>, vector<512x16xbf16>
    %c0_1 = arith.constant 0 : index
    %c0_2 = arith.constant 0 : index
    %1 = vector.load %arg2[%c0_1, %c0_2] : memref<16x128xbf16, #tpu.memory_space<vmem>>, vector<16x128xbf16>
    %cst = arith.constant dense<0.000000e+00> : vector<512x128xf32>
    %2 = tpu.matmul %0, %1, %cst {dimension_numbers = #tpu.dot_dimension_numbers<[1], [0], [0], [1], [0, 0, 1, 1], [], []>} : vector<512x16xbf16>, vector<16x128xbf16>, vector<512x128xf32> -> vector<512x128xf32>
    %c0_3 = arith.constant 0 : index
    %c0_4 = arith.constant 0 : index
    %3 = vector.load %arg3[%c0_3, %c0_4] : memref<1x128xf32, #tpu.memory_space<vmem>>, vector<1x128xf32>
    %4 = vector.broadcast %3 : vector<1x128xf32> to vector<512x128xf32>
    %5 = arith.addf %2, %4 : vector<512x128xf32>
    %cst_5 = arith.constant 0.000000e+00 : f32
    %6 = vector.broadcast %cst_5 : f32 to vector<512x128xf32>
    %7 = arith.maximumf %5, %6 : vector<512x128xf32>
    %8 = arith.truncf %7 : vector<512x128xf32> to vector<512x128xbf16>
    %c0_6 = arith.constant 0 : index
    %c0_7 = arith.constant 0 : index
    %9 = vector.load %arg4[%c0_6, %c0_7] : memref<512x128xbf16, #tpu.memory_space<vmem>>, vector<512x128xbf16>
    tpu.vector_store %arg4[%c0_6, %c0_7], %8 {strides = array<i32>} : memref<512x128xbf16, #tpu.memory_space<vmem>>, vector<512x128xbf16>,
    return
  }
  func.func @transform_0(%arg0: i32) -> (i32, i32) {
    %c0_i32 = arith.constant 0 : i32
    %c0_i32_0 = arith.constant 0 : i32
    return %arg0, %c0_i32 : i32, i32
  }
  func.func @transform_1(%arg0: i32) -> (i32, i32) {
    %c0_i32 = arith.constant 0 : i32
    %c0_i32_0 = arith.constant 0 : i32
    %c0_i32_1 = arith.constant 0 : i32
    return %c0_i32, %c0_i32_0 : i32, i32
  }
  func.func @transform_2(%arg0: i32) -> (i32, i32) {
    %c0_i32 = arith.constant 0 : i32
    %c0_i32_0 = arith.constant 0 : i32
    %c0_i32_1 = arith.constant 0 : i32
    return %c0_i32, %c0_i32_0 : i32, i32
  }
  func.func @transform_3(%arg0: i32) -> (i32, i32) {
    %c0_i32 = arith.constant 0 : i32
    %c0_i32_0 = arith.constant 0 : i32
    return %arg0, %c0_i32 : i32, i32
  }
}

module attributes {stable_mosaic.version = 11 : i64} {
  func.func @_matmul_bias_act_kernel(%arg0: i32, %arg1: memref<256x512xbf16, #tpu.memory_space<vmem>>, %arg2: memref<512x128xbf16, #tpu.memory_space<vmem>>, %arg3: memref<1x128xf32, #tpu.memory_space<vmem>>, %arg4: memref<256x128xbf16, #tpu.memory_space<vmem>>) attributes {dimension_semantics = [#tpu.dimension_semantics<parallel>], iteration_bounds = array<i64: 2>, scalar_prefetch = 0 : i64, scratch_operands = 0 : i64, tpu.core_type = #tpu.core_type<tc>, window_params = [{transform_indices = @transform_0, window_bounds = array<i64: 256, 512>}, {pipeline_mode = #tpu.pipeline_mode<synchronous>, transform_indices = @transform_1, window_bounds = array<i64: 512, 128>}, {pipeline_mode = #tpu.pipeline_mode<synchronous>, transform_indices = @transform_2, window_bounds = array<i64: 1, 128>}, {transform_indices = @transform_3, window_bounds = array<i64: 256, 128>}]} {
    %c0 = arith.constant 0 : index
    %c0_0 = arith.constant 0 : index
    %0 = vector.load %arg1[%c0, %c0_0] : memref<256x512xbf16, #tpu.memory_space<vmem>>, vector<256x512xbf16>
    %c0_1 = arith.constant 0 : index
    %c0_2 = arith.constant 0 : index
    %1 = vector.load %arg2[%c0_1, %c0_2] : memref<512x128xbf16, #tpu.memory_space<vmem>>, vector<512x128xbf16>
    %cst = arith.constant dense<0.000000e+00> : vector<256x128xf32>
    %2 = tpu.matmul %0, %1, %cst {dimension_numbers = #tpu.dot_dimension_numbers<[1], [0], [0], [1], [0, 0, 1, 1], [], []>} : vector<256x512xbf16>, vector<512x128xbf16>, vector<256x128xf32> -> vector<256x128xf32>
    %c0_3 = arith.constant 0 : index
    %c0_4 = arith.constant 0 : index
    %3 = vector.load %arg3[%c0_3, %c0_4] : memref<1x128xf32, #tpu.memory_space<vmem>>, vector<1x128xf32>
    %4 = vector.broadcast %3 : vector<1x128xf32> to vector<256x128xf32>
    %5 = arith.addf %2, %4 : vector<256x128xf32>
    %cst_5 = arith.constant 0.000000e+00 : f32
    %6 = vector.broadcast %cst_5 : f32 to vector<256x128xf32>
    %7 = arith.maximumf %5, %6 : vector<256x128xf32>
    %8 = arith.truncf %7 : vector<256x128xf32> to vector<256x128xbf16>
    %c0_6 = arith.constant 0 : index
    %c0_7 = arith.constant 0 : index
    %9 = vector.load %arg4[%c0_6, %c0_7] : memref<256x128xbf16, #tpu.memory_space<vmem>>, vector<256x128xbf16>
    tpu.vector_store %arg4[%c0_6, %c0_7], %8 {strides = array<i32>} : memref<256x128xbf16, #tpu.memory_space<vmem>>, vector<256x128xbf16>,
    return
  }
  func.func @transform_0(%arg0: i32) -> (i32, i32) {
    %c0_i32 = arith.constant 0 : i32
    %c0_i32_0 = arith.constant 0 : i32
    return %arg0, %c0_i32 : i32, i32
  }
  func.func @transform_1(%arg0: i32) -> (i32, i32) {
    %c0_i32 = arith.constant 0 : i32
    %c0_i32_0 = arith.constant 0 : i32
    %c0_i32_1 = arith.constant 0 : i32
    return %c0_i32, %c0_i32_0 : i32, i32
  }
  func.func @transform_2(%arg0: i32) -> (i32, i32) {
    %c0_i32 = arith.constant 0 : i32
    %c0_i32_0 = arith.constant 0 : i32
    %c0_i32_1 = arith.constant 0 : i32
    return %c0_i32, %c0_i32_0 : i32, i32
  }
  func.func @transform_3(%arg0: i32) -> (i32, i32) {
    %c0_i32 = arith.constant 0 : i32
    %c0_i32_0 = arith.constant 0 : i32
    return %arg0, %c0_i32 : i32, i32
  }
}

module attributes {stable_mosaic.version = 11 : i64} {
  func.func @_matmul_bias_act_kernel(%arg0: i32, %arg1: memref<64x512xbf16, #tpu.memory_space<vmem>>, %arg2: memref<512x128xbf16, #tpu.memory_space<vmem>>, %arg3: memref<1x128xf32, #tpu.memory_space<vmem>>, %arg4: memref<64x128xbf16, #tpu.memory_space<vmem>>) attributes {dimension_semantics = [#tpu.dimension_semantics<parallel>], iteration_bounds = array<i64: 2>, scalar_prefetch = 0 : i64, scratch_operands = 0 : i64, tpu.core_type = #tpu.core_type<tc>, window_params = [{transform_indices = @transform_0, window_bounds = array<i64: 64, 512>}, {pipeline_mode = #tpu.pipeline_mode<synchronous>, transform_indices = @transform_1, window_bounds = array<i64: 512, 128>}, {pipeline_mode = #tpu.pipeline_mode<synchronous>, transform_indices = @transform_2, window_bounds = array<i64: 1, 128>}, {transform_indices = @transform_3, window_bounds = array<i64: 64, 128>}]} {
    %c0 = arith.constant 0 : index
    %c0_0 = arith.constant 0 : index
    %0 = vector.load %arg1[%c0, %c0_0] : memref<64x512xbf16, #tpu.memory_space<vmem>>, vector<64x512xbf16>
    %c0_1 = arith.constant 0 : index
    %c0_2 = arith.constant 0 : index
    %1 = vector.load %arg2[%c0_1, %c0_2] : memref<512x128xbf16, #tpu.memory_space<vmem>>, vector<512x128xbf16>
    %cst = arith.constant dense<0.000000e+00> : vector<64x128xf32>
    %2 = tpu.matmul %0, %1, %cst {dimension_numbers = #tpu.dot_dimension_numbers<[1], [0], [0], [1], [0, 0, 1, 1], [], []>} : vector<64x512xbf16>, vector<512x128xbf16>, vector<64x128xf32> -> vector<64x128xf32>
    %c0_3 = arith.constant 0 : index
    %c0_4 = arith.constant 0 : index
    %3 = vector.load %arg3[%c0_3, %c0_4] : memref<1x128xf32, #tpu.memory_space<vmem>>, vector<1x128xf32>
    %4 = vector.broadcast %3 : vector<1x128xf32> to vector<64x128xf32>
    %5 = arith.addf %2, %4 : vector<64x128xf32>
    %cst_5 = arith.constant 0.000000e+00 : f32
    %6 = vector.broadcast %cst_5 : f32 to vector<64x128xf32>
    %7 = arith.maximumf %5, %6 : vector<64x128xf32>
    %8 = arith.truncf %7 : vector<64x128xf32> to vector<64x128xbf16>
    %c0_6 = arith.constant 0 : index
    %c0_7 = arith.constant 0 : index
    %9 = vector.load %arg4[%c0_6, %c0_7] : memref<64x128xbf16, #tpu.memory_space<vmem>>, vector<64x128xbf16>
    tpu.vector_store %arg4[%c0_6, %c0_7], %8 {strides = array<i32>} : memref<64x128xbf16, #tpu.memory_space<vmem>>, vector<64x128xbf16>,
    return
  }
  func.func @transform_0(%arg0: i32) -> (i32, i32) {
    %c0_i32 = arith.constant 0 : i32
    %c0_i32_0 = arith.constant 0 : i32
    return %arg0, %c0_i32 : i32, i32
  }
  func.func @transform_1(%arg0: i32) -> (i32, i32) {
    %c0_i32 = arith.constant 0 : i32
    %c0_i32_0 = arith.constant 0 : i32
    %c0_i32_1 = arith.constant 0 : i32
    return %c0_i32, %c0_i32_0 : i32, i32
  }
  func.func @transform_2(%arg0: i32) -> (i32, i32) {
    %c0_i32 = arith.constant 0 : i32
    %c0_i32_0 = arith.constant 0 : i32
    %c0_i32_1 = arith.constant 0 : i32
    return %c0_i32, %c0_i32_0 : i32, i32
  }
  func.func @transform_3(%arg0: i32) -> (i32, i32) {
    %c0_i32 = arith.constant 0 : i32
    %c0_i32_0 = arith.constant 0 : i32
    return %arg0, %c0_i32 : i32, i32
  }
}

module attributes {stable_mosaic.version = 11 : i64} {
  func.func @_matmul_bias_act_kernel(%arg0: i32, %arg1: memref<16x1024xbf16, #tpu.memory_space<vmem>>, %arg2: memref<1024x128xbf16, #tpu.memory_space<vmem>>, %arg3: memref<1x128xf32, #tpu.memory_space<vmem>>, %arg4: memref<16x128xbf16, #tpu.memory_space<vmem>>) attributes {dimension_semantics = [#tpu.dimension_semantics<parallel>], iteration_bounds = array<i64: 2>, scalar_prefetch = 0 : i64, scratch_operands = 0 : i64, tpu.core_type = #tpu.core_type<tc>, window_params = [{transform_indices = @transform_0, window_bounds = array<i64: 16, 1024>}, {pipeline_mode = #tpu.pipeline_mode<synchronous>, transform_indices = @transform_1, window_bounds = array<i64: 1024, 128>}, {pipeline_mode = #tpu.pipeline_mode<synchronous>, transform_indices = @transform_2, window_bounds = array<i64: 1, 128>}, {transform_indices = @transform_3, window_bounds = array<i64: 16, 128>}]} {
    %c0 = arith.constant 0 : index
    %c0_0 = arith.constant 0 : index
    %0 = vector.load %arg1[%c0, %c0_0] : memref<16x1024xbf16, #tpu.memory_space<vmem>>, vector<16x1024xbf16>
    %c0_1 = arith.constant 0 : index
    %c0_2 = arith.constant 0 : index
    %1 = vector.load %arg2[%c0_1, %c0_2] : memref<1024x128xbf16, #tpu.memory_space<vmem>>, vector<1024x128xbf16>
    %cst = arith.constant dense<0.000000e+00> : vector<16x128xf32>
    %2 = tpu.matmul %0, %1, %cst {dimension_numbers = #tpu.dot_dimension_numbers<[1], [0], [0], [1], [0, 0, 1, 1], [], []>} : vector<16x1024xbf16>, vector<1024x128xbf16>, vector<16x128xf32> -> vector<16x128xf32>
    %c0_3 = arith.constant 0 : index
    %c0_4 = arith.constant 0 : index
    %3 = vector.load %arg3[%c0_3, %c0_4] : memref<1x128xf32, #tpu.memory_space<vmem>>, vector<1x128xf32>
    %4 = vector.broadcast %3 : vector<1x128xf32> to vector<16x128xf32>
    %5 = arith.addf %2, %4 : vector<16x128xf32>
    %cst_5 = arith.constant 0.000000e+00 : f32
    %6 = vector.broadcast %cst_5 : f32 to vector<16x128xf32>
    %7 = arith.maximumf %5, %6 : vector<16x128xf32>
    %8 = arith.truncf %7 : vector<16x128xf32> to vector<16x128xbf16>
    %c0_6 = arith.constant 0 : index
    %c0_7 = arith.constant 0 : index
    %9 = vector.load %arg4[%c0_6, %c0_7] : memref<16x128xbf16, #tpu.memory_space<vmem>>, vector<16x128xbf16>
    tpu.vector_store %arg4[%c0_6, %c0_7], %8 {strides = array<i32>} : memref<16x128xbf16, #tpu.memory_space<vmem>>, vector<16x128xbf16>,
    return
  }
  func.func @transform_0(%arg0: i32) -> (i32, i32) {
    %c0_i32 = arith.constant 0 : i32
    %c0_i32_0 = arith.constant 0 : i32
    return %arg0, %c0_i32 : i32, i32
  }
  func.func @transform_1(%arg0: i32) -> (i32, i32) {
    %c0_i32 = arith.constant 0 : i32
    %c0_i32_0 = arith.constant 0 : i32
    %c0_i32_1 = arith.constant 0 : i32
    return %c0_i32, %c0_i32_0 : i32, i32
  }
  func.func @transform_2(%arg0: i32) -> (i32, i32) {
    %c0_i32 = arith.constant 0 : i32
    %c0_i32_0 = arith.constant 0 : i32
    %c0_i32_1 = arith.constant 0 : i32
    return %c0_i32, %c0_i32_0 : i32, i32
  }
  func.func @transform_3(%arg0: i32) -> (i32, i32) {
    %c0_i32 = arith.constant 0 : i32
    %c0_i32_0 = arith.constant 0 : i32
    return %arg0, %c0_i32 : i32, i32
  }
}

module attributes {stable_mosaic.version = 11 : i64} {
  func.func @_fc_chain_kernel(%arg0: i32, %arg1: memref<2x1024xbf16, #tpu.memory_space<vmem>>, %arg2: memref<1024x256xbf16, #tpu.memory_space<vmem>>, %arg3: memref<1x256xf32, #tpu.memory_space<vmem>>, %arg4: memref<256x128xbf16, #tpu.memory_space<vmem>>, %arg5: memref<1x128xf32, #tpu.memory_space<vmem>>, %arg6: memref<128x256xbf16, #tpu.memory_space<vmem>>, %arg7: memref<1x256xf32, #tpu.memory_space<vmem>>, %arg8: memref<256x1024xbf16, #tpu.memory_space<vmem>>, %arg9: memref<1x1024xf32, #tpu.memory_space<vmem>>, %arg10: memref<2x128xf32, #tpu.memory_space<vmem>>, %arg11: memref<2x1024xbf16, #tpu.memory_space<vmem>>) attributes {dimension_semantics = [#tpu.dimension_semantics<arbitrary>], iteration_bounds = array<i64: 1>, scalar_prefetch = 0 : i64, scratch_operands = 0 : i64, tpu.core_type = #tpu.core_type<tc>, window_params = [{pipeline_mode = #tpu.pipeline_mode<synchronous>, transform_indices = @transform_0, window_bounds = array<i64: 2, 1024>}, {pipeline_mode = #tpu.pipeline_mode<synchronous>, transform_indices = @transform_1, window_bounds = array<i64: 1024, 256>}, {pipeline_mode = #tpu.pipeline_mode<synchronous>, transform_indices = @transform_2, window_bounds = array<i64: 1, 256>}, {pipeline_mode = #tpu.pipeline_mode<synchronous>, transform_indices = @transform_3, window_bounds = array<i64: 256, 128>}, {pipeline_mode = #tpu.pipeline_mode<synchronous>, transform_indices = @transform_4, window_bounds = array<i64: 1, 128>}, {pipeline_mode = #tpu.pipeline_mode<synchronous>, transform_indices = @transform_5, window_bounds = array<i64: 128, 256>}, {pipeline_mode = #tpu.pipeline_mode<synchronous>, transform_indices = @transform_6, window_bounds = array<i64: 1, 256>}, {pipeline_mode = #tpu.pipeline_mode<synchronous>, transform_indices = @transform_7, window_bounds = array<i64: 256, 1024>}, {pipeline_mode = #tpu.pipeline_mode<synchronous>, transform_indices = @transform_8, window_bounds = array<i64: 1, 1024>}, {pipeline_mode = #tpu.pipeline_mode<synchronous>, transform_indices = @transform_9, window_bounds = array<i64: 2, 128>}, {pipeline_mode = #tpu.pipeline_mode<synchronous>, transform_indices = @transform_10, window_bounds = array<i64: 2, 1024>}]} {
    %c0 = arith.constant 0 : index
    %c0_0 = arith.constant 0 : index
    %0 = vector.load %arg1[%c0, %c0_0] : memref<2x1024xbf16, #tpu.memory_space<vmem>>, vector<2x1024xbf16>
    %c0_1 = arith.constant 0 : index
    %c0_2 = arith.constant 0 : index
    %1 = vector.load %arg2[%c0_1, %c0_2] : memref<1024x256xbf16, #tpu.memory_space<vmem>>, vector<1024x256xbf16>
    %cst = arith.constant dense<0.000000e+00> : vector<2x256xf32>
    %2 = tpu.matmul %0, %1, %cst {dimension_numbers = #tpu.dot_dimension_numbers<[1], [0], [0], [1], [0, 0, 1, 1], [], []>} : vector<2x1024xbf16>, vector<1024x256xbf16>, vector<2x256xf32> -> vector<2x256xf32>
    %c0_3 = arith.constant 0 : index
    %c0_4 = arith.constant 0 : index
    %3 = vector.load %arg3[%c0_3, %c0_4] : memref<1x256xf32, #tpu.memory_space<vmem>>, vector<1x256xf32>
    %4 = vector.broadcast %3 : vector<1x256xf32> to vector<2x256xf32>
    %5 = arith.addf %2, %4 : vector<2x256xf32>
    %cst_5 = arith.constant 0.000000e+00 : f32
    %6 = vector.broadcast %cst_5 : f32 to vector<2x256xf32>
    %7 = arith.maximumf %5, %6 : vector<2x256xf32>
    %8 = arith.truncf %7 : vector<2x256xf32> to vector<2x256xbf16>
    %c0_6 = arith.constant 0 : index
    %c0_7 = arith.constant 0 : index
    %9 = vector.load %arg4[%c0_6, %c0_7] : memref<256x128xbf16, #tpu.memory_space<vmem>>, vector<256x128xbf16>
    %cst_8 = arith.constant dense<0.000000e+00> : vector<2x128xf32>
    %10 = tpu.matmul %8, %9, %cst_8 {dimension_numbers = #tpu.dot_dimension_numbers<[1], [0], [0], [1], [0, 0, 1, 1], [], []>} : vector<2x256xbf16>, vector<256x128xbf16>, vector<2x128xf32> -> vector<2x128xf32>
    %c0_9 = arith.constant 0 : index
    %c0_10 = arith.constant 0 : index
    %11 = vector.load %arg5[%c0_9, %c0_10] : memref<1x128xf32, #tpu.memory_space<vmem>>, vector<1x128xf32>
    %12 = vector.broadcast %11 : vector<1x128xf32> to vector<2x128xf32>
    %13 = arith.addf %10, %12 : vector<2x128xf32>
    %c0_11 = arith.constant 0 : index
    %c0_12 = arith.constant 0 : index
    %14 = vector.load %arg10[%c0_11, %c0_12] : memref<2x128xf32, #tpu.memory_space<vmem>>, vector<2x128xf32>
    tpu.vector_store %arg10[%c0_11, %c0_12], %13 {strides = array<i32>} : memref<2x128xf32, #tpu.memory_space<vmem>>, vector<2x128xf32>,
    %15 = arith.truncf %13 : vector<2x128xf32> to vector<2x128xbf16>
    %c0_13 = arith.constant 0 : index
    %c0_14 = arith.constant 0 : index
    %16 = vector.load %arg6[%c0_13, %c0_14] : memref<128x256xbf16, #tpu.memory_space<vmem>>, vector<128x256xbf16>
    %cst_15 = arith.constant dense<0.000000e+00> : vector<2x256xf32>
    %17 = tpu.matmul %15, %16, %cst_15 {dimension_numbers = #tpu.dot_dimension_numbers<[1], [0], [0], [1], [0, 0, 1, 1], [], []>} : vector<2x128xbf16>, vector<128x256xbf16>, vector<2x256xf32> -> vector<2x256xf32>
    %c0_16 = arith.constant 0 : index
    %c0_17 = arith.constant 0 : index
    %18 = vector.load %arg7[%c0_16, %c0_17] : memref<1x256xf32, #tpu.memory_space<vmem>>, vector<1x256xf32>
    %19 = vector.broadcast %18 : vector<1x256xf32> to vector<2x256xf32>
    %20 = arith.addf %17, %19 : vector<2x256xf32>
    %cst_18 = arith.constant 0.000000e+00 : f32
    %21 = vector.broadcast %cst_18 : f32 to vector<2x256xf32>
    %22 = arith.maximumf %20, %21 : vector<2x256xf32>
    %23 = arith.truncf %22 : vector<2x256xf32> to vector<2x256xbf16>
    %c0_19 = arith.constant 0 : index
    %c0_20 = arith.constant 0 : index
    %24 = vector.load %arg8[%c0_19, %c0_20] : memref<256x1024xbf16, #tpu.memory_space<vmem>>, vector<256x1024xbf16>
    %cst_21 = arith.constant dense<0.000000e+00> : vector<2x1024xf32>
    %25 = tpu.matmul %23, %24, %cst_21 {dimension_numbers = #tpu.dot_dimension_numbers<[1], [0], [0], [1], [0, 0, 1, 1], [], []>} : vector<2x256xbf16>, vector<256x1024xbf16>, vector<2x1024xf32> -> vector<2x1024xf32>
    %c0_22 = arith.constant 0 : index
    %c0_23 = arith.constant 0 : index
    %26 = vector.load %arg9[%c0_22, %c0_23] : memref<1x1024xf32, #tpu.memory_space<vmem>>, vector<1x1024xf32>
    %27 = vector.broadcast %26 : vector<1x1024xf32> to vector<2x1024xf32>
    %28 = arith.addf %25, %27 : vector<2x1024xf32>
    %cst_24 = arith.constant 0.000000e+00 : f32
    %29 = vector.broadcast %cst_24 : f32 to vector<2x1024xf32>
    %30 = arith.maximumf %28, %29 : vector<2x1024xf32>
    %31 = arith.truncf %30 : vector<2x1024xf32> to vector<2x1024xbf16>
    %c0_25 = arith.constant 0 : index
    %c0_26 = arith.constant 0 : index
    %32 = vector.load %arg11[%c0_25, %c0_26] : memref<2x1024xbf16, #tpu.memory_space<vmem>>, vector<2x1024xbf16>
    tpu.vector_store %arg11[%c0_25, %c0_26], %31 {strides = array<i32>} : memref<2x1024xbf16, #tpu.memory_space<vmem>>, vector<2x1024xbf16>,
    return
  }
  func.func @transform_0(%arg0: i32) -> (i32, i32) {
    %c0_i32 = arith.constant 0 : i32
    %c0_i32_0 = arith.constant 0 : i32
    %c0_i32_1 = arith.constant 0 : i32
    return %c0_i32, %c0_i32_0 : i32, i32
  }
  func.func @transform_1(%arg0: i32) -> (i32, i32) {
    %c0_i32 = arith.constant 0 : i32
    %c0_i32_0 = arith.constant 0 : i32
    %c0_i32_1 = arith.constant 0 : i32
    return %c0_i32, %c0_i32_0 : i32, i32
  }
  func.func @transform_2(%arg0: i32) -> (i32, i32) {
    %c0_i32 = arith.constant 0 : i32
    %c0_i32_0 = arith.constant 0 : i32
    %c0_i32_1 = arith.constant 0 : i32
    return %c0_i32, %c0_i32_0 : i32, i32
  }
  func.func @transform_3(%arg0: i32) -> (i32, i32) {
    %c0_i32 = arith.constant 0 : i32
    %c0_i32_0 = arith.constant 0 : i32
    %c0_i32_1 = arith.constant 0 : i32
    return %c0_i32, %c0_i32_0 : i32, i32
  }
  func.func @transform_4(%arg0: i32) -> (i32, i32) {
    %c0_i32 = arith.constant 0 : i32
    %c0_i32_0 = arith.constant 0 : i32
    %c0_i32_1 = arith.constant 0 : i32
    return %c0_i32, %c0_i32_0 : i32, i32
  }
  func.func @transform_5(%arg0: i32) -> (i32, i32) {
    %c0_i32 = arith.constant 0 : i32
    %c0_i32_0 = arith.constant 0 : i32
    %c0_i32_1 = arith.constant 0 : i32
    return %c0_i32, %c0_i32_0 : i32, i32
  }
  func.func @transform_6(%arg0: i32) -> (i32, i32) {
    %c0_i32 = arith.constant 0 : i32
    %c0_i32_0 = arith.constant 0 : i32
    %c0_i32_1 = arith.constant 0 : i32
    return %c0_i32, %c0_i32_0 : i32, i32
  }
  func.func @transform_7(%arg0: i32) -> (i32, i32) {
    %c0_i32 = arith.constant 0 : i32
    %c0_i32_0 = arith.constant 0 : i32
    %c0_i32_1 = arith.constant 0 : i32
    return %c0_i32, %c0_i32_0 : i32, i32
  }
  func.func @transform_8(%arg0: i32) -> (i32, i32) {
    %c0_i32 = arith.constant 0 : i32
    %c0_i32_0 = arith.constant 0 : i32
    %c0_i32_1 = arith.constant 0 : i32
    return %c0_i32, %c0_i32_0 : i32, i32
  }
  func.func @transform_9(%arg0: i32) -> (i32, i32) {
    %c0_i32 = arith.constant 0 : i32
    %c0_i32_0 = arith.constant 0 : i32
    %c0_i32_1 = arith.constant 0 : i32
    return %c0_i32, %c0_i32_0 : i32, i32
  }
  func.func @transform_10(%arg0: i32) -> (i32, i32) {
    %c0_i32 = arith.constant 0 : i32
    %c0_i32_0 = arith.constant 0 : i32
    %c0_i32_1 = arith.constant 0 : i32
    return %c0_i32, %c0_i32_0 : i32, i32
  }
}

module attributes {stable_mosaic.version = 11 : i64} {
  func.func @_matmul_bias_act_kernel(%arg0: i32, %arg1: memref<32x256xbf16, #tpu.memory_space<vmem>>, %arg2: memref<256x256xbf16, #tpu.memory_space<vmem>>, %arg3: memref<1x256xf32, #tpu.memory_space<vmem>>, %arg4: memref<32x256xbf16, #tpu.memory_space<vmem>>) attributes {dimension_semantics = [#tpu.dimension_semantics<parallel>], iteration_bounds = array<i64: 2>, scalar_prefetch = 0 : i64, scratch_operands = 0 : i64, tpu.core_type = #tpu.core_type<tc>, window_params = [{transform_indices = @transform_0, window_bounds = array<i64: 32, 256>}, {pipeline_mode = #tpu.pipeline_mode<synchronous>, transform_indices = @transform_1, window_bounds = array<i64: 256, 256>}, {pipeline_mode = #tpu.pipeline_mode<synchronous>, transform_indices = @transform_2, window_bounds = array<i64: 1, 256>}, {transform_indices = @transform_3, window_bounds = array<i64: 32, 256>}]} {
    %c0 = arith.constant 0 : index
    %c0_0 = arith.constant 0 : index
    %0 = vector.load %arg1[%c0, %c0_0] : memref<32x256xbf16, #tpu.memory_space<vmem>>, vector<32x256xbf16>
    %c0_1 = arith.constant 0 : index
    %c0_2 = arith.constant 0 : index
    %1 = vector.load %arg2[%c0_1, %c0_2] : memref<256x256xbf16, #tpu.memory_space<vmem>>, vector<256x256xbf16>
    %cst = arith.constant dense<0.000000e+00> : vector<32x256xf32>
    %2 = tpu.matmul %0, %1, %cst {dimension_numbers = #tpu.dot_dimension_numbers<[1], [0], [0], [1], [0, 0, 1, 1], [], []>} : vector<32x256xbf16>, vector<256x256xbf16>, vector<32x256xf32> -> vector<32x256xf32>
    %c0_3 = arith.constant 0 : index
    %c0_4 = arith.constant 0 : index
    %3 = vector.load %arg3[%c0_3, %c0_4] : memref<1x256xf32, #tpu.memory_space<vmem>>, vector<1x256xf32>
    %4 = vector.broadcast %3 : vector<1x256xf32> to vector<32x256xf32>
    %5 = arith.addf %2, %4 : vector<32x256xf32>
    %cst_5 = arith.constant 0.000000e+00 : f32
    %6 = vector.broadcast %cst_5 : f32 to vector<32x256xf32>
    %7 = arith.maximumf %5, %6 : vector<32x256xf32>
    %8 = arith.truncf %7 : vector<32x256xf32> to vector<32x256xbf16>
    %c0_6 = arith.constant 0 : index
    %c0_7 = arith.constant 0 : index
    %9 = vector.load %arg4[%c0_6, %c0_7] : memref<32x256xbf16, #tpu.memory_space<vmem>>, vector<32x256xbf16>
    tpu.vector_store %arg4[%c0_6, %c0_7], %8 {strides = array<i32>} : memref<32x256xbf16, #tpu.memory_space<vmem>>, vector<32x256xbf16>,
    return
  }
  func.func @transform_0(%arg0: i32) -> (i32, i32) {
    %c0_i32 = arith.constant 0 : i32
    %c0_i32_0 = arith.constant 0 : i32
    return %arg0, %c0_i32 : i32, i32
  }
  func.func @transform_1(%arg0: i32) -> (i32, i32) {
    %c0_i32 = arith.constant 0 : i32
    %c0_i32_0 = arith.constant 0 : i32
    %c0_i32_1 = arith.constant 0 : i32
    return %c0_i32, %c0_i32_0 : i32, i32
  }
  func.func @transform_2(%arg0: i32) -> (i32, i32) {
    %c0_i32 = arith.constant 0 : i32
    %c0_i32_0 = arith.constant 0 : i32
    %c0_i32_1 = arith.constant 0 : i32
    return %c0_i32, %c0_i32_0 : i32, i32
  }
  func.func @transform_3(%arg0: i32) -> (i32, i32) {
    %c0_i32 = arith.constant 0 : i32
    %c0_i32_0 = arith.constant 0 : i32
    return %arg0, %c0_i32 : i32, i32
  }
}

module attributes {stable_mosaic.version = 11 : i64} {
  func.func @_matmul_bias_act_kernel(%arg0: i32, %arg1: memref<96x256xbf16, #tpu.memory_space<vmem>>, %arg2: memref<256x128xbf16, #tpu.memory_space<vmem>>, %arg3: memref<1x128xf32, #tpu.memory_space<vmem>>, %arg4: memref<96x128xbf16, #tpu.memory_space<vmem>>) attributes {dimension_semantics = [#tpu.dimension_semantics<parallel>], iteration_bounds = array<i64: 2>, scalar_prefetch = 0 : i64, scratch_operands = 0 : i64, tpu.core_type = #tpu.core_type<tc>, window_params = [{transform_indices = @transform_0, window_bounds = array<i64: 96, 256>}, {pipeline_mode = #tpu.pipeline_mode<synchronous>, transform_indices = @transform_1, window_bounds = array<i64: 256, 128>}, {pipeline_mode = #tpu.pipeline_mode<synchronous>, transform_indices = @transform_2, window_bounds = array<i64: 1, 128>}, {transform_indices = @transform_3, window_bounds = array<i64: 96, 128>}]} {
    %c0 = arith.constant 0 : index
    %c0_0 = arith.constant 0 : index
    %0 = vector.load %arg1[%c0, %c0_0] : memref<96x256xbf16, #tpu.memory_space<vmem>>, vector<96x256xbf16>
    %c0_1 = arith.constant 0 : index
    %c0_2 = arith.constant 0 : index
    %1 = vector.load %arg2[%c0_1, %c0_2] : memref<256x128xbf16, #tpu.memory_space<vmem>>, vector<256x128xbf16>
    %cst = arith.constant dense<0.000000e+00> : vector<96x128xf32>
    %2 = tpu.matmul %0, %1, %cst {dimension_numbers = #tpu.dot_dimension_numbers<[1], [0], [0], [1], [0, 0, 1, 1], [], []>} : vector<96x256xbf16>, vector<256x128xbf16>, vector<96x128xf32> -> vector<96x128xf32>
    %c0_3 = arith.constant 0 : index
    %c0_4 = arith.constant 0 : index
    %3 = vector.load %arg3[%c0_3, %c0_4] : memref<1x128xf32, #tpu.memory_space<vmem>>, vector<1x128xf32>
    %4 = vector.broadcast %3 : vector<1x128xf32> to vector<96x128xf32>
    %5 = arith.addf %2, %4 : vector<96x128xf32>
    %cst_5 = arith.constant 0.000000e+00 : f32
    %6 = vector.broadcast %cst_5 : f32 to vector<96x128xf32>
    %7 = arith.maximumf %5, %6 : vector<96x128xf32>
    %8 = arith.truncf %7 : vector<96x128xf32> to vector<96x128xbf16>
    %c0_6 = arith.constant 0 : index
    %c0_7 = arith.constant 0 : index
    %9 = vector.load %arg4[%c0_6, %c0_7] : memref<96x128xbf16, #tpu.memory_space<vmem>>, vector<96x128xbf16>
    tpu.vector_store %arg4[%c0_6, %c0_7], %8 {strides = array<i32>} : memref<96x128xbf16, #tpu.memory_space<vmem>>, vector<96x128xbf16>,
    return
  }
  func.func @transform_0(%arg0: i32) -> (i32, i32) {
    %c0_i32 = arith.constant 0 : i32
    %c0_i32_0 = arith.constant 0 : i32
    return %arg0, %c0_i32 : i32, i32
  }
  func.func @transform_1(%arg0: i32) -> (i32, i32) {
    %c0_i32 = arith.constant 0 : i32
    %c0_i32_0 = arith.constant 0 : i32
    %c0_i32_1 = arith.constant 0 : i32
    return %c0_i32, %c0_i32_0 : i32, i32
  }
  func.func @transform_2(%arg0: i32) -> (i32, i32) {
    %c0_i32 = arith.constant 0 : i32
    %c0_i32_0 = arith.constant 0 : i32
    %c0_i32_1 = arith.constant 0 : i32
    return %c0_i32, %c0_i32_0 : i32, i32
  }
  func.func @transform_3(%arg0: i32) -> (i32, i32) {
    %c0_i32 = arith.constant 0 : i32
    %c0_i32_0 = arith.constant 0 : i32
    return %arg0, %c0_i32 : i32, i32
  }
}

module attributes {stable_mosaic.version = 11 : i64} {
  func.func @_matmul_bias_act_kernel(%arg0: i32, %arg1: memref<304x128xbf16, #tpu.memory_space<vmem>>, %arg2: memref<128x128xbf16, #tpu.memory_space<vmem>>, %arg3: memref<1x128xf32, #tpu.memory_space<vmem>>, %arg4: memref<304x128xbf16, #tpu.memory_space<vmem>>) attributes {dimension_semantics = [#tpu.dimension_semantics<parallel>], iteration_bounds = array<i64: 2>, scalar_prefetch = 0 : i64, scratch_operands = 0 : i64, tpu.core_type = #tpu.core_type<tc>, window_params = [{transform_indices = @transform_0, window_bounds = array<i64: 304, 128>}, {pipeline_mode = #tpu.pipeline_mode<synchronous>, transform_indices = @transform_1, window_bounds = array<i64: 128, 128>}, {pipeline_mode = #tpu.pipeline_mode<synchronous>, transform_indices = @transform_2, window_bounds = array<i64: 1, 128>}, {transform_indices = @transform_3, window_bounds = array<i64: 304, 128>}]} {
    %c0 = arith.constant 0 : index
    %c0_0 = arith.constant 0 : index
    %0 = vector.load %arg1[%c0, %c0_0] : memref<304x128xbf16, #tpu.memory_space<vmem>>, vector<304x128xbf16>
    %c0_1 = arith.constant 0 : index
    %c0_2 = arith.constant 0 : index
    %1 = vector.load %arg2[%c0_1, %c0_2] : memref<128x128xbf16, #tpu.memory_space<vmem>>, vector<128x128xbf16>
    %cst = arith.constant dense<0.000000e+00> : vector<304x128xf32>
    %2 = tpu.matmul %0, %1, %cst {dimension_numbers = #tpu.dot_dimension_numbers<[1], [0], [0], [1], [0, 0, 1, 1], [], []>} : vector<304x128xbf16>, vector<128x128xbf16>, vector<304x128xf32> -> vector<304x128xf32>
    %c0_3 = arith.constant 0 : index
    %c0_4 = arith.constant 0 : index
    %3 = vector.load %arg3[%c0_3, %c0_4] : memref<1x128xf32, #tpu.memory_space<vmem>>, vector<1x128xf32>
    %4 = vector.broadcast %3 : vector<1x128xf32> to vector<304x128xf32>
    %5 = arith.addf %2, %4 : vector<304x128xf32>
    %cst_5 = arith.constant 0.000000e+00 : f32
    %6 = vector.broadcast %cst_5 : f32 to vector<304x128xf32>
    %7 = arith.maximumf %5, %6 : vector<304x128xf32>
    %8 = arith.truncf %7 : vector<304x128xf32> to vector<304x128xbf16>
    %c0_6 = arith.constant 0 : index
    %c0_7 = arith.constant 0 : index
    %9 = vector.load %arg4[%c0_6, %c0_7] : memref<304x128xbf16, #tpu.memory_space<vmem>>, vector<304x128xbf16>
    tpu.vector_store %arg4[%c0_6, %c0_7], %8 {strides = array<i32>} : memref<304x128xbf16, #tpu.memory_space<vmem>>, vector<304x128xbf16>,
    return
  }
  func.func @transform_0(%arg0: i32) -> (i32, i32) {
    %c0_i32 = arith.constant 0 : i32
    %c0_i32_0 = arith.constant 0 : i32
    return %arg0, %c0_i32 : i32, i32
  }
  func.func @transform_1(%arg0: i32) -> (i32, i32) {
    %c0_i32 = arith.constant 0 : i32
    %c0_i32_0 = arith.constant 0 : i32
    %c0_i32_1 = arith.constant 0 : i32
    return %c0_i32, %c0_i32_0 : i32, i32
  }
  func.func @transform_2(%arg0: i32) -> (i32, i32) {
    %c0_i32 = arith.constant 0 : i32
    %c0_i32_0 = arith.constant 0 : i32
    %c0_i32_1 = arith.constant 0 : i32
    return %c0_i32, %c0_i32_0 : i32, i32
  }
  func.func @transform_3(%arg0: i32) -> (i32, i32) {
    %c0_i32 = arith.constant 0 : i32
    %c0_i32_0 = arith.constant 0 : i32
    return %arg0, %c0_i32 : i32, i32
  }
}

module attributes {stable_mosaic.version = 11 : i64} {
  func.func @_matmul_bias_act_kernel(%arg0: i32, %arg1: memref<512x128xbf16, #tpu.memory_space<vmem>>, %arg2: memref<128x128xbf16, #tpu.memory_space<vmem>>, %arg3: memref<1x128xf32, #tpu.memory_space<vmem>>, %arg4: memref<512x128xbf16, #tpu.memory_space<vmem>>) attributes {dimension_semantics = [#tpu.dimension_semantics<parallel>], iteration_bounds = array<i64: 5>, scalar_prefetch = 0 : i64, scratch_operands = 0 : i64, tpu.core_type = #tpu.core_type<tc>, window_params = [{transform_indices = @transform_0, window_bounds = array<i64: 512, 128>}, {pipeline_mode = #tpu.pipeline_mode<synchronous>, transform_indices = @transform_1, window_bounds = array<i64: 128, 128>}, {pipeline_mode = #tpu.pipeline_mode<synchronous>, transform_indices = @transform_2, window_bounds = array<i64: 1, 128>}, {transform_indices = @transform_3, window_bounds = array<i64: 512, 128>}]} {
    %c0 = arith.constant 0 : index
    %c0_0 = arith.constant 0 : index
    %0 = vector.load %arg1[%c0, %c0_0] : memref<512x128xbf16, #tpu.memory_space<vmem>>, vector<512x128xbf16>
    %c0_1 = arith.constant 0 : index
    %c0_2 = arith.constant 0 : index
    %1 = vector.load %arg2[%c0_1, %c0_2] : memref<128x128xbf16, #tpu.memory_space<vmem>>, vector<128x128xbf16>
    %cst = arith.constant dense<0.000000e+00> : vector<512x128xf32>
    %2 = tpu.matmul %0, %1, %cst {dimension_numbers = #tpu.dot_dimension_numbers<[1], [0], [0], [1], [0, 0, 1, 1], [], []>} : vector<512x128xbf16>, vector<128x128xbf16>, vector<512x128xf32> -> vector<512x128xf32>
    %c0_3 = arith.constant 0 : index
    %c0_4 = arith.constant 0 : index
    %3 = vector.load %arg3[%c0_3, %c0_4] : memref<1x128xf32, #tpu.memory_space<vmem>>, vector<1x128xf32>
    %4 = vector.broadcast %3 : vector<1x128xf32> to vector<512x128xf32>
    %5 = arith.addf %2, %4 : vector<512x128xf32>
    %cst_5 = arith.constant 0.000000e+00 : f32
    %6 = vector.broadcast %cst_5 : f32 to vector<512x128xf32>
    %7 = arith.subf %6, %5 : vector<512x128xf32>
    %8 = math.exp %7 : vector<512x128xf32>
    %cst_6 = arith.constant 1.000000e+00 : f32
    %9 = vector.broadcast %cst_6 : f32 to vector<512x128xf32>
    %10 = arith.addf %9, %8 : vector<512x128xf32>
    %cst_7 = arith.constant 1.000000e+00 : f32
    %11 = vector.broadcast %cst_7 : f32 to vector<512x128xf32>
    %12 = arith.divf %11, %10 : vector<512x128xf32>
    %13 = arith.truncf %12 : vector<512x128xf32> to vector<512x128xbf16>
    %c0_8 = arith.constant 0 : index
    %c0_9 = arith.constant 0 : index
    %14 = vector.load %arg4[%c0_8, %c0_9] : memref<512x128xbf16, #tpu.memory_space<vmem>>, vector<512x128xbf16>
    tpu.vector_store %arg4[%c0_8, %c0_9], %13 {strides = array<i32>} : memref<512x128xbf16, #tpu.memory_space<vmem>>, vector<512x128xbf16>,
    return
  }
  func.func @transform_0(%arg0: i32) -> (i32, i32) {
    %c0_i32 = arith.constant 0 : i32
    %c0_i32_0 = arith.constant 0 : i32
    return %arg0, %c0_i32 : i32, i32
  }
  func.func @transform_1(%arg0: i32) -> (i32, i32) {
    %c0_i32 = arith.constant 0 : i32
    %c0_i32_0 = arith.constant 0 : i32
    %c0_i32_1 = arith.constant 0 : i32
    return %c0_i32, %c0_i32_0 : i32, i32
  }
  func.func @transform_2(%arg0: i32) -> (i32, i32) {
    %c0_i32 = arith.constant 0 : i32
    %c0_i32_0 = arith.constant 0 : i32
    %c0_i32_1 = arith.constant 0 : i32
    return %c0_i32, %c0_i32_0 : i32, i32
  }
  func.func @transform_3(%arg0: i32) -> (i32, i32) {
    %c0_i32 = arith.constant 0 : i32
    %c0_i32_0 = arith.constant 0 : i32
    return %arg0, %c0_i32 : i32, i32
  }
}

</mosaic_0001>

<bundles_post_ra>
// kernel: cae_forward.9
= control target key start
LH: loop header
LB: loop body
LE: loop exit
PB: predicated region body
PF: predicated region fallthrough
CT: control target
= control target key end

     0   :  { %8 = vsyncpa [#allocation3], 0  ;;  %s2185_s0 = inlined_call_operand.vmem [shape: bf16[2048,16], index: 0, kind: input, shape index: {}]   ;;  %s2186_s1 = inlined_call_operand.hbm [shape: bf16[16,128], index: 1, kind: input, shape index: {}]   ;;  %s2187_s2 = inlined_call_operand.hbm [shape: f32[1,128], index: 2, kind: input, shape index: {}]   ;;  %s2188_s3 = inlined_call_operand.vmem [shape: bf16[2048,128], index: 3, kind: output, shape index: {}]  }
   0x1   :  { %9 = vsyncpa [#allocation5], 0  ;;  %s1947_s12 = smov 0  }
   0x2 LB: > { %s1290_s13 = sadd.s32 4294967295, %s1921_s12   ;;  %p1292_p0 = scmp.ge.s32.totalorder %s1921_s12, 1  ;;  %s1921_s12 = sphi %s1947_s12, %s15_s12  }
   0x3   : > { %p114_p1 = scmp.lt.s32.totalorder %s1921_s12, 5  ;;  %s1923_s14 = smov [#allocation2]  }
   0x4   : > { %s126_s15 = sshll.u32 %s1923_s14, 4  ;;  %p1961_p3 = scmp.eq.s32.totalorder %s1290_s13, 0  ;;  %s127_s15 = int_to_ptr.vmem [resolvable:$true] %s126_s15 }
   0x5   : > { %p1955_p2 = pnand %p1292_p0, %p114_p1  ;;  %s1924_s18 = smov [#allocation4]  }
   0x6   : > { %s140_s19 = sshll.u32 %s1924_s18, 4  ;;  %s1866_s21 = scalar_lea.vmem %s127_s15, 128  ;;  %s141_s19 = int_to_ptr.vmem [resolvable:$true] %s140_s19 }
   0x7   : > { %p1799_p4 = pneg %p1955_p2  ;;  %p1867_p7 = scmp.ne.s32.totalorder %s127_s15, %s1866_s21 }
   0x8   : > { %p1874_p10 = scmp.lt.s32.totalorder %s127_s15, %s127_s15  ;;  %p1875_p11 = scmp.lt.s32.totalorder %s1866_s21, %s1866_s21 }
   0x9   : > { %p1969_p5 = pnand %p1961_p3, %p1799_p4 }
   0xa   : > { %p1876_p12 = por %p1875_p11, %p1874_p10 }
   0xb   : > { %p1857_p6 = pneg %p1969_p5 }
   0xd   : > { %p1869_p8 = pnand %p1867_p7, %p1857_p6 }
   0xf   : > { %p1870_p9 = pneg %p1869_p8 }
  0x11   : > { %p1877_p13 = pnand %p1876_p12, %p1870_p9 }
  0x13   : > { %1880 = shalt.err (!%p1877_p13)
}
  0x14   : > { %s1925_s22 = smov 64   ;;  %s1926_s23 = smov 4  }
  0x15   : > { %1802 = dma.hbm_to_vmem [thread:$0]  (!%p1969_p5), %s2186_s1, 128, %s127_s15, [#allocation3], %s1925_s22, %s1925_s22, %s1926_s23  }
  0x16   : > { %s1892_s26 = scalar_lea.vmem %s141_s19, 16  ;;  %s1899_s27 = scalar_lea.vmem %s141_s19, 32 }
  0x17   : > { %p1893_p0 = scmp.ne.s32.totalorder %s141_s19, %s1892_s26  ;;  %p1900_p7 = scmp.lt.s32.totalorder %s141_s19, %s141_s19 }
  0x18   : > { %p1901_p8 = scmp.lt.s32.totalorder %s1899_s27, %s1892_s26 }
  0x19   : > { %p1895_p1 = pnand %p1893_p0, %p1857_p6 }
  0x1a   : > { %p1902_p9 = por %p1901_p8, %p1900_p7 }
  0x1b   : > { %p1896_p4 = pneg %p1895_p1 }
  0x1d   : > { %p1903_p10 = pnand %p1902_p9, %p1896_p4 }
  0x1f   : > { %1906 = shalt.err (!%p1903_p10)
}
  0x20   : > { %1805 = dma.hbm_to_vmem [thread:$0]  (!%p1969_p5), %s2187_s2, 16, %s141_s19, [#allocation5]  }
  0x21   : > { %162 = sbr.rel (%p1955_p2) target bundleno = 312 (0x138), region = 32 }
  0x26   : > { %1912 = dma.done.wait (%p1961_p3), [#allocation3], 128  }
  0x27   : > { %1914 = vsyncadd (%p1961_p3), [#allocation3], 4294967168 }
  0x28   : > { %1916 = dma.done.wait (%p1961_p3), [#allocation5], 16  }
  0x29   : > { %1918 = vsyncadd (%p1961_p3), [#allocation5], 4294967280  ;;  %s1299_s30 = sshll.u32 %s1290_s13, 6  ;;  %v1822_v0 = vld [vmem:[#allocation2] sm:$0xff]   ;;  %vm442_vm0 = vcmask 130048  }
  0x2a   : > { %p191_p6 = scmp.lt.s32.totalorder %s1299_s30, 255  ;;  %1723 = vmatprep.subr.bf16.mxu0 %v1822_v0  ;;  %1789 = vmatprep.subr.bf16.mxu1 %v1822_v0  ;;  %v2077_v33 = vld [vmem:[#allocation4] ss:$0 sm:$0xff] }
  0x2b   : > { %1724 = vmatpush3.bf16.msra.mxu0 %v1822_v0  ;;  %1790 = vmatpush3.bf16.msra.mxu1 %v1822_v0 }
  0x2c   : > { %s2193_s30 = smov (!%p191_p6, %s1299_s30), 255 }
  0x2d   : > { %s1300_s4 = sshll.u32 %s2193_s30, 2 }
  0x2e   : > { %s2011_s7 = scalar_lea.vmem %s2185_s0, %s1300_s4  ;;  %s2092_s10 = scalar_lea.vmem %s2188_s3, %s1300_s4 }
  0x2f   : > { %v1823_v1 = vld [vmem:[%s2011_s7] sm:$0xff]   ;;  %v1825_v3 = vld [vmem:[%s2011_s7 + $0x8] sm:$0xff]   ;;  %v1827_v5 = vld [vmem:[%s2011_s7 + $0x10] sm:$0xff]  }
  0x30   : > { %v1824_v2 = vld [vmem:[%s2011_s7 + $0x80] sm:$0xff]   ;;  %1725 = vmatprep.mubr.msk.bf16.mxu0 %vm442_vm0, %v1823_v1  ;;  %v1826_v4 = vld [vmem:[%s2011_s7 + $0x88] sm:$0xff]   ;;  %v1828_v6 = vld [vmem:[%s2011_s7 + $0x90] sm:$0xff]  }
  0x31   : > { %1757 = vmatprep.mubr.msk.bf16.mxu1 %vm442_vm0, %v1824_v2  ;;  %1726 = vmatmul.mubr.msk.bf16.vlgmr.msra.gmra.mxu0 %vm442_vm0, %v1825_v3  ;;  %v1829_v7 = vld [vmem:[%s2011_s7 + $0x18] sm:$0xff]   ;;  %v1831_v9 = vld [vmem:[%s2011_s7 + $0x20] sm:$0xff]   ;;  %v1833_v11 = vld [vmem:[%s2011_s7 + $0x28] sm:$0xff]  }
  0x32   : > { %1758 = vmatmul.mubr.msk.bf16.vlgmr.msra.gmra.mxu1 %vm442_vm0, %v1826_v4  ;;  %1729 = vmatprep.mubr.msk.bf16.mxu0 %vm442_vm0, %v1827_v5  ;;  %v1830_v8 = vld [vmem:[%s2011_s7 + $0x98] sm:$0xff]   ;;  %v1832_v10 = vld [vmem:[%s2011_s7 + $0xa0] sm:$0xff]   ;;  %v1834_v12 = vld [vmem:[%s2011_s7 + $0xa8] sm:$0xff]  }
  0x33   : > { %1761 = vmatprep.mubr.msk.bf16.mxu1 %vm442_vm0, %v1828_v6  ;;  %v1835_v13 = vld [vmem:[%s2011_s7 + $0x30] sm:$0xff]   ;;  %v1837_v15 = vld [vmem:[%s2011_s7 + $0x38] sm:$0xff]   ;;  %v1839_v17 = vld [vmem:[%s2011_s7 + $0x40] sm:$0xff]  }
  0x34   : > { %v1836_v14 = vld [vmem:[%s2011_s7 + $0xb0] sm:$0xff]   ;;  %v1838_v16 = vld [vmem:[%s2011_s7 + $0xb8] sm:$0xff]   ;;  %v1840_v18 = vld [vmem:[%s2011_s7 + $0xc0] sm:$0xff]  }
  0x35   : > { %v1841_v19 = vld [vmem:[%s2011_s7 + $0x48] sm:$0xff]   ;;  %v1843_v21 = vld [vmem:[%s2011_s7 + $0x50] sm:$0xff]   ;;  %v1845_v23 = vld [vmem:[%s2011_s7 + $0x58] sm:$0xff]  }
  0x36   : > { %v1842_v20 = vld [vmem:[%s2011_s7 + $0xc8] sm:$0xff]   ;;  %v1844_v22 = vld [vmem:[%s2011_s7 + $0xd0] sm:$0xff]   ;;  %v1846_v24 = vld [vmem:[%s2011_s7 + $0xd8] sm:$0xff]  }
  0x37   : > { %v1847_v25 = vld [vmem:[%s2011_s7 + $0x60] sm:$0xff]   ;;  %v1849_v27 = vld [vmem:[%s2011_s7 + $0x68] sm:$0xff]   ;;  %v1851_v29 = vld [vmem:[%s2011_s7 + $0x70] sm:$0xff]  }
  0x38   : > { %v1848_v26 = vld [vmem:[%s2011_s7 + $0xe0] sm:$0xff]   ;;  %v1850_v28 = vld [vmem:[%s2011_s7 + $0xe8] sm:$0xff]   ;;  %v1852_v30 = vld [vmem:[%s2011_s7 + $0xf0] sm:$0xff]  }
  0x39   : > { %1730 = vmatmul.mubr.msk.bf16.gmra.mxu0 %vm442_vm0, %v1829_v7  ;;  %v1853_v31 = vld [vmem:[%s2011_s7 + $0x78] sm:$0xff]  }
  0x3a   : > { %1762 = vmatmul.mubr.msk.bf16.gmra.mxu1 %vm442_vm0, %v1830_v8  ;;  %1733 = vmatprep.mubr.msk.bf16.mxu0 %vm442_vm0, %v1831_v9  ;;  %v1854_v32 = vld [vmem:[%s2011_s7 + $0xf8] sm:$0xff]  }
  0x3b   : > { %1765 = vmatprep.mubr.msk.bf16.mxu1 %vm442_vm0, %v1832_v10 }
  0x41   : > { %1734 = vmatmul.mubr.msk.bf16.gmra.mxu0 %vm442_vm0, %v1833_v11 }
  0x42   : > { %1766 = vmatmul.mubr.msk.bf16.gmra.mxu1 %vm442_vm0, %v1834_v12  ;;  %1737 = vmatprep.mubr.msk.bf16.mxu0 %vm442_vm0, %v1835_v13 }
  0x43   : > { %1769 = vmatprep.mubr.msk.bf16.mxu1 %vm442_vm0, %v1836_v14 }
  0x49   : > { %1738 = vmatmul.mubr.msk.bf16.gmra.mxu0 %vm442_vm0, %v1837_v15 }
  0x4a   : > { %1770 = vmatmul.mubr.msk.bf16.gmra.mxu1 %vm442_vm0, %v1838_v16  ;;  %1741 = vmatprep.mubr.msk.bf16.mxu0 %vm442_vm0, %v1839_v17 }
  0x4b   : > { %1773 = vmatprep.mubr.msk.bf16.mxu1 %vm442_vm0, %v1840_v18 }
  0x51   : > { %1742 = vmatmul.mubr.msk.bf16.gmra.mxu0 %vm442_vm0, %v1841_v19 }
  0x52   : > { %1774 = vmatmul.mubr.msk.bf16.gmra.mxu1 %vm442_vm0, %v1842_v20  ;;  %1745 = vmatprep.mubr.msk.bf16.mxu0 %vm442_vm0, %v1843_v21 }
  0x53   : > { %1777 = vmatprep.mubr.msk.bf16.mxu1 %vm442_vm0, %v1844_v22 }
  0x59   : > { %1746 = vmatmul.mubr.msk.bf16.gmra.mxu0 %vm442_vm0, %v1845_v23 }
  0x5a   : > { %1778 = vmatmul.mubr.msk.bf16.gmra.mxu1 %vm442_vm0, %v1846_v24  ;;  %1749 = vmatprep.mubr.msk.bf16.mxu0 %vm442_vm0, %v1847_v25 }
  0x5b   : > { %1781 = vmatprep.mubr.msk.bf16.mxu1 %vm442_vm0, %v1848_v26 }
  0x61   : > { %1750 = vmatmul.mubr.msk.bf16.gmra.mxu0 %vm442_vm0, %v1849_v27 }
  0x62   : > { %1782 = vmatmul.mubr.msk.bf16.gmra.mxu1 %vm442_vm0, %v1850_v28  ;;  %1753 = vmatprep.mubr.msk.bf16.mxu0 %vm442_vm0, %v1851_v29 }
  0x63   : > { %1785 = vmatprep.mubr.msk.bf16.mxu1 %vm442_vm0, %v1852_v30 }
  0x69   : > { %1754 = vmatmul.mubr.msk.bf16.gmra.mxu0 %vm442_vm0, %v1853_v31 }
  0x6a   : > { %1786 = vmatmul.mubr.msk.bf16.gmra.mxu1 %vm442_vm0, %v1854_v32 }
  0xf1   : > { %v1727_v34 = vpop.f32.mrf.mxu0 }
  0xf2   : > { %v1759_v35 = vpop.f32.mrf.mxu1  ;;  %v582_v36 = vadd.f32 %v1727_v34, %v2077_v33 }
  0xf3   : > { %v710_v37 = vadd.f32 %v1759_v35, %v2077_v33  ;;  %v573_v38 = vpop.f32.mrf.mxu0 }
  0xf4   : > { %v701_v39 = vpop.f32.mrf.mxu1  ;;  %v574_v40 = vadd.f32 %v2077_v33, %v573_v38  ;;  %v830_v46 = vmax.f32 %v582_v36, 0.0 }
  0xf5   : > { %v702_v41 = vadd.f32 %v2077_v33, %v701_v39  ;;  %v1728_v42 = vpop.f32.mrf.mxu0  ;;  %v862_v47 = vmax.f32 %v710_v37, 0.0 }
  0xf6   : > { %v1760_v43 = vpop.f32.mrf.mxu1  ;;  %v585_v44 = vadd.f32 %v1728_v42, %v2077_v33  ;;  %v828_v54 = vmax.f32 %v574_v40, 0.0 }
  0xf7   : > { %v713_v45 = vadd.f32 %v1760_v43, %v2077_v33  ;;  %v576_v48 = vpop.f32.mrf.mxu0  ;;  %v860_v55 = vmax.f32 %v702_v41, 0.0 }
  0xf8   : > { %v704_v49 = vpop.f32.mrf.mxu1  ;;  %v831_v50 = vmax.f32 %v585_v44, 0.0  ;;  %v577_v52 = vadd.f32 %v2077_v33, %v576_v48 }
  0xf9   : > { %v863_v51 = vmax.f32 %v713_v45, 0.0  ;;  %v705_v53 = vadd.f32 %v2077_v33, %v704_v49  ;;  %v1731_v56 = vpop.f32.mrf.mxu0 }
  0xfa   : > { %v1763_v57 = vpop.f32.mrf.mxu1  ;;  %v1507_v58 = vpack.c.bf16 %v831_v50, %v830_v46  ;;  %v829_v60 = vmax.f32 %v577_v52, 0.0  ;;  %v598_v62 = vadd.f32 %v1731_v56, %v2077_v33 }
  0xfb   : > { %v1587_v59 = vpack.c.bf16 %v863_v51, %v862_v47  ;;  %v861_v61 = vmax.f32 %v705_v53, 0.0  ;;  %v726_v63 = vadd.f32 %v1763_v57, %v2077_v33  ;;  %v589_v0 = vpop.f32.mrf.mxu0 }
  0xfc   : > { %v717_v1 = vpop.f32.mrf.mxu1  ;;  %1659 = vst [vmem:[%s2092_s10 + $0x8] sm:$0xff] %v1507_v58   ;;  %v1502_v2 = vpack.c.bf16 %v829_v60, %v828_v54  ;;  %v590_v4 = vadd.f32 %v2077_v33, %v589_v0  ;;  %v834_v10 = vmax.f32 %v598_v62, 0.0 }
  0xfd   : > { %1675 = vst [vmem:[%s2092_s10 + $0x88] sm:$0xff] %v1587_v59   ;;  %v1582_v3 = vpack.c.bf16 %v861_v61, %v860_v55  ;;  %v718_v5 = vadd.f32 %v2077_v33, %v717_v1  ;;  %v1732_v6 = vpop.f32.mrf.mxu0  ;;  %v866_v11 = vmax.f32 %v726_v63, 0.0 }
  0xfe   : > { %v1764_v7 = vpop.f32.mrf.mxu1  ;;  %1503 = vst [vmem:[%s2092_s10] sm:$0xff] %v1502_v2   ;;  %v601_v8 = vadd.f32 %v1732_v6, %v2077_v33  ;;  %v832_v18 = vmax.f32 %v590_v4, 0.0 }
  0xff   : > { %1674 = vst [vmem:[%s2092_s10 + $0x80] sm:$0xff] %v1582_v3   ;;  %v729_v9 = vadd.f32 %v1764_v7, %v2077_v33  ;;  %v592_v12 = vpop.f32.mrf.mxu0  ;;  %v864_v19 = vmax.f32 %v718_v5, 0.0 }
 0x100   : > { %v720_v13 = vpop.f32.mrf.mxu1  ;;  %v835_v14 = vmax.f32 %v601_v8, 0.0  ;;  %v593_v16 = vadd.f32 %v2077_v33, %v592_v12 }
 0x101   : > { %v867_v15 = vmax.f32 %v729_v9, 0.0  ;;  %v721_v17 = vadd.f32 %v2077_v33, %v720_v13  ;;  %v1735_v20 = vpop.f32.mrf.mxu0 }
 0x102   : > { %v1767_v21 = vpop.f32.mrf.mxu1  ;;  %v1517_v22 = vpack.c.bf16 %v835_v14, %v834_v10  ;;  %v833_v24 = vmax.f32 %v593_v16, 0.0  ;;  %v614_v26 = vadd.f32 %v1735_v20, %v2077_v33 }
 0x103   : > { %v1597_v23 = vpack.c.bf16 %v867_v15, %v866_v11  ;;  %v865_v25 = vmax.f32 %v721_v17, 0.0  ;;  %v742_v27 = vadd.f32 %v1767_v21, %v2077_v33  ;;  %v605_v28 = vpop.f32.mrf.mxu0 }
 0x104   : > { %v733_v29 = vpop.f32.mrf.mxu1  ;;  %1661 = vst [vmem:[%s2092_s10 + $0x18] sm:$0xff] %v1517_v22   ;;  %v1512_v30 = vpack.c.bf16 %v833_v24, %v832_v18  ;;  %v606_v32 = vadd.f32 %v2077_v33, %v605_v28  ;;  %v838_v39 = vmax.f32 %v614_v26, 0.0 }
 0x105   : > { %1677 = vst [vmem:[%s2092_s10 + $0x98] sm:$0xff] %v1597_v23   ;;  %v1592_v31 = vpack.c.bf16 %v865_v25, %v864_v19  ;;  %v734_v34 = vadd.f32 %v2077_v33, %v733_v29  ;;  %v1736_v35 = vpop.f32.mrf.mxu0  ;;  %v870_v40 = vmax.f32 %v742_v27, 0.0 }
 0x106   : > { %v1768_v36 = vpop.f32.mrf.mxu1  ;;  %1660 = vst [vmem:[%s2092_s10 + $0x10] sm:$0xff] %v1512_v30   ;;  %v617_v37 = vadd.f32 %v1736_v35, %v2077_v33  ;;  %v836_v47 = vmax.f32 %v606_v32, 0.0 }
 0x107   : > { %1676 = vst [vmem:[%s2092_s10 + $0x90] sm:$0xff] %v1592_v31   ;;  %v745_v38 = vadd.f32 %v1768_v36, %v2077_v33  ;;  %v608_v41 = vpop.f32.mrf.mxu0  ;;  %v868_v48 = vmax.f32 %v734_v34, 0.0 }
 0x108   : > { %v736_v42 = vpop.f32.mrf.mxu1  ;;  %v839_v43 = vmax.f32 %v617_v37, 0.0  ;;  %v609_v45 = vadd.f32 %v2077_v33, %v608_v41 }
 0x109   : > { %v871_v44 = vmax.f32 %v745_v38, 0.0  ;;  %v737_v46 = vadd.f32 %v2077_v33, %v736_v42  ;;  %v1739_v49 = vpop.f32.mrf.mxu0 }
 0x10a   : > { %v1771_v50 = vpop.f32.mrf.mxu1  ;;  %v1527_v51 = vpack.c.bf16 %v839_v43, %v838_v39  ;;  %v837_v53 = vmax.f32 %v609_v45, 0.0  ;;  %v630_v55 = vadd.f32 %v1739_v49, %v2077_v33 }
 0x10b   : > { %v1607_v52 = vpack.c.bf16 %v871_v44, %v870_v40  ;;  %v869_v54 = vmax.f32 %v737_v46, 0.0  ;;  %v758_v56 = vadd.f32 %v1771_v50, %v2077_v33  ;;  %v621_v57 = vpop.f32.mrf.mxu0 }
 0x10c   : > { %v749_v58 = vpop.f32.mrf.mxu1  ;;  %1663 = vst [vmem:[%s2092_s10 + $0x28] sm:$0xff] %v1527_v51   ;;  %v1522_v59 = vpack.c.bf16 %v837_v53, %v836_v47  ;;  %v622_v61 = vadd.f32 %v2077_v33, %v621_v57  ;;  %v842_v3 = vmax.f32 %v630_v55, 0.0 }
 0x10d   : > { %1679 = vst [vmem:[%s2092_s10 + $0xa8] sm:$0xff] %v1607_v52   ;;  %v1602_v60 = vpack.c.bf16 %v869_v54, %v868_v48  ;;  %v750_v62 = vadd.f32 %v2077_v33, %v749_v58  ;;  %v1740_v63 = vpop.f32.mrf.mxu0  ;;  %v874_v4 = vmax.f32 %v758_v56, 0.0 }
 0x10e   : > { %v1772_v0 = vpop.f32.mrf.mxu1  ;;  %1662 = vst [vmem:[%s2092_s10 + $0x20] sm:$0xff] %v1522_v59   ;;  %v633_v1 = vadd.f32 %v1740_v63, %v2077_v33  ;;  %v840_v11 = vmax.f32 %v622_v61, 0.0 }
 0x10f   : > { %1678 = vst [vmem:[%s2092_s10 + $0xa0] sm:$0xff] %v1602_v60   ;;  %v761_v2 = vadd.f32 %v1772_v0, %v2077_v33  ;;  %v624_v5 = vpop.f32.mrf.mxu0  ;;  %v872_v12 = vmax.f32 %v750_v62, 0.0 }
 0x110   : > { %v752_v6 = vpop.f32.mrf.mxu1  ;;  %v843_v7 = vmax.f32 %v633_v1, 0.0  ;;  %v625_v9 = vadd.f32 %v2077_v33, %v624_v5 }
 0x111   : > { %v875_v8 = vmax.f32 %v761_v2, 0.0  ;;  %v753_v10 = vadd.f32 %v2077_v33, %v752_v6  ;;  %v1743_v13 = vpop.f32.mrf.mxu0 }
 0x112   : > { %v1775_v14 = vpop.f32.mrf.mxu1  ;;  %v1537_v15 = vpack.c.bf16 %v843_v7, %v842_v3  ;;  %v841_v17 = vmax.f32 %v625_v9, 0.0  ;;  %v646_v19 = vadd.f32 %v1743_v13, %v2077_v33 }
 0x113   : > { %v1617_v16 = vpack.c.bf16 %v875_v8, %v874_v4  ;;  %v873_v18 = vmax.f32 %v753_v10, 0.0  ;;  %v774_v20 = vadd.f32 %v1775_v14, %v2077_v33  ;;  %v637_v21 = vpop.f32.mrf.mxu0 }
 0x114   : > { %v765_v22 = vpop.f32.mrf.mxu1  ;;  %1665 = vst [vmem:[%s2092_s10 + $0x38] sm:$0xff] %v1537_v15   ;;  %v1532_v23 = vpack.c.bf16 %v841_v17, %v840_v11  ;;  %v638_v25 = vadd.f32 %v2077_v33, %v637_v21  ;;  %v846_v31 = vmax.f32 %v646_v19, 0.0 }
 0x115   : > { %1681 = vst [vmem:[%s2092_s10 + $0xb8] sm:$0xff] %v1617_v16   ;;  %v1612_v24 = vpack.c.bf16 %v873_v18, %v872_v12  ;;  %v766_v26 = vadd.f32 %v2077_v33, %v765_v22  ;;  %v1744_v27 = vpop.f32.mrf.mxu0  ;;  %v878_v32 = vmax.f32 %v774_v20, 0.0 }
 0x116   : > { %v1776_v28 = vpop.f32.mrf.mxu1  ;;  %1664 = vst [vmem:[%s2092_s10 + $0x30] sm:$0xff] %v1532_v23   ;;  %v649_v29 = vadd.f32 %v1744_v27, %v2077_v33  ;;  %v844_v40 = vmax.f32 %v638_v25, 0.0 }
 0x117   : > { %1680 = vst [vmem:[%s2092_s10 + $0xb0] sm:$0xff] %v1612_v24   ;;  %v777_v30 = vadd.f32 %v1776_v28, %v2077_v33  ;;  %v640_v34 = vpop.f32.mrf.mxu0  ;;  %v876_v41 = vmax.f32 %v766_v26, 0.0 }
 0x118   : > { %v768_v35 = vpop.f32.mrf.mxu1  ;;  %v847_v36 = vmax.f32 %v649_v29, 0.0  ;;  %v641_v38 = vadd.f32 %v2077_v33, %v640_v34 }
 0x119   : > { %v879_v37 = vmax.f32 %v777_v30, 0.0  ;;  %v769_v39 = vadd.f32 %v2077_v33, %v768_v35  ;;  %v1747_v42 = vpop.f32.mrf.mxu0 }
 0x11a   : > { %v1779_v43 = vpop.f32.mrf.mxu1  ;;  %v1547_v44 = vpack.c.bf16 %v847_v36, %v846_v31  ;;  %v845_v46 = vmax.f32 %v641_v38, 0.0  ;;  %v662_v48 = vadd.f32 %v1747_v42, %v2077_v33 }
 0x11b   : > { %v1627_v45 = vpack.c.bf16 %v879_v37, %v878_v32  ;;  %v877_v47 = vmax.f32 %v769_v39, 0.0  ;;  %v790_v49 = vadd.f32 %v1779_v43, %v2077_v33  ;;  %v653_v50 = vpop.f32.mrf.mxu0 }
 0x11c   : > { %v781_v51 = vpop.f32.mrf.mxu1  ;;  %1667 = vst [vmem:[%s2092_s10 + $0x48] sm:$0xff] %v1547_v44   ;;  %v1542_v52 = vpack.c.bf16 %v845_v46, %v844_v40  ;;  %v654_v54 = vadd.f32 %v2077_v33, %v653_v50  ;;  %v850_v60 = vmax.f32 %v662_v48, 0.0 }
 0x11d   : > { %1683 = vst [vmem:[%s2092_s10 + $0xc8] sm:$0xff] %v1627_v45   ;;  %v1622_v53 = vpack.c.bf16 %v877_v47, %v876_v41  ;;  %v782_v55 = vadd.f32 %v2077_v33, %v781_v51  ;;  %v1748_v56 = vpop.f32.mrf.mxu0  ;;  %v882_v61 = vmax.f32 %v790_v49, 0.0 }
 0x11e   : > { %v1780_v57 = vpop.f32.mrf.mxu1  ;;  %1666 = vst [vmem:[%s2092_s10 + $0x40] sm:$0xff] %v1542_v52   ;;  %v665_v58 = vadd.f32 %v1748_v56, %v2077_v33  ;;  %v848_v4 = vmax.f32 %v654_v54, 0.0 }
 0x11f   : > { %1682 = vst [vmem:[%s2092_s10 + $0xc0] sm:$0xff] %v1622_v53   ;;  %v793_v59 = vadd.f32 %v1780_v57, %v2077_v33  ;;  %v656_v62 = vpop.f32.mrf.mxu0  ;;  %v880_v5 = vmax.f32 %v782_v55, 0.0 }
 0x120   : > { %v784_v63 = vpop.f32.mrf.mxu1  ;;  %v851_v0 = vmax.f32 %v665_v58, 0.0  ;;  %v657_v2 = vadd.f32 %v2077_v33, %v656_v62 }
 0x121   : > { %v883_v1 = vmax.f32 %v793_v59, 0.0  ;;  %v785_v3 = vadd.f32 %v2077_v33, %v784_v63  ;;  %v1751_v6 = vpop.f32.mrf.mxu0 }
 0x122   : > { %v1783_v7 = vpop.f32.mrf.mxu1  ;;  %v1557_v8 = vpack.c.bf16 %v851_v0, %v850_v60  ;;  %v849_v10 = vmax.f32 %v657_v2, 0.0  ;;  %v678_v12 = vadd.f32 %v1751_v6, %v2077_v33 }
 0x123   : > { %v1637_v9 = vpack.c.bf16 %v883_v1, %v882_v61  ;;  %v881_v11 = vmax.f32 %v785_v3, 0.0  ;;  %v806_v13 = vadd.f32 %v1783_v7, %v2077_v33  ;;  %v669_v14 = vpop.f32.mrf.mxu0 }
 0x124   : > { %v797_v15 = vpop.f32.mrf.mxu1  ;;  %1669 = vst [vmem:[%s2092_s10 + $0x58] sm:$0xff] %v1557_v8   ;;  %v1552_v16 = vpack.c.bf16 %v849_v10, %v848_v4  ;;  %v670_v18 = vadd.f32 %v2077_v33, %v669_v14  ;;  %v854_v24 = vmax.f32 %v678_v12, 0.0 }
 0x125   : > { %1685 = vst [vmem:[%s2092_s10 + $0xd8] sm:$0xff] %v1637_v9   ;;  %v1632_v17 = vpack.c.bf16 %v881_v11, %v880_v5  ;;  %v798_v19 = vadd.f32 %v2077_v33, %v797_v15  ;;  %v1752_v20 = vpop.f32.mrf.mxu0  ;;  %v886_v25 = vmax.f32 %v806_v13, 0.0 }
 0x126   : > { %v1784_v21 = vpop.f32.mrf.mxu1  ;;  %1668 = vst [vmem:[%s2092_s10 + $0x50] sm:$0xff] %v1552_v16   ;;  %v681_v22 = vadd.f32 %v1752_v20, %v2077_v33  ;;  %v852_v32 = vmax.f32 %v670_v18, 0.0 }
 0x127   : > { %1684 = vst [vmem:[%s2092_s10 + $0xd0] sm:$0xff] %v1632_v17   ;;  %v809_v23 = vadd.f32 %v1784_v21, %v2077_v33  ;;  %v672_v26 = vpop.f32.mrf.mxu0  ;;  %v884_v34 = vmax.f32 %v798_v19, 0.0 }
 0x128   : > { %v800_v27 = vpop.f32.mrf.mxu1  ;;  %v855_v28 = vmax.f32 %v681_v22, 0.0  ;;  %v673_v30 = vadd.f32 %v2077_v33, %v672_v26 }
 0x129   : > { %v887_v29 = vmax.f32 %v809_v23, 0.0  ;;  %v801_v31 = vadd.f32 %v2077_v33, %v800_v27  ;;  %v1755_v35 = vpop.f32.mrf.mxu0 }
 0x12a   : > { %v1787_v36 = vpop.f32.mrf.mxu1  ;;  %v1567_v37 = vpack.c.bf16 %v855_v28, %v854_v24  ;;  %v853_v39 = vmax.f32 %v673_v30, 0.0  ;;  %v694_v41 = vadd.f32 %v1755_v35, %v2077_v33 }
 0x12b   : > { %v1647_v38 = vpack.c.bf16 %v887_v29, %v886_v25  ;;  %v885_v40 = vmax.f32 %v801_v31, 0.0  ;;  %v822_v42 = vadd.f32 %v1787_v36, %v2077_v33  ;;  %v685_v43 = vpop.f32.mrf.mxu0 }
 0x12c   : > { %v813_v44 = vpop.f32.mrf.mxu1  ;;  %1671 = vst [vmem:[%s2092_s10 + $0x68] sm:$0xff] %v1567_v37   ;;  %v1562_v45 = vpack.c.bf16 %v853_v39, %v852_v32  ;;  %v686_v47 = vadd.f32 %v2077_v33, %v685_v43  ;;  %v858_v53 = vmax.f32 %v694_v41, 0.0 }
 0x12d   : > { %1687 = vst [vmem:[%s2092_s10 + $0xe8] sm:$0xff] %v1647_v38   ;;  %v1642_v46 = vpack.c.bf16 %v885_v40, %v884_v34  ;;  %v814_v48 = vadd.f32 %v2077_v33, %v813_v44  ;;  %v1756_v49 = vpop.f32.mrf.mxu0  ;;  %v890_v54 = vmax.f32 %v822_v42, 0.0 }
 0x12e   : > { %v1788_v50 = vpop.f32.mrf.mxu1  ;;  %1670 = vst [vmem:[%s2092_s10 + $0x60] sm:$0xff] %v1562_v45   ;;  %v697_v51 = vadd.f32 %v1756_v49, %v2077_v33  ;;  %v856_v61 = vmax.f32 %v686_v47, 0.0 }
 0x12f   : > { %1686 = vst [vmem:[%s2092_s10 + $0xe0] sm:$0xff] %v1642_v46   ;;  %v825_v52 = vadd.f32 %v1788_v50, %v2077_v33  ;;  %v688_v55 = vpop.f32.mrf.mxu0  ;;  %v888_v62 = vmax.f32 %v814_v48, 0.0 }
 0x130   : > { %v816_v56 = vpop.f32.mrf.mxu1  ;;  %v859_v57 = vmax.f32 %v697_v51, 0.0  ;;  %v689_v59 = vadd.f32 %v2077_v33, %v688_v55 }
 0x131   : > { %v891_v58 = vmax.f32 %v825_v52, 0.0  ;;  %v817_v60 = vadd.f32 %v2077_v33, %v816_v56 }
 0x132   : > { %v1577_v63 = vpack.c.bf16 %v859_v57, %v858_v53  ;;  %v857_v1 = vmax.f32 %v689_v59, 0.0 }
 0x133   : > { %v1657_v0 = vpack.c.bf16 %v891_v58, %v890_v54  ;;  %v889_v2 = vmax.f32 %v817_v60, 0.0 }
 0x134   : > { %1673 = vst [vmem:[%s2092_s10 + $0x78] sm:$0xff] %v1577_v63   ;;  %v1572_v3 = vpack.c.bf16 %v857_v1, %v856_v61 }
 0x135   : > { %1689 = vst [vmem:[%s2092_s10 + $0xf8] sm:$0xff] %v1657_v0   ;;  %v1652_v4 = vpack.c.bf16 %v889_v2, %v888_v62 }
 0x136   : > { %1672 = vst [vmem:[%s2092_s10 + $0x70] sm:$0xff] %v1572_v3  }
 0x137   : > { %1688 = vst [vmem:[%s2092_s10 + $0xf0] sm:$0xff] %v1652_v4  }
 0x138 PF: > { %s15_s12 = sadd.s32 1, %s1921_s12  }
 0x139   : > { %p12_p2 = scmp.ge.s32.totalorder %s15_s12, 6  }
 0x13b   :  { %14 = sbr.rel (!%p12_p2) target bundleno = 2 (0x2), region = 71 }
 0x140   :  { %1234 = vsyncpa [#allocation3], 1 }
 0x141   :  { %1236 = vsyncpa [#allocation3 + $0x1], 1 }
 0x142   :  { %1237 = vsyncpa [#allocation5], 1 }

// kernel: cae_forward.10
= control target key start
LH: loop header
LB: loop body
LE: loop exit
PB: predicated region body
PF: predicated region fallthrough
CT: control target
= control target key end

     0   :  { %s2052_s12 = smov 0   ;;  %s2292_s0 = inlined_call_operand.vmem [shape: bf16[512,512], index: 0, kind: input, shape index: {}]   ;;  %s2293_s1 = inlined_call_operand.vmem [shape: bf16[512,128], index: 1, kind: input, shape index: {}]   ;;  %s2294_s2 = inlined_call_operand.vmem [shape: f32[1,128], index: 2, kind: input, shape index: {}]   ;;  %s2295_s3 = inlined_call_operand.vmem [shape: bf16[512,128], index: 3, kind: output, shape index: {}]  }
   0x1 LB: > { %s1395_s13 = sadd.s32 4294967295, %s2030_s12   ;;  %p1399_p0 = scmp.ge.s32.totalorder %s2030_s12, 1  ;;  %s2030_s12 = sphi %s2052_s12, %s13_s12  }
   0x2   : > { %p139_p1 = scmp.lt.s32.totalorder %s2030_s12, 3 }
   0x4   : > { %p140_p2 = pnand %p1399_p0, %p139_p1 }
   0x5   : > { %s1400_s21 = sshll.u32 (!%p140_p2), %s1395_s13, 5 }
   0x6   : > { %143 = sbr.rel (%p140_p2) target bundleno = 375 (0x177), region = 32  ;;  %p165_p3 = scmp.lt.s32.totalorder (!%p140_p2), %s1400_s21, 63 }
   0xb   : > { %v1896_v0 = vld [vmem:[%s2293_s1 + $0x78] sm:$0xff]   ;;  %v1900_v4 = vld [vmem:[%s2293_s1 + $0x70] sm:$0xff]   ;;  %v1904_v8 = vld [vmem:[%s2293_s1 + $0x68] sm:$0xff]   ;;  %s2297_s21 = smov (!%p165_p3, %s1400_s21), 63 }
   0xc   : > { %v1897_v1 = vld [vmem:[%s2293_s1 + $0xf8] sm:$0xff]   ;;  %1664 = vmatprep.subr.bf16.mxu0 %v1896_v0  ;;  %v1901_v5 = vld [vmem:[%s2293_s1 + $0xf0] sm:$0xff]   ;;  %v1905_v9 = vld [vmem:[%s2293_s1 + $0xe8] sm:$0xff]   ;;  %s1536_s18 = sshll.u32 %s2297_s21, 4  ;;  %s1404_s7 = sshll.u32 %s2297_s21, 2 }
   0xd   : > { %v1898_v2 = vld [vmem:[%s2293_s1 + $0x38] sm:$0xff]   ;;  %1776 = vmatprep.subr.bf16.mxu1 %v1897_v1  ;;  %v1902_v6 = vld [vmem:[%s2293_s1 + $0x30] sm:$0xff]   ;;  %v1906_v10 = vld [vmem:[%s2293_s1 + $0x28] sm:$0xff]   ;;  %s2158_s28 = scalar_lea.vmem %s2292_s0, %s1536_s18  ;;  %s2242_s10 = scalar_lea.vmem %s2295_s3, %s1404_s7 }
   0xe   : > { %v1899_v3 = vld [vmem:[%s2293_s1 + $0xb8] sm:$0xff]   ;;  %1665 = vmatpush3.bf16.msra.mxu0 %v1898_v2  ;;  %v1903_v7 = vld [vmem:[%s2293_s1 + $0xb0] sm:$0xff]   ;;  %v1907_v11 = vld [vmem:[%s2293_s1 + $0xa8] sm:$0xff]  }
   0xf   : > { %1777 = vmatpush3.bf16.msra.mxu1 %v1899_v3  ;;  %1666 = vmatprep.subr.bf16.mxu0 %v1900_v4  ;;  %v1908_v12 = vld [vmem:[%s2293_s1 + $0x60] sm:$0xff]   ;;  %v1912_v16 = vld [vmem:[%s2293_s1 + $0x58] sm:$0xff]   ;;  %v1916_v20 = vld [vmem:[%s2293_s1 + $0x50] sm:$0xff]  }
  0x10   : > { %1778 = vmatprep.subr.bf16.mxu1 %v1901_v5  ;;  %v1909_v13 = vld [vmem:[%s2293_s1 + $0xe0] sm:$0xff]   ;;  %v1913_v17 = vld [vmem:[%s2293_s1 + $0xd8] sm:$0xff]   ;;  %v1917_v21 = vld [vmem:[%s2293_s1 + $0xd0] sm:$0xff]  }
  0x11   : > { %v1910_v14 = vld [vmem:[%s2293_s1 + $0x20] sm:$0xff]   ;;  %v1914_v18 = vld [vmem:[%s2293_s1 + $0x18] sm:$0xff]   ;;  %v1918_v22 = vld [vmem:[%s2293_s1 + $0x10] sm:$0xff]  }
  0x12   : > { %1667 = vmatpush3.bf16.msra.mxu0 %v1902_v6  ;;  %v1911_v15 = vld [vmem:[%s2293_s1 + $0xa0] sm:$0xff]   ;;  %v1915_v19 = vld [vmem:[%s2293_s1 + $0x98] sm:$0xff]   ;;  %v1919_v23 = vld [vmem:[%s2293_s1 + $0x90] sm:$0xff]  }
  0x13   : > { %1779 = vmatpush3.bf16.msra.mxu1 %v1903_v7  ;;  %1668 = vmatprep.subr.bf16.mxu0 %v1904_v8  ;;  %v1920_v24 = vld [vmem:[%s2293_s1 + $0x48] sm:$0xff]   ;;  %v1924_v28 = vld [vmem:[%s2293_s1 + $0x40] sm:$0xff]  }
  0x14   : > { %1780 = vmatprep.subr.bf16.mxu1 %v1905_v9  ;;  %v1921_v25 = vld [vmem:[%s2293_s1 + $0xc8] sm:$0xff]   ;;  %v1925_v29 = vld [vmem:[%s2293_s1 + $0xc0] sm:$0xff]  }
  0x15   : > { %v1922_v26 = vld [vmem:[%s2293_s1 + $0x8] sm:$0xff]   ;;  %v1926_v30 = vld [vmem:[%s2293_s1] sm:$0xff]  }
  0x16   : > { %1669 = vmatpush3.bf16.msra.mxu0 %v1906_v10  ;;  %v1923_v27 = vld [vmem:[%s2293_s1 + $0x88] sm:$0xff]   ;;  %v1927_v31 = vld [vmem:[%s2293_s1 + $0x80] sm:$0xff]  }
  0x17   : > { %1781 = vmatpush3.bf16.msra.mxu1 %v1907_v11  ;;  %1670 = vmatprep.subr.bf16.mxu0 %v1908_v12  ;;  %v1928_v32 = vld [vmem:[%s2158_s28] ss:$16 sps:$4 sm:$0xff]   ;;  %v1930_v33 = vld [vmem:[%s2158_s28 + $0x4] ss:$16 sps:$4 sm:$0xff]   ;;  %v1931_v34 = vld [vmem:[%s2158_s28 + $0x8] ss:$16 sps:$4 sm:$0xff]  }
  0x18   : > { %1782 = vmatprep.subr.bf16.mxu1 %v1909_v13  ;;  %v1933_v35 = vld [vmem:[%s2158_s28 + $0xc] ss:$16 sps:$4 sm:$0xff]   ;;  %857 = vmatprep.mubr.bf16.mxu0 %v1930_v33  ;;  %v1934_v36 = vld [vmem:[%s2158_s28 + $0x24] ss:$16 sps:$4 sm:$0xff]   ;;  %v1938_v38 = vld [vmem:[%s2158_s28 + $0x20] ss:$16 sps:$4 sm:$0xff]  }
  0x19   : > { %1018 = vmatprep.mubr.bf16.mxu1 %v1933_v35  ;;  %v1936_v37 = vld [vmem:[%s2158_s28 + $0x2c] ss:$16 sps:$4 sm:$0xff]   ;;  %v1939_v39 = vld [vmem:[%s2158_s28 + $0x28] ss:$16 sps:$4 sm:$0xff]   ;;  %v1940_v40 = vld [vmem:[%s2158_s28 + $0x44] ss:$16 sps:$4 sm:$0xff]  }
  0x1a   : > { %1671 = vmatpush3.bf16.msra.mxu0 %v1910_v14  ;;  %v1942_v41 = vld [vmem:[%s2158_s28 + $0x4c] ss:$16 sps:$4 sm:$0xff]   ;;  %v1944_v42 = vld [vmem:[%s2158_s28 + $0x40] ss:$16 sps:$4 sm:$0xff]   ;;  %v1945_v43 = vld [vmem:[%s2158_s28 + $0x48] ss:$16 sps:$4 sm:$0xff]  }
  0x1b   : > { %1783 = vmatpush3.bf16.msra.mxu1 %v1911_v15  ;;  %1672 = vmatprep.subr.bf16.mxu0 %v1912_v16  ;;  %v1946_v44 = vld [vmem:[%s2158_s28 + $0x64] ss:$16 sps:$4 sm:$0xff]   ;;  %v1948_v45 = vld [vmem:[%s2158_s28 + $0x6c] ss:$16 sps:$4 sm:$0xff]   ;;  %v1950_v46 = vld [vmem:[%s2158_s28 + $0x60] ss:$16 sps:$4 sm:$0xff]  }
  0x1c   : > { %1784 = vmatprep.subr.bf16.mxu1 %v1913_v17  ;;  %v1951_v47 = vld [vmem:[%s2158_s28 + $0x68] ss:$16 sps:$4 sm:$0xff]   ;;  %v1952_v48 = vld [vmem:[%s2158_s28 + $0x84] ss:$16 sps:$4 sm:$0xff]   ;;  %v1954_v49 = vld [vmem:[%s2158_s28 + $0x8c] ss:$16 sps:$4 sm:$0xff]  }
  0x1d   : > { %v1956_v50 = vld [vmem:[%s2158_s28 + $0x80] ss:$16 sps:$4 sm:$0xff]   ;;  %v1957_v51 = vld [vmem:[%s2158_s28 + $0x88] ss:$16 sps:$4 sm:$0xff]   ;;  %v1958_v52 = vld [vmem:[%s2158_s28 + $0xa4] ss:$16 sps:$4 sm:$0xff]  }
  0x1e   : > { %1673 = vmatpush3.bf16.msra.mxu0 %v1914_v18  ;;  %v1960_v53 = vld [vmem:[%s2158_s28 + $0xac] ss:$16 sps:$4 sm:$0xff]   ;;  %v1962_v54 = vld [vmem:[%s2158_s28 + $0xa0] ss:$16 sps:$4 sm:$0xff]   ;;  %v1963_v55 = vld [vmem:[%s2158_s28 + $0xa8] ss:$16 sps:$4 sm:$0xff]  }
  0x1f   : > { %1785 = vmatpush3.bf16.msra.mxu1 %v1915_v19  ;;  %1674 = vmatprep.subr.bf16.mxu0 %v1916_v20  ;;  %v1964_v56 = vld [vmem:[%s2158_s28 + $0xc4] ss:$16 sps:$4 sm:$0xff]   ;;  %v1966_v57 = vld [vmem:[%s2158_s28 + $0xcc] ss:$16 sps:$4 sm:$0xff]   ;;  %v1968_v58 = vld [vmem:[%s2158_s28 + $0xc0] ss:$16 sps:$4 sm:$0xff]  }
  0x20   : > { %1786 = vmatprep.subr.bf16.mxu1 %v1917_v21  ;;  %v1969_v59 = vld [vmem:[%s2158_s28 + $0xc8] ss:$16 sps:$4 sm:$0xff]   ;;  %v1970_v60 = vld [vmem:[%s2158_s28 + $0xe4] ss:$16 sps:$4 sm:$0xff]   ;;  %v1972_v61 = vld [vmem:[%s2158_s28 + $0xec] ss:$16 sps:$4 sm:$0xff]  }
  0x21   : > { %v1974_v62 = vld [vmem:[%s2158_s28 + $0xe0] ss:$16 sps:$4 sm:$0xff]   ;;  %v1975_v63 = vld [vmem:[%s2158_s28 + $0xe8] ss:$16 sps:$4 sm:$0xff]   ;;  %v1976_v0 = vld [vmem:[%s2158_s28 + $0x104] ss:$16 sps:$4 sm:$0xff]  }
  0x22   : > { %1675 = vmatpush3.bf16.msra.mxu0 %v1918_v22  ;;  %v1978_v1 = vld [vmem:[%s2158_s28 + $0x10c] ss:$16 sps:$4 sm:$0xff]   ;;  %v1980_v2 = vld [vmem:[%s2158_s28 + $0x100] ss:$16 sps:$4 sm:$0xff]   ;;  %v1981_v3 = vld [vmem:[%s2158_s28 + $0x108] ss:$16 sps:$4 sm:$0xff]  }
  0x23   : > { %1787 = vmatpush3.bf16.msra.mxu1 %v1919_v23  ;;  %1676 = vmatprep.subr.bf16.mxu0 %v1920_v24  ;;  %v1982_v4 = vld [vmem:[%s2158_s28 + $0x124] ss:$16 sps:$4 sm:$0xff]   ;;  %v1984_v5 = vld [vmem:[%s2158_s28 + $0x12c] ss:$16 sps:$4 sm:$0xff]   ;;  %v1986_v6 = vld [vmem:[%s2158_s28 + $0x120] ss:$16 sps:$4 sm:$0xff]  }
  0x24   : > { %1788 = vmatprep.subr.bf16.mxu1 %v1921_v25  ;;  %v1987_v7 = vld [vmem:[%s2158_s28 + $0x128] ss:$16 sps:$4 sm:$0xff]   ;;  %v1988_v8 = vld [vmem:[%s2158_s28 + $0x144] ss:$16 sps:$4 sm:$0xff]   ;;  %v1990_v9 = vld [vmem:[%s2158_s28 + $0x14c] ss:$16 sps:$4 sm:$0xff]  }
  0x25   : > { %v1992_v10 = vld [vmem:[%s2158_s28 + $0x140] ss:$16 sps:$4 sm:$0xff]   ;;  %v1993_v11 = vld [vmem:[%s2158_s28 + $0x148] ss:$16 sps:$4 sm:$0xff]   ;;  %v1994_v12 = vld [vmem:[%s2158_s28 + $0x164] ss:$16 sps:$4 sm:$0xff]  }
  0x26   : > { %1677 = vmatpush3.bf16.msra.mxu0 %v1922_v26  ;;  %v1996_v13 = vld [vmem:[%s2158_s28 + $0x16c] ss:$16 sps:$4 sm:$0xff]   ;;  %v1998_v14 = vld [vmem:[%s2158_s28 + $0x160] ss:$16 sps:$4 sm:$0xff]   ;;  %v1999_v15 = vld [vmem:[%s2158_s28 + $0x168] ss:$16 sps:$4 sm:$0xff]  }
  0x27   : > { %1789 = vmatpush3.bf16.msra.mxu1 %v1923_v27  ;;  %1678 = vmatprep.subr.bf16.mxu0 %v1924_v28  ;;  %v2000_v16 = vld [vmem:[%s2158_s28 + $0x184] ss:$16 sps:$4 sm:$0xff]   ;;  %v2002_v17 = vld [vmem:[%s2158_s28 + $0x18c] ss:$16 sps:$4 sm:$0xff]   ;;  %v2004_v18 = vld [vmem:[%s2158_s28 + $0x180] ss:$16 sps:$4 sm:$0xff]  }
  0x28   : > { %1790 = vmatprep.subr.bf16.mxu1 %v1925_v29  ;;  %v2005_v19 = vld [vmem:[%s2158_s28 + $0x188] ss:$16 sps:$4 sm:$0xff]   ;;  %v2006_v20 = vld [vmem:[%s2158_s28 + $0x1a4] ss:$16 sps:$4 sm:$0xff]   ;;  %v2008_v21 = vld [vmem:[%s2158_s28 + $0x1ac] ss:$16 sps:$4 sm:$0xff]  }
  0x29   : > { %v2010_v22 = vld [vmem:[%s2158_s28 + $0x1a0] ss:$16 sps:$4 sm:$0xff]   ;;  %v2011_v23 = vld [vmem:[%s2158_s28 + $0x1a8] ss:$16 sps:$4 sm:$0xff]   ;;  %v2012_v24 = vld [vmem:[%s2158_s28 + $0x1c4] ss:$16 sps:$4 sm:$0xff]  }
  0x2a   : > { %1679 = vmatpush3.bf16.msra.mxu0 %v1926_v30  ;;  %v2014_v25 = vld [vmem:[%s2158_s28 + $0x1cc] ss:$16 sps:$4 sm:$0xff]   ;;  %v2016_v26 = vld [vmem:[%s2158_s28 + $0x1c0] ss:$16 sps:$4 sm:$0xff]   ;;  %v2017_v27 = vld [vmem:[%s2158_s28 + $0x1c8] ss:$16 sps:$4 sm:$0xff]  }
  0x2b   : > { %1791 = vmatpush3.bf16.msra.mxu1 %v1927_v31  ;;  %v2018_v28 = vld [vmem:[%s2158_s28 + $0x1e4] ss:$16 sps:$4 sm:$0xff]   ;;  %v2020_v29 = vld [vmem:[%s2158_s28 + $0x1ec] ss:$16 sps:$4 sm:$0xff]   ;;  %v2022_v30 = vld [vmem:[%s2158_s28 + $0x1e0] ss:$16 sps:$4 sm:$0xff]  }
  0x2c   : > { %v2023_v31 = vld [vmem:[%s2158_s28 + $0x1e8] ss:$16 sps:$4 sm:$0xff]  }
  0x2d   : > { %858 = vmatmul.mubr.bf16.vlgmr.msra.gmra.mxu0 %v1928_v32 }
  0x2e   : > { %1019 = vmatmul.mubr.bf16.vlgmr.msra.gmra.mxu1 %v1931_v34  ;;  %865 = vmatprep.mubr.bf16.mxu0 %v1934_v36  ;;  %v2233_v34 = vld [vmem:[%s2294_s2] ss:$0 sm:$0xff] }
  0x2f   : > { %1026 = vmatprep.mubr.bf16.mxu1 %v1936_v37 }
  0x35   : > { %866 = vmatmul.mubr.bf16.gmra.mxu0 %v1938_v38 }
  0x36   : > { %1027 = vmatmul.mubr.bf16.gmra.mxu1 %v1939_v39  ;;  %873 = vmatprep.mubr.bf16.mxu0 %v1940_v40 }
  0x37   : > { %1034 = vmatprep.mubr.bf16.mxu1 %v1942_v41 }
  0x3d   : > { %874 = vmatmul.mubr.bf16.gmra.mxu0 %v1944_v42 }
  0x3e   : > { %1035 = vmatmul.mubr.bf16.gmra.mxu1 %v1945_v43  ;;  %881 = vmatprep.mubr.bf16.mxu0 %v1946_v44 }
  0x3f   : > { %1042 = vmatprep.mubr.bf16.mxu1 %v1948_v45 }
  0x45   : > { %882 = vmatmul.mubr.bf16.gmra.mxu0 %v1950_v46 }
  0x46   : > { %1043 = vmatmul.mubr.bf16.gmra.mxu1 %v1951_v47  ;;  %889 = vmatprep.mubr.bf16.mxu0 %v1952_v48 }
  0x47   : > { %1050 = vmatprep.mubr.bf16.mxu1 %v1954_v49 }
  0x4d   : > { %890 = vmatmul.mubr.bf16.gmra.mxu0 %v1956_v50 }
  0x4e   : > { %1051 = vmatmul.mubr.bf16.gmra.mxu1 %v1957_v51  ;;  %897 = vmatprep.mubr.bf16.mxu0 %v1958_v52 }
  0x4f   : > { %1058 = vmatprep.mubr.bf16.mxu1 %v1960_v53 }
  0x55   : > { %898 = vmatmul.mubr.bf16.gmra.mxu0 %v1962_v54 }
  0x56   : > { %1059 = vmatmul.mubr.bf16.gmra.mxu1 %v1963_v55  ;;  %905 = vmatprep.mubr.bf16.mxu0 %v1964_v56 }
  0x57   : > { %1066 = vmatprep.mubr.bf16.mxu1 %v1966_v57 }
  0x5d   : > { %906 = vmatmul.mubr.bf16.gmra.mxu0 %v1968_v58 }
  0x5e   : > { %1067 = vmatmul.mubr.bf16.gmra.mxu1 %v1969_v59  ;;  %913 = vmatprep.mubr.bf16.mxu0 %v1970_v60 }
  0x5f   : > { %1074 = vmatprep.mubr.bf16.mxu1 %v1972_v61 }
  0x65   : > { %914 = vmatmul.mubr.bf16.gmra.mxu0 %v1974_v62 }
  0x66   : > { %1075 = vmatmul.mubr.bf16.gmra.mxu1 %v1975_v63  ;;  %921 = vmatprep.mubr.bf16.mxu0 %v1976_v0 }
  0x67   : > { %1082 = vmatprep.mubr.bf16.mxu1 %v1978_v1 }
  0x6d   : > { %922 = vmatmul.mubr.bf16.gmra.mxu0 %v1980_v2 }
  0x6e   : > { %1083 = vmatmul.mubr.bf16.gmra.mxu1 %v1981_v3  ;;  %929 = vmatprep.mubr.bf16.mxu0 %v1982_v4 }
  0x6f   : > { %1090 = vmatprep.mubr.bf16.mxu1 %v1984_v5 }
  0x75   : > { %930 = vmatmul.mubr.bf16.gmra.mxu0 %v1986_v6 }
  0x76   : > { %1091 = vmatmul.mubr.bf16.gmra.mxu1 %v1987_v7  ;;  %937 = vmatprep.mubr.bf16.mxu0 %v1988_v8 }
  0x77   : > { %1098 = vmatprep.mubr.bf16.mxu1 %v1990_v9 }
  0x7d   : > { %938 = vmatmul.mubr.bf16.gmra.mxu0 %v1992_v10 }
  0x7e   : > { %1099 = vmatmul.mubr.bf16.gmra.mxu1 %v1993_v11  ;;  %945 = vmatprep.mubr.bf16.mxu0 %v1994_v12 }
  0x7f   : > { %1106 = vmatprep.mubr.bf16.mxu1 %v1996_v13 }
  0x85   : > { %946 = vmatmul.mubr.bf16.gmra.mxu0 %v1998_v14 }
  0x86   : > { %1107 = vmatmul.mubr.bf16.gmra.mxu1 %v1999_v15  ;;  %953 = vmatprep.mubr.bf16.mxu0 %v2000_v16 }
  0x87   : > { %1114 = vmatprep.mubr.bf16.mxu1 %v2002_v17 }
  0x8d   : > { %954 = vmatmul.mubr.bf16.gmra.mxu0 %v2004_v18 }
  0x8e   : > { %1115 = vmatmul.mubr.bf16.gmra.mxu1 %v2005_v19  ;;  %961 = vmatprep.mubr.bf16.mxu0 %v2006_v20 }
  0x8f   : > { %1122 = vmatprep.mubr.bf16.mxu1 %v2008_v21 }
  0x95   : > { %962 = vmatmul.mubr.bf16.gmra.mxu0 %v2010_v22 }
  0x96   : > { %1123 = vmatmul.mubr.bf16.gmra.mxu1 %v2011_v23  ;;  %969 = vmatprep.mubr.bf16.mxu0 %v2012_v24 }
  0x97   : > { %1130 = vmatprep.mubr.bf16.mxu1 %v2014_v25 }
  0x9d   : > { %970 = vmatmul.mubr.bf16.gmra.mxu0 %v2016_v26 }
  0x9e   : > { %1131 = vmatmul.mubr.bf16.gmra.mxu1 %v2017_v27  ;;  %977 = vmatprep.mubr.bf16.mxu0 %v2018_v28 }
  0x9f   : > { %1138 = vmatprep.mubr.bf16.mxu1 %v2020_v29 }
  0xa5   : > { %978 = vmatmul.mubr.bf16.gmra.mxu0 %v2022_v30 }
  0xa6   : > { %1139 = vmatmul.mubr.bf16.gmra.mxu1 %v2023_v31 }
  0xed   : > { %v1680_v32 = vpop.f32.mrf.mxu0 }
  0xee   : > { %v1792_v33 = vpop.f32.mrf.mxu1 }
  0xef   : > { %v1681_v35 = vpop.f32.mrf.mxu0 }
  0xf0   : > { %v1682_v36 = vadd.f32 %v1681_v35, %v1680_v32  ;;  %v1793_v37 = vpop.f32.mrf.mxu1 }
  0xf1   : > { %v1683_v38 = vpop.f32.mrf.mxu0  ;;  %v1794_v42 = vadd.f32 %v1793_v37, %v1792_v33 }
  0xf2   : > { %v860_v39 = vadd.f32 %v1682_v36, %v2233_v34  ;;  %v1795_v40 = vpop.f32.mrf.mxu1 }
  0xf3   : > { %v1684_v41 = vpop.f32.mrf.mxu0 }
  0xf4   : > { %v1685_v43 = vadd.f32 %v1684_v41, %v1683_v38  ;;  %v1796_v44 = vpop.f32.mrf.mxu1  ;;  %v1021_v46 = vadd.f32 %v1794_v42, %v860_v39 }
  0xf5   : > { %v1686_v45 = vpop.f32.mrf.mxu0  ;;  %v1797_v48 = vadd.f32 %v1796_v44, %v1795_v40 }
  0xf6   : > { %v863_v47 = vadd.f32 %v1685_v43, %v2233_v34  ;;  %v1798_v49 = vpop.f32.mrf.mxu1  ;;  %v1147_v55 = vmax.f32 %v1021_v46, 0.0 }
  0xf7   : > { %v1687_v50 = vpop.f32.mrf.mxu0 }
  0xf8   : > { %v1024_v51 = vadd.f32 %v1797_v48, %v863_v47  ;;  %v1688_v52 = vadd.f32 %v1687_v50, %v1686_v45  ;;  %v1799_v53 = vpop.f32.mrf.mxu1 }
  0xf9   : > { %v1689_v54 = vpop.f32.mrf.mxu0  ;;  %v1800_v61 = vadd.f32 %v1799_v53, %v1798_v49 }
  0xfa   : > { %v1148_v56 = vmax.f32 %v1024_v51, 0.0  ;;  %v868_v57 = vadd.f32 %v1688_v52, %v2233_v34  ;;  %v1801_v58 = vpop.f32.mrf.mxu1 }
  0xfb   : > { %v1690_v59 = vpop.f32.mrf.mxu0 }
  0xfc   : > { %v1572_v60 = vpack.c.bf16 %v1148_v56, %v1147_v55  ;;  %v1691_v62 = vadd.f32 %v1690_v59, %v1689_v54  ;;  %v1802_v63 = vpop.f32.mrf.mxu1  ;;  %v1029_v1 = vadd.f32 %v1800_v61, %v868_v57 }
  0xfd   : > { %v1692_v0 = vpop.f32.mrf.mxu0  ;;  %v1803_v3 = vadd.f32 %v1802_v63, %v1801_v58 }
  0xfe   : > { %1573 = vst [vmem:[%s2242_s10] sm:$0xff] %v1572_v60   ;;  %v871_v2 = vadd.f32 %v1691_v62, %v2233_v34  ;;  %v1804_v4 = vpop.f32.mrf.mxu1  ;;  %v1149_v10 = vmax.f32 %v1029_v1, 0.0 }
  0xff   : > { %v1693_v5 = vpop.f32.mrf.mxu0 }
 0x100   : > { %v1032_v6 = vadd.f32 %v1803_v3, %v871_v2  ;;  %v1694_v7 = vadd.f32 %v1693_v5, %v1692_v0  ;;  %v1805_v8 = vpop.f32.mrf.mxu1 }
 0x101   : > { %v1695_v9 = vpop.f32.mrf.mxu0  ;;  %v1806_v16 = vadd.f32 %v1805_v8, %v1804_v4 }
 0x102   : > { %v1150_v11 = vmax.f32 %v1032_v6, 0.0  ;;  %v876_v12 = vadd.f32 %v1694_v7, %v2233_v34  ;;  %v1807_v13 = vpop.f32.mrf.mxu1 }
 0x103   : > { %v1696_v14 = vpop.f32.mrf.mxu0 }
 0x104   : > { %v1577_v15 = vpack.c.bf16 %v1150_v11, %v1149_v10  ;;  %v1697_v17 = vadd.f32 %v1696_v14, %v1695_v9  ;;  %v1808_v18 = vpop.f32.mrf.mxu1  ;;  %v1037_v20 = vadd.f32 %v1806_v16, %v876_v12 }
 0x105   : > { %v1698_v19 = vpop.f32.mrf.mxu0  ;;  %v1809_v22 = vadd.f32 %v1808_v18, %v1807_v13 }
 0x106   : > { %1649 = vst [vmem:[%s2242_s10 + $0x8] sm:$0xff] %v1577_v15   ;;  %v879_v21 = vadd.f32 %v1697_v17, %v2233_v34  ;;  %v1810_v23 = vpop.f32.mrf.mxu1  ;;  %v1151_v29 = vmax.f32 %v1037_v20, 0.0 }
 0x107   : > { %v1699_v24 = vpop.f32.mrf.mxu0 }
 0x108   : > { %v1040_v25 = vadd.f32 %v1809_v22, %v879_v21  ;;  %v1700_v26 = vadd.f32 %v1699_v24, %v1698_v19  ;;  %v1811_v27 = vpop.f32.mrf.mxu1 }
 0x109   : > { %v1701_v28 = vpop.f32.mrf.mxu0  ;;  %v1812_v36 = vadd.f32 %v1811_v27, %v1810_v23 }
 0x10a   : > { %v1152_v30 = vmax.f32 %v1040_v25, 0.0  ;;  %v884_v31 = vadd.f32 %v1700_v26, %v2233_v34  ;;  %v1813_v32 = vpop.f32.mrf.mxu1 }
 0x10b   : > { %v1702_v33 = vpop.f32.mrf.mxu0 }
 0x10c   : > { %v1582_v35 = vpack.c.bf16 %v1152_v30, %v1151_v29  ;;  %v1703_v37 = vadd.f32 %v1702_v33, %v1701_v28  ;;  %v1814_v38 = vpop.f32.mrf.mxu1  ;;  %v1045_v40 = vadd.f32 %v1812_v36, %v884_v31 }
 0x10d   : > { %v1704_v39 = vpop.f32.mrf.mxu0  ;;  %v1815_v42 = vadd.f32 %v1814_v38, %v1813_v32 }
 0x10e   : > { %1650 = vst [vmem:[%s2242_s10 + $0x10] sm:$0xff] %v1582_v35   ;;  %v887_v41 = vadd.f32 %v1703_v37, %v2233_v34  ;;  %v1816_v43 = vpop.f32.mrf.mxu1  ;;  %v1153_v49 = vmax.f32 %v1045_v40, 0.0 }
 0x10f   : > { %v1705_v44 = vpop.f32.mrf.mxu0 }
 0x110   : > { %v1048_v45 = vadd.f32 %v1815_v42, %v887_v41  ;;  %v1706_v46 = vadd.f32 %v1705_v44, %v1704_v39  ;;  %v1817_v47 = vpop.f32.mrf.mxu1 }
 0x111   : > { %v1707_v48 = vpop.f32.mrf.mxu0  ;;  %v1818_v55 = vadd.f32 %v1817_v47, %v1816_v43 }
 0x112   : > { %v1154_v50 = vmax.f32 %v1048_v45, 0.0  ;;  %v892_v51 = vadd.f32 %v1706_v46, %v2233_v34  ;;  %v1819_v52 = vpop.f32.mrf.mxu1 }
 0x113   : > { %v1708_v53 = vpop.f32.mrf.mxu0 }
 0x114   : > { %v1587_v54 = vpack.c.bf16 %v1154_v50, %v1153_v49  ;;  %v1709_v56 = vadd.f32 %v1708_v53, %v1707_v48  ;;  %v1820_v57 = vpop.f32.mrf.mxu1  ;;  %v1053_v59 = vadd.f32 %v1818_v55, %v892_v51 }
 0x115   : > { %v1710_v58 = vpop.f32.mrf.mxu0  ;;  %v1821_v61 = vadd.f32 %v1820_v57, %v1819_v52 }
 0x116   : > { %1651 = vst [vmem:[%s2242_s10 + $0x18] sm:$0xff] %v1587_v54   ;;  %v895_v60 = vadd.f32 %v1709_v56, %v2233_v34  ;;  %v1822_v62 = vpop.f32.mrf.mxu1  ;;  %v1155_v4 = vmax.f32 %v1053_v59, 0.0 }
 0x117   : > { %v1711_v63 = vpop.f32.mrf.mxu0 }
 0x118   : > { %v1056_v0 = vadd.f32 %v1821_v61, %v895_v60  ;;  %v1712_v1 = vadd.f32 %v1711_v63, %v1710_v58  ;;  %v1823_v2 = vpop.f32.mrf.mxu1 }
 0x119   : > { %v1713_v3 = vpop.f32.mrf.mxu0  ;;  %v1824_v10 = vadd.f32 %v1823_v2, %v1822_v62 }
 0x11a   : > { %v1156_v5 = vmax.f32 %v1056_v0, 0.0  ;;  %v900_v6 = vadd.f32 %v1712_v1, %v2233_v34  ;;  %v1825_v7 = vpop.f32.mrf.mxu1 }
 0x11b   : > { %v1714_v8 = vpop.f32.mrf.mxu0 }
 0x11c   : > { %v1592_v9 = vpack.c.bf16 %v1156_v5, %v1155_v4  ;;  %v1715_v11 = vadd.f32 %v1714_v8, %v1713_v3  ;;  %v1826_v12 = vpop.f32.mrf.mxu1  ;;  %v1061_v14 = vadd.f32 %v1824_v10, %v900_v6 }
 0x11d   : > { %v1716_v13 = vpop.f32.mrf.mxu0  ;;  %v1827_v16 = vadd.f32 %v1826_v12, %v1825_v7 }
 0x11e   : > { %1652 = vst [vmem:[%s2242_s10 + $0x20] sm:$0xff] %v1592_v9   ;;  %v903_v15 = vadd.f32 %v1715_v11, %v2233_v34  ;;  %v1828_v17 = vpop.f32.mrf.mxu1  ;;  %v1157_v23 = vmax.f32 %v1061_v14, 0.0 }
 0x11f   : > { %v1717_v18 = vpop.f32.mrf.mxu0 }
 0x120   : > { %v1064_v19 = vadd.f32 %v1827_v16, %v903_v15  ;;  %v1718_v20 = vadd.f32 %v1717_v18, %v1716_v13  ;;  %v1829_v21 = vpop.f32.mrf.mxu1 }
 0x121   : > { %v1719_v22 = vpop.f32.mrf.mxu0  ;;  %v1830_v29 = vadd.f32 %v1829_v21, %v1828_v17 }
 0x122   : > { %v1158_v24 = vmax.f32 %v1064_v19, 0.0  ;;  %v908_v25 = vadd.f32 %v1718_v20, %v2233_v34  ;;  %v1831_v26 = vpop.f32.mrf.mxu1 }
 0x123   : > { %v1720_v27 = vpop.f32.mrf.mxu0 }
 0x124   : > { %v1597_v28 = vpack.c.bf16 %v1158_v24, %v1157_v23  ;;  %v1721_v30 = vadd.f32 %v1720_v27, %v1719_v22  ;;  %v1832_v31 = vpop.f32.mrf.mxu1  ;;  %v1069_v33 = vadd.f32 %v1830_v29, %v908_v25 }
 0x125   : > { %v1722_v32 = vpop.f32.mrf.mxu0  ;;  %v1833_v36 = vadd.f32 %v1832_v31, %v1831_v26 }
 0x126   : > { %1653 = vst [vmem:[%s2242_s10 + $0x28] sm:$0xff] %v1597_v28   ;;  %v911_v35 = vadd.f32 %v1721_v30, %v2233_v34  ;;  %v1834_v37 = vpop.f32.mrf.mxu1  ;;  %v1159_v43 = vmax.f32 %v1069_v33, 0.0 }
 0x127   : > { %v1723_v38 = vpop.f32.mrf.mxu0 }
 0x128   : > { %v1072_v39 = vadd.f32 %v1833_v36, %v911_v35  ;;  %v1724_v40 = vadd.f32 %v1723_v38, %v1722_v32  ;;  %v1835_v41 = vpop.f32.mrf.mxu1 }
 0x129   : > { %v1725_v42 = vpop.f32.mrf.mxu0  ;;  %v1836_v49 = vadd.f32 %v1835_v41, %v1834_v37 }
 0x12a   : > { %v1160_v44 = vmax.f32 %v1072_v39, 0.0  ;;  %v916_v45 = vadd.f32 %v1724_v40, %v2233_v34  ;;  %v1837_v46 = vpop.f32.mrf.mxu1 }
 0x12b   : > { %v1726_v47 = vpop.f32.mrf.mxu0 }
 0x12c   : > { %v1602_v48 = vpack.c.bf16 %v1160_v44, %v1159_v43  ;;  %v1727_v50 = vadd.f32 %v1726_v47, %v1725_v42  ;;  %v1838_v51 = vpop.f32.mrf.mxu1  ;;  %v1077_v53 = vadd.f32 %v1836_v49, %v916_v45 }
 0x12d   : > { %v1728_v52 = vpop.f32.mrf.mxu0  ;;  %v1839_v55 = vadd.f32 %v1838_v51, %v1837_v46 }
 0x12e   : > { %1654 = vst [vmem:[%s2242_s10 + $0x30] sm:$0xff] %v1602_v48   ;;  %v919_v54 = vadd.f32 %v1727_v50, %v2233_v34  ;;  %v1840_v56 = vpop.f32.mrf.mxu1  ;;  %v1161_v62 = vmax.f32 %v1077_v53, 0.0 }
 0x12f   : > { %v1729_v57 = vpop.f32.mrf.mxu0 }
 0x130   : > { %v1080_v58 = vadd.f32 %v1839_v55, %v919_v54  ;;  %v1730_v59 = vadd.f32 %v1729_v57, %v1728_v52  ;;  %v1841_v60 = vpop.f32.mrf.mxu1 }
 0x131   : > { %v1731_v61 = vpop.f32.mrf.mxu0  ;;  %v1842_v4 = vadd.f32 %v1841_v60, %v1840_v56 }
 0x132   : > { %v1162_v63 = vmax.f32 %v1080_v58, 0.0  ;;  %v924_v0 = vadd.f32 %v1730_v59, %v2233_v34  ;;  %v1843_v1 = vpop.f32.mrf.mxu1 }
 0x133   : > { %v1732_v2 = vpop.f32.mrf.mxu0 }
 0x134   : > { %v1607_v3 = vpack.c.bf16 %v1162_v63, %v1161_v62  ;;  %v1733_v5 = vadd.f32 %v1732_v2, %v1731_v61  ;;  %v1844_v6 = vpop.f32.mrf.mxu1  ;;  %v1085_v8 = vadd.f32 %v1842_v4, %v924_v0 }
 0x135   : > { %v1734_v7 = vpop.f32.mrf.mxu0  ;;  %v1845_v10 = vadd.f32 %v1844_v6, %v1843_v1 }
 0x136   : > { %1655 = vst [vmem:[%s2242_s10 + $0x38] sm:$0xff] %v1607_v3   ;;  %v927_v9 = vadd.f32 %v1733_v5, %v2233_v34  ;;  %v1846_v11 = vpop.f32.mrf.mxu1  ;;  %v1163_v17 = vmax.f32 %v1085_v8, 0.0 }
 0x137   : > { %v1735_v12 = vpop.f32.mrf.mxu0 }
 0x138   : > { %v1088_v13 = vadd.f32 %v1845_v10, %v927_v9  ;;  %v1736_v14 = vadd.f32 %v1735_v12, %v1734_v7  ;;  %v1847_v15 = vpop.f32.mrf.mxu1 }
 0x139   : > { %v1737_v16 = vpop.f32.mrf.mxu0  ;;  %v1848_v23 = vadd.f32 %v1847_v15, %v1846_v11 }
 0x13a   : > { %v1164_v18 = vmax.f32 %v1088_v13, 0.0  ;;  %v932_v19 = vadd.f32 %v1736_v14, %v2233_v34  ;;  %v1849_v20 = vpop.f32.mrf.mxu1 }
 0x13b   : > { %v1738_v21 = vpop.f32.mrf.mxu0 }
 0x13c   : > { %v1612_v22 = vpack.c.bf16 %v1164_v18, %v1163_v17  ;;  %v1739_v24 = vadd.f32 %v1738_v21, %v1737_v16  ;;  %v1850_v25 = vpop.f32.mrf.mxu1  ;;  %v1093_v27 = vadd.f32 %v1848_v23, %v932_v19 }
 0x13d   : > { %v1740_v26 = vpop.f32.mrf.mxu0  ;;  %v1851_v29 = vadd.f32 %v1850_v25, %v1849_v20 }
 0x13e   : > { %1656 = vst [vmem:[%s2242_s10 + $0x40] sm:$0xff] %v1612_v22   ;;  %v935_v28 = vadd.f32 %v1739_v24, %v2233_v34  ;;  %v1852_v30 = vpop.f32.mrf.mxu1  ;;  %v1165_v37 = vmax.f32 %v1093_v27, 0.0 }
 0x13f   : > { %v1741_v31 = vpop.f32.mrf.mxu0 }
 0x140   : > { %v1096_v32 = vadd.f32 %v1851_v29, %v935_v28  ;;  %v1742_v33 = vadd.f32 %v1741_v31, %v1740_v26  ;;  %v1853_v35 = vpop.f32.mrf.mxu1 }
 0x141   : > { %v1743_v36 = vpop.f32.mrf.mxu0  ;;  %v1854_v43 = vadd.f32 %v1853_v35, %v1852_v30 }
 0x142   : > { %v1166_v38 = vmax.f32 %v1096_v32, 0.0  ;;  %v940_v39 = vadd.f32 %v1742_v33, %v2233_v34  ;;  %v1855_v40 = vpop.f32.mrf.mxu1 }
 0x143   : > { %v1744_v41 = vpop.f32.mrf.mxu0 }
 0x144   : > { %v1617_v42 = vpack.c.bf16 %v1166_v38, %v1165_v37  ;;  %v1745_v44 = vadd.f32 %v1744_v41, %v1743_v36  ;;  %v1856_v45 = vpop.f32.mrf.mxu1  ;;  %v1101_v47 = vadd.f32 %v1854_v43, %v940_v39 }
 0x145   : > { %v1746_v46 = vpop.f32.mrf.mxu0  ;;  %v1857_v49 = vadd.f32 %v1856_v45, %v1855_v40 }
 0x146   : > { %1657 = vst [vmem:[%s2242_s10 + $0x48] sm:$0xff] %v1617_v42   ;;  %v943_v48 = vadd.f32 %v1745_v44, %v2233_v34  ;;  %v1858_v50 = vpop.f32.mrf.mxu1  ;;  %v1167_v56 = vmax.f32 %v1101_v47, 0.0 }
 0x147   : > { %v1747_v51 = vpop.f32.mrf.mxu0 }
 0x148   : > { %v1104_v52 = vadd.f32 %v1857_v49, %v943_v48  ;;  %v1748_v53 = vadd.f32 %v1747_v51, %v1746_v46  ;;  %v1859_v54 = vpop.f32.mrf.mxu1 }
 0x149   : > { %v1749_v55 = vpop.f32.mrf.mxu0  ;;  %v1860_v62 = vadd.f32 %v1859_v54, %v1858_v50 }
 0x14a   : > { %v1168_v57 = vmax.f32 %v1104_v52, 0.0  ;;  %v948_v58 = vadd.f32 %v1748_v53, %v2233_v34  ;;  %v1861_v59 = vpop.f32.mrf.mxu1 }
 0x14b   : > { %v1750_v60 = vpop.f32.mrf.mxu0 }
 0x14c   : > { %v1622_v61 = vpack.c.bf16 %v1168_v57, %v1167_v56  ;;  %v1751_v63 = vadd.f32 %v1750_v60, %v1749_v55  ;;  %v1862_v0 = vpop.f32.mrf.mxu1  ;;  %v1109_v2 = vadd.f32 %v1860_v62, %v948_v58 }
 0x14d   : > { %v1752_v1 = vpop.f32.mrf.mxu0  ;;  %v1863_v4 = vadd.f32 %v1862_v0, %v1861_v59 }
 0x14e   : > { %1658 = vst [vmem:[%s2242_s10 + $0x50] sm:$0xff] %v1622_v61   ;;  %v951_v3 = vadd.f32 %v1751_v63, %v2233_v34  ;;  %v1864_v5 = vpop.f32.mrf.mxu1  ;;  %v1169_v11 = vmax.f32 %v1109_v2, 0.0 }
 0x14f   : > { %v1753_v6 = vpop.f32.mrf.mxu0 }
 0x150   : > { %v1112_v7 = vadd.f32 %v1863_v4, %v951_v3  ;;  %v1754_v8 = vadd.f32 %v1753_v6, %v1752_v1  ;;  %v1865_v9 = vpop.f32.mrf.mxu1 }
 0x151   : > { %v1755_v10 = vpop.f32.mrf.mxu0  ;;  %v1866_v17 = vadd.f32 %v1865_v9, %v1864_v5 }
 0x152   : > { %v1170_v12 = vmax.f32 %v1112_v7, 0.0  ;;  %v956_v13 = vadd.f32 %v1754_v8, %v2233_v34  ;;  %v1867_v14 = vpop.f32.mrf.mxu1 }
 0x153   : > { %v1756_v15 = vpop.f32.mrf.mxu0 }
 0x154   : > { %v1627_v16 = vpack.c.bf16 %v1170_v12, %v1169_v11  ;;  %v1757_v18 = vadd.f32 %v1756_v15, %v1755_v10  ;;  %v1868_v19 = vpop.f32.mrf.mxu1  ;;  %v1117_v21 = vadd.f32 %v1866_v17, %v956_v13 }
 0x155   : > { %v1758_v20 = vpop.f32.mrf.mxu0  ;;  %v1869_v23 = vadd.f32 %v1868_v19, %v1867_v14 }
 0x156   : > { %1659 = vst [vmem:[%s2242_s10 + $0x58] sm:$0xff] %v1627_v16   ;;  %v959_v22 = vadd.f32 %v1757_v18, %v2233_v34  ;;  %v1870_v24 = vpop.f32.mrf.mxu1  ;;  %v1171_v30 = vmax.f32 %v1117_v21, 0.0 }
 0x157   : > { %v1759_v25 = vpop.f32.mrf.mxu0 }
 0x158   : > { %v1120_v26 = vadd.f32 %v1869_v23, %v959_v22  ;;  %v1760_v27 = vadd.f32 %v1759_v25, %v1758_v20  ;;  %v1871_v28 = vpop.f32.mrf.mxu1 }
 0x159   : > { %v1761_v29 = vpop.f32.mrf.mxu0  ;;  %v1872_v37 = vadd.f32 %v1871_v28, %v1870_v24 }
 0x15a   : > { %v1172_v31 = vmax.f32 %v1120_v26, 0.0  ;;  %v964_v32 = vadd.f32 %v1760_v27, %v2233_v34  ;;  %v1873_v33 = vpop.f32.mrf.mxu1 }
 0x15b   : > { %v1762_v35 = vpop.f32.mrf.mxu0 }
 0x15c   : > { %v1632_v36 = vpack.c.bf16 %v1172_v31, %v1171_v30  ;;  %v1763_v38 = vadd.f32 %v1762_v35, %v1761_v29  ;;  %v1874_v39 = vpop.f32.mrf.mxu1  ;;  %v1125_v41 = vadd.f32 %v1872_v37, %v964_v32 }
 0x15d   : > { %v1764_v40 = vpop.f32.mrf.mxu0  ;;  %v1875_v43 = vadd.f32 %v1874_v39, %v1873_v33 }
 0x15e   : > { %1660 = vst [vmem:[%s2242_s10 + $0x60] sm:$0xff] %v1632_v36   ;;  %v967_v42 = vadd.f32 %v1763_v38, %v2233_v34  ;;  %v1876_v44 = vpop.f32.mrf.mxu1  ;;  %v1173_v50 = vmax.f32 %v1125_v41, 0.0 }
 0x15f   : > { %v1765_v45 = vpop.f32.mrf.mxu0 }
 0x160   : > { %v1128_v46 = vadd.f32 %v1875_v43, %v967_v42  ;;  %v1766_v47 = vadd.f32 %v1765_v45, %v1764_v40  ;;  %v1877_v48 = vpop.f32.mrf.mxu1 }
 0x161   : > { %v1767_v49 = vpop.f32.mrf.mxu0  ;;  %v1878_v56 = vadd.f32 %v1877_v48, %v1876_v44 }
 0x162   : > { %v1174_v51 = vmax.f32 %v1128_v46, 0.0  ;;  %v972_v52 = vadd.f32 %v1766_v47, %v2233_v34  ;;  %v1879_v53 = vpop.f32.mrf.mxu1 }
 0x163   : > { %v1768_v54 = vpop.f32.mrf.mxu0 }
 0x164   : > { %v1637_v55 = vpack.c.bf16 %v1174_v51, %v1173_v50  ;;  %v1769_v57 = vadd.f32 %v1768_v54, %v1767_v49  ;;  %v1880_v58 = vpop.f32.mrf.mxu1  ;;  %v1133_v60 = vadd.f32 %v1878_v56, %v972_v52 }
 0x165   : > { %v1770_v59 = vpop.f32.mrf.mxu0  ;;  %v1881_v62 = vadd.f32 %v1880_v58, %v1879_v53 }
 0x166   : > { %1661 = vst [vmem:[%s2242_s10 + $0x68] sm:$0xff] %v1637_v55   ;;  %v975_v61 = vadd.f32 %v1769_v57, %v2233_v34  ;;  %v1882_v63 = vpop.f32.mrf.mxu1  ;;  %v1175_v5 = vmax.f32 %v1133_v60, 0.0 }
 0x167   : > { %v1771_v0 = vpop.f32.mrf.mxu0 }
 0x168   : > { %v1136_v1 = vadd.f32 %v1881_v62, %v975_v61  ;;  %v1772_v2 = vadd.f32 %v1771_v0, %v1770_v59  ;;  %v1883_v3 = vpop.f32.mrf.mxu1 }
 0x169   : > { %v1773_v4 = vpop.f32.mrf.mxu0  ;;  %v1884_v11 = vadd.f32 %v1883_v3, %v1882_v63 }
 0x16a   : > { %v1176_v6 = vmax.f32 %v1136_v1, 0.0  ;;  %v980_v7 = vadd.f32 %v1772_v2, %v2233_v34  ;;  %v1885_v8 = vpop.f32.mrf.mxu1 }
 0x16b   : > { %v1774_v9 = vpop.f32.mrf.mxu0 }
 0x16c   : > { %v1642_v10 = vpack.c.bf16 %v1176_v6, %v1175_v5  ;;  %v1775_v12 = vadd.f32 %v1774_v9, %v1773_v4  ;;  %v1886_v13 = vpop.f32.mrf.mxu1  ;;  %v1141_v14 = vadd.f32 %v1884_v11, %v980_v7 }
 0x16d   : > { %v1887_v16 = vadd.f32 %v1886_v13, %v1885_v8 }
 0x16e   : > { %1662 = vst [vmem:[%s2242_s10 + $0x70] sm:$0xff] %v1642_v10   ;;  %v983_v15 = vadd.f32 %v1775_v12, %v2233_v34  ;;  %v1177_v18 = vmax.f32 %v1141_v14, 0.0 }
 0x170   : > { %v1144_v17 = vadd.f32 %v1887_v16, %v983_v15 }
 0x172   : > { %v1178_v19 = vmax.f32 %v1144_v17, 0.0 }
 0x174   : > { %v1647_v20 = vpack.c.bf16 %v1178_v19, %v1177_v18 }
 0x176   : > { %1663 = vst [vmem:[%s2242_s10 + $0x78] sm:$0xff] %v1647_v20  }
 0x177 PF: > { %s13_s12 = sadd.s32 1, %s2030_s12  }
 0x178   : > { %p10_p4 = scmp.ge.s32.totalorder %s13_s12, 4  }
 0x17a   :  { %12 = sbr.rel (!%p10_p4) target bundleno = 1 (0x1), region = 62 }

// kernel: cae_forward.11
= control target key start
LH: loop header
LB: loop body
LE: loop exit
PB: predicated region body
PF: predicated region fallthrough
CT: control target
= control target key end

     0   :  { %s1044_s12 = smov 0   ;;  %s1200_s0 = inlined_call_operand.vmem [shape: bf16[128,512], index: 0, kind: input, shape index: {}]   ;;  %s1201_s1 = inlined_call_operand.vmem [shape: bf16[512,128], index: 1, kind: input, shape index: {}]   ;;  %s1202_s2 = inlined_call_operand.vmem [shape: f32[1,128], index: 2, kind: input, shape index: {}]   ;;  %s1203_s3 = inlined_call_operand.vmem [shape: bf16[128,128], index: 3, kind: output, shape index: {}]  }
   0x1 LB: > { %s771_s13 = sadd.s32 4294967295, %s1022_s12   ;;  %p775_p0 = scmp.ge.s32.totalorder %s1022_s12, 1  ;;  %s1022_s12 = sphi %s1044_s12, %s13_s12  }
   0x2   : > { %p139_p1 = scmp.lt.s32.totalorder %s1022_s12, 3 }
   0x4   : > { %p140_p2 = pnand %p775_p0, %p139_p1 }
   0x5   : > { %s776_s21 = sshll.u32 (!%p140_p2), %s771_s13, 3 }
   0x6   : > { %143 = sbr.rel (%p140_p2) target bundleno = 279 (0x117), region = 32  ;;  %p165_p3 = scmp.lt.s32.totalorder (!%p140_p2), %s776_s21, 15 }
   0xb   : > { %v960_v0 = vld [vmem:[%s1201_s1 + $0x78] sm:$0xff]   ;;  %v964_v4 = vld [vmem:[%s1201_s1 + $0x70] sm:$0xff]   ;;  %v968_v8 = vld [vmem:[%s1201_s1 + $0x68] sm:$0xff]   ;;  %s1205_s21 = smov (!%p165_p3, %s776_s21), 15 }
   0xc   : > { %v961_v1 = vld [vmem:[%s1201_s1 + $0xf8] sm:$0xff]   ;;  %872 = vmatprep.subr.bf16.mxu0 %v960_v0  ;;  %v965_v5 = vld [vmem:[%s1201_s1 + $0xf0] sm:$0xff]   ;;  %v969_v9 = vld [vmem:[%s1201_s1 + $0xe8] sm:$0xff]   ;;  %s840_s18 = sshll.u32 %s1205_s21, 4  ;;  %s780_s7 = sshll.u32 %s1205_s21, 2 }
   0xd   : > { %v962_v2 = vld [vmem:[%s1201_s1 + $0x38] sm:$0xff]   ;;  %912 = vmatprep.subr.bf16.mxu1 %v961_v1  ;;  %v966_v6 = vld [vmem:[%s1201_s1 + $0x30] sm:$0xff]   ;;  %v970_v10 = vld [vmem:[%s1201_s1 + $0x28] sm:$0xff]   ;;  %s1150_s28 = scalar_lea.vmem %s1200_s0, %s840_s18  ;;  %s1186_s10 = scalar_lea.vmem %s1203_s3, %s780_s7 }
   0xe   : > { %v963_v3 = vld [vmem:[%s1201_s1 + $0xb8] sm:$0xff]   ;;  %873 = vmatpush3.bf16.msra.mxu0 %v962_v2  ;;  %v967_v7 = vld [vmem:[%s1201_s1 + $0xb0] sm:$0xff]   ;;  %v971_v11 = vld [vmem:[%s1201_s1 + $0xa8] sm:$0xff]  }
   0xf   : > { %913 = vmatpush3.bf16.msra.mxu1 %v963_v3  ;;  %874 = vmatprep.subr.bf16.mxu0 %v964_v4  ;;  %v972_v12 = vld [vmem:[%s1201_s1 + $0x60] sm:$0xff]   ;;  %v976_v16 = vld [vmem:[%s1201_s1 + $0x58] sm:$0xff]   ;;  %v980_v20 = vld [vmem:[%s1201_s1 + $0x50] sm:$0xff]  }
  0x10   : > { %914 = vmatprep.subr.bf16.mxu1 %v965_v5  ;;  %v973_v13 = vld [vmem:[%s1201_s1 + $0xe0] sm:$0xff]   ;;  %v977_v17 = vld [vmem:[%s1201_s1 + $0xd8] sm:$0xff]   ;;  %v981_v21 = vld [vmem:[%s1201_s1 + $0xd0] sm:$0xff]  }
  0x11   : > { %v974_v14 = vld [vmem:[%s1201_s1 + $0x20] sm:$0xff]   ;;  %v978_v18 = vld [vmem:[%s1201_s1 + $0x18] sm:$0xff]   ;;  %v982_v22 = vld [vmem:[%s1201_s1 + $0x10] sm:$0xff]  }
  0x12   : > { %875 = vmatpush3.bf16.msra.mxu0 %v966_v6  ;;  %v975_v15 = vld [vmem:[%s1201_s1 + $0xa0] sm:$0xff]   ;;  %v979_v19 = vld [vmem:[%s1201_s1 + $0x98] sm:$0xff]   ;;  %v983_v23 = vld [vmem:[%s1201_s1 + $0x90] sm:$0xff]  }
  0x13   : > { %915 = vmatpush3.bf16.msra.mxu1 %v967_v7  ;;  %876 = vmatprep.subr.bf16.mxu0 %v968_v8  ;;  %v984_v24 = vld [vmem:[%s1201_s1 + $0x48] sm:$0xff]   ;;  %v988_v28 = vld [vmem:[%s1201_s1 + $0x40] sm:$0xff]  }
  0x14   : > { %916 = vmatprep.subr.bf16.mxu1 %v969_v9  ;;  %v985_v25 = vld [vmem:[%s1201_s1 + $0xc8] sm:$0xff]   ;;  %v989_v29 = vld [vmem:[%s1201_s1 + $0xc0] sm:$0xff]  }
  0x15   : > { %v986_v26 = vld [vmem:[%s1201_s1 + $0x8] sm:$0xff]   ;;  %v990_v30 = vld [vmem:[%s1201_s1] sm:$0xff]  }
  0x16   : > { %877 = vmatpush3.bf16.msra.mxu0 %v970_v10  ;;  %v987_v27 = vld [vmem:[%s1201_s1 + $0x88] sm:$0xff]   ;;  %v991_v31 = vld [vmem:[%s1201_s1 + $0x80] sm:$0xff]  }
  0x17   : > { %917 = vmatpush3.bf16.msra.mxu1 %v971_v11  ;;  %878 = vmatprep.subr.bf16.mxu0 %v972_v12  ;;  %v992_v32 = vld [vmem:[%s1150_s28] ss:$16 sps:$4 sm:$0xff]   ;;  %v994_v33 = vld [vmem:[%s1150_s28 + $0x4] ss:$16 sps:$4 sm:$0xff]   ;;  %v995_v34 = vld [vmem:[%s1150_s28 + $0x8] ss:$16 sps:$4 sm:$0xff]  }
  0x18   : > { %918 = vmatprep.subr.bf16.mxu1 %v973_v13  ;;  %v997_v35 = vld [vmem:[%s1150_s28 + $0xc] ss:$16 sps:$4 sm:$0xff]   ;;  %569 = vmatprep.mubr.bf16.mxu0 %v994_v33  ;;  %v998_v36 = vld [vmem:[%s1150_s28 + $0x24] ss:$16 sps:$4 sm:$0xff]   ;;  %v1002_v38 = vld [vmem:[%s1150_s28 + $0x20] ss:$16 sps:$4 sm:$0xff]  }
  0x19   : > { %634 = vmatprep.mubr.bf16.mxu1 %v997_v35  ;;  %v1000_v37 = vld [vmem:[%s1150_s28 + $0x2c] ss:$16 sps:$4 sm:$0xff]   ;;  %v1003_v39 = vld [vmem:[%s1150_s28 + $0x28] ss:$16 sps:$4 sm:$0xff]   ;;  %v1004_v40 = vld [vmem:[%s1150_s28 + $0x44] ss:$16 sps:$4 sm:$0xff]  }
  0x1a   : > { %879 = vmatpush3.bf16.msra.mxu0 %v974_v14  ;;  %v1006_v41 = vld [vmem:[%s1150_s28 + $0x4c] ss:$16 sps:$4 sm:$0xff]   ;;  %v1008_v42 = vld [vmem:[%s1150_s28 + $0x40] ss:$16 sps:$4 sm:$0xff]   ;;  %v1009_v43 = vld [vmem:[%s1150_s28 + $0x48] ss:$16 sps:$4 sm:$0xff]  }
  0x1b   : > { %919 = vmatpush3.bf16.msra.mxu1 %v975_v15  ;;  %880 = vmatprep.subr.bf16.mxu0 %v976_v16  ;;  %v1010_v44 = vld [vmem:[%s1150_s28 + $0x64] ss:$16 sps:$4 sm:$0xff]   ;;  %v1012_v45 = vld [vmem:[%s1150_s28 + $0x6c] ss:$16 sps:$4 sm:$0xff]   ;;  %v1014_v46 = vld [vmem:[%s1150_s28 + $0x60] ss:$16 sps:$4 sm:$0xff]  }
  0x1c   : > { %920 = vmatprep.subr.bf16.mxu1 %v977_v17  ;;  %v1015_v47 = vld [vmem:[%s1150_s28 + $0x68] ss:$16 sps:$4 sm:$0xff]   ;;  %v1177_v50 = vld [vmem:[%s1202_s2] ss:$0 sm:$0xff] }
  0x1e   : > { %881 = vmatpush3.bf16.msra.mxu0 %v978_v18 }
  0x1f   : > { %921 = vmatpush3.bf16.msra.mxu1 %v979_v19  ;;  %882 = vmatprep.subr.bf16.mxu0 %v980_v20 }
  0x20   : > { %922 = vmatprep.subr.bf16.mxu1 %v981_v21 }
  0x22   : > { %883 = vmatpush3.bf16.msra.mxu0 %v982_v22 }
  0x23   : > { %923 = vmatpush3.bf16.msra.mxu1 %v983_v23  ;;  %884 = vmatprep.subr.bf16.mxu0 %v984_v24 }
  0x24   : > { %924 = vmatprep.subr.bf16.mxu1 %v985_v25 }
  0x26   : > { %885 = vmatpush3.bf16.msra.mxu0 %v986_v26 }
  0x27   : > { %925 = vmatpush3.bf16.msra.mxu1 %v987_v27  ;;  %886 = vmatprep.subr.bf16.mxu0 %v988_v28 }
  0x28   : > { %926 = vmatprep.subr.bf16.mxu1 %v989_v29 }
  0x2a   : > { %887 = vmatpush3.bf16.msra.mxu0 %v990_v30 }
  0x2b   : > { %927 = vmatpush3.bf16.msra.mxu1 %v991_v31 }
  0x2d   : > { %570 = vmatmul.mubr.bf16.vlgmr.msra.gmra.mxu0 %v992_v32 }
  0x2e   : > { %635 = vmatmul.mubr.bf16.vlgmr.msra.gmra.mxu1 %v995_v34  ;;  %577 = vmatprep.mubr.bf16.mxu0 %v998_v36 }
  0x2f   : > { %642 = vmatprep.mubr.bf16.mxu1 %v1000_v37 }
  0x35   : > { %578 = vmatmul.mubr.bf16.gmra.mxu0 %v1002_v38 }
  0x36   : > { %643 = vmatmul.mubr.bf16.gmra.mxu1 %v1003_v39  ;;  %585 = vmatprep.mubr.bf16.mxu0 %v1004_v40 }
  0x37   : > { %650 = vmatprep.mubr.bf16.mxu1 %v1006_v41 }
  0x3d   : > { %586 = vmatmul.mubr.bf16.gmra.mxu0 %v1008_v42 }
  0x3e   : > { %651 = vmatmul.mubr.bf16.gmra.mxu1 %v1009_v43  ;;  %593 = vmatprep.mubr.bf16.mxu0 %v1010_v44 }
  0x3f   : > { %658 = vmatprep.mubr.bf16.mxu1 %v1012_v45 }
  0x45   : > { %594 = vmatmul.mubr.bf16.gmra.mxu0 %v1014_v46 }
  0x46   : > { %659 = vmatmul.mubr.bf16.gmra.mxu1 %v1015_v47 }
  0xed   : > { %v888_v48 = vpop.f32.mrf.mxu0 }
  0xee   : > { %v928_v49 = vpop.f32.mrf.mxu1 }
  0xef   : > { %v889_v51 = vpop.f32.mrf.mxu0 }
  0xf0   : > { %v890_v52 = vadd.f32 %v889_v51, %v888_v48  ;;  %v929_v53 = vpop.f32.mrf.mxu1 }
  0xf1   : > { %v891_v54 = vpop.f32.mrf.mxu0  ;;  %v930_v58 = vadd.f32 %v929_v53, %v928_v49 }
  0xf2   : > { %v572_v55 = vadd.f32 %v890_v52, %v1177_v50  ;;  %v931_v56 = vpop.f32.mrf.mxu1 }
  0xf3   : > { %v892_v57 = vpop.f32.mrf.mxu0 }
  0xf4   : > { %v893_v59 = vadd.f32 %v892_v57, %v891_v54  ;;  %v932_v60 = vpop.f32.mrf.mxu1  ;;  %v637_v62 = vadd.f32 %v930_v58, %v572_v55 }
  0xf5   : > { %v894_v61 = vpop.f32.mrf.mxu0  ;;  %v933_v0 = vadd.f32 %v932_v60, %v931_v56 }
  0xf6   : > { %v575_v63 = vadd.f32 %v893_v59, %v1177_v50  ;;  %v934_v1 = vpop.f32.mrf.mxu1  ;;  %v667_v7 = vmax.f32 %v637_v62, 0.0 }
  0xf7   : > { %v895_v2 = vpop.f32.mrf.mxu0 }
  0xf8   : > { %v640_v3 = vadd.f32 %v933_v0, %v575_v63  ;;  %v896_v4 = vadd.f32 %v895_v2, %v894_v61  ;;  %v935_v5 = vpop.f32.mrf.mxu1 }
  0xf9   : > { %v897_v6 = vpop.f32.mrf.mxu0  ;;  %v936_v13 = vadd.f32 %v935_v5, %v934_v1 }
  0xfa   : > { %v668_v8 = vmax.f32 %v640_v3, 0.0  ;;  %v580_v9 = vadd.f32 %v896_v4, %v1177_v50  ;;  %v937_v10 = vpop.f32.mrf.mxu1 }
  0xfb   : > { %v898_v11 = vpop.f32.mrf.mxu0 }
  0xfc   : > { %v852_v12 = vpack.c.bf16 %v668_v8, %v667_v7  ;;  %v899_v14 = vadd.f32 %v898_v11, %v897_v6  ;;  %v938_v15 = vpop.f32.mrf.mxu1  ;;  %v645_v17 = vadd.f32 %v936_v13, %v580_v9 }
  0xfd   : > { %v900_v16 = vpop.f32.mrf.mxu0  ;;  %v939_v19 = vadd.f32 %v938_v15, %v937_v10 }
  0xfe   : > { %853 = vst [vmem:[%s1186_s10] sm:$0xff] %v852_v12   ;;  %v583_v18 = vadd.f32 %v899_v14, %v1177_v50  ;;  %v940_v20 = vpop.f32.mrf.mxu1  ;;  %v669_v26 = vmax.f32 %v645_v17, 0.0 }
  0xff   : > { %v901_v21 = vpop.f32.mrf.mxu0 }
 0x100   : > { %v648_v22 = vadd.f32 %v939_v19, %v583_v18  ;;  %v902_v23 = vadd.f32 %v901_v21, %v900_v16  ;;  %v941_v24 = vpop.f32.mrf.mxu1 }
 0x101   : > { %v903_v25 = vpop.f32.mrf.mxu0  ;;  %v942_v32 = vadd.f32 %v941_v24, %v940_v20 }
 0x102   : > { %v670_v27 = vmax.f32 %v648_v22, 0.0  ;;  %v588_v28 = vadd.f32 %v902_v23, %v1177_v50  ;;  %v943_v29 = vpop.f32.mrf.mxu1 }
 0x103   : > { %v904_v30 = vpop.f32.mrf.mxu0 }
 0x104   : > { %v857_v31 = vpack.c.bf16 %v670_v27, %v669_v26  ;;  %v905_v33 = vadd.f32 %v904_v30, %v903_v25  ;;  %v944_v34 = vpop.f32.mrf.mxu1  ;;  %v653_v36 = vadd.f32 %v942_v32, %v588_v28 }
 0x105   : > { %v906_v35 = vpop.f32.mrf.mxu0  ;;  %v945_v38 = vadd.f32 %v944_v34, %v943_v29 }
 0x106   : > { %869 = vst [vmem:[%s1186_s10 + $0x8] sm:$0xff] %v857_v31   ;;  %v591_v37 = vadd.f32 %v905_v33, %v1177_v50  ;;  %v946_v39 = vpop.f32.mrf.mxu1  ;;  %v671_v45 = vmax.f32 %v653_v36, 0.0 }
 0x107   : > { %v907_v40 = vpop.f32.mrf.mxu0 }
 0x108   : > { %v656_v41 = vadd.f32 %v945_v38, %v591_v37  ;;  %v908_v42 = vadd.f32 %v907_v40, %v906_v35  ;;  %v947_v43 = vpop.f32.mrf.mxu1 }
 0x109   : > { %v909_v44 = vpop.f32.mrf.mxu0  ;;  %v948_v52 = vadd.f32 %v947_v43, %v946_v39 }
 0x10a   : > { %v672_v46 = vmax.f32 %v656_v41, 0.0  ;;  %v596_v47 = vadd.f32 %v908_v42, %v1177_v50  ;;  %v949_v48 = vpop.f32.mrf.mxu1 }
 0x10b   : > { %v910_v49 = vpop.f32.mrf.mxu0 }
 0x10c   : > { %v862_v51 = vpack.c.bf16 %v672_v46, %v671_v45  ;;  %v911_v53 = vadd.f32 %v910_v49, %v909_v44  ;;  %v950_v54 = vpop.f32.mrf.mxu1  ;;  %v661_v55 = vadd.f32 %v948_v52, %v596_v47 }
 0x10d   : > { %v951_v57 = vadd.f32 %v950_v54, %v949_v48 }
 0x10e   : > { %870 = vst [vmem:[%s1186_s10 + $0x10] sm:$0xff] %v862_v51   ;;  %v599_v56 = vadd.f32 %v911_v53, %v1177_v50  ;;  %v673_v59 = vmax.f32 %v661_v55, 0.0 }
 0x110   : > { %v664_v58 = vadd.f32 %v951_v57, %v599_v56 }
 0x112   : > { %v674_v60 = vmax.f32 %v664_v58, 0.0 }
 0x114   : > { %v867_v61 = vpack.c.bf16 %v674_v60, %v673_v59 }
 0x116   : > { %871 = vst [vmem:[%s1186_s10 + $0x18] sm:$0xff] %v867_v61  }
 0x117 PF: > { %s13_s12 = sadd.s32 1, %s1022_s12  }
 0x118   : > { %p10_p4 = scmp.ge.s32.totalorder %s13_s12, 4  }
 0x11a   :  { %12 = sbr.rel (!%p10_p4) target bundleno = 1 (0x1), region = 62 }

// kernel: cae_forward.12
= control target key start
LH: loop header
LB: loop body
LE: loop exit
PB: predicated region body
PF: predicated region fallthrough
CT: control target
= control target key end

     0   :  { %s1260_s12 = smov 0   ;;  %s1488_s0 = inlined_call_operand.vmem [shape: bf16[32,1024], index: 0, kind: input, shape index: {}]   ;;  %s1489_s1 = inlined_call_operand.vmem [shape: bf16[1024,128], index: 1, kind: input, shape index: {}]   ;;  %s1490_s2 = inlined_call_operand.vmem [shape: f32[1,128], index: 2, kind: input, shape index: {}]   ;;  %s1491_s3 = inlined_call_operand.vmem [shape: bf16[32,128], index: 3, kind: output, shape index: {}]  }
   0x1 LB: > { %s977_s13 = sadd.s32 4294967295, %s1238_s12   ;;  %p981_p0 = scmp.ge.s32.totalorder %s1238_s12, 1  ;;  %s1238_s12 = sphi %s1260_s12, %s13_s12  }
   0x2   : > { %p139_p1 = scmp.lt.s32.totalorder %s1238_s12, 3 }
   0x4   : > { %p140_p2 = pnand %p981_p0, %p139_p1 }
   0x5   : > { %s982_s21 = sshll.u32 (!%p140_p2), %s977_s13, 1 }
   0x6   : > { %143 = sbr.rel (%p140_p2) target bundleno = 287 (0x11f), region = 32  ;;  %p165_p3 = scmp.lt.s32.totalorder (!%p140_p2), %s982_s21, 3 }
   0xb   : > { %v1168_v0 = vld [vmem:[%s1489_s1 + $0x78] sm:$0xff]   ;;  %v1172_v4 = vld [vmem:[%s1489_s1 + $0x70] sm:$0xff]   ;;  %v1176_v8 = vld [vmem:[%s1489_s1 + $0x68] sm:$0xff]   ;;  %s1493_s21 = smov (!%p165_p3, %s982_s21), 3 }
   0xc   : > { %v1169_v1 = vld [vmem:[%s1489_s1 + $0xf8] sm:$0xff]   ;;  %1072 = vmatprep.subr.bf16.mxu0 %v1168_v0  ;;  %v1173_v5 = vld [vmem:[%s1489_s1 + $0xf0] sm:$0xff]   ;;  %v1177_v9 = vld [vmem:[%s1489_s1 + $0xe8] sm:$0xff]   ;;  %s1064_s18 = sshll.u32 %s1493_s21, 5 }
   0xd   : > { %v1170_v2 = vld [vmem:[%s1489_s1 + $0x38] sm:$0xff]   ;;  %1094 = vmatprep.subr.bf16.mxu1 %v1169_v1  ;;  %v1174_v6 = vld [vmem:[%s1489_s1 + $0x30] sm:$0xff]   ;;  %v1178_v10 = vld [vmem:[%s1489_s1 + $0x28] sm:$0xff]   ;;  %s1366_s28 = scalar_lea.vmem %s1488_s0, %s1064_s18 }
   0xe   : > { %v1171_v3 = vld [vmem:[%s1489_s1 + $0xb8] sm:$0xff]   ;;  %1073 = vmatpush3.bf16.msra.mxu0 %v1170_v2  ;;  %v1175_v7 = vld [vmem:[%s1489_s1 + $0xb0] sm:$0xff]   ;;  %v1179_v11 = vld [vmem:[%s1489_s1 + $0xa8] sm:$0xff]  }
   0xf   : > { %1095 = vmatpush3.bf16.msra.mxu1 %v1171_v3  ;;  %1074 = vmatprep.subr.bf16.mxu0 %v1172_v4  ;;  %v1180_v12 = vld [vmem:[%s1489_s1 + $0x60] sm:$0xff]   ;;  %v1184_v16 = vld [vmem:[%s1489_s1 + $0x58] sm:$0xff]   ;;  %v1188_v20 = vld [vmem:[%s1489_s1 + $0x50] sm:$0xff]  }
  0x10   : > { %1096 = vmatprep.subr.bf16.mxu1 %v1173_v5  ;;  %v1181_v13 = vld [vmem:[%s1489_s1 + $0xe0] sm:$0xff]   ;;  %v1185_v17 = vld [vmem:[%s1489_s1 + $0xd8] sm:$0xff]   ;;  %v1189_v21 = vld [vmem:[%s1489_s1 + $0xd0] sm:$0xff]  }
  0x11   : > { %v1182_v14 = vld [vmem:[%s1489_s1 + $0x20] sm:$0xff]   ;;  %v1186_v18 = vld [vmem:[%s1489_s1 + $0x18] sm:$0xff]   ;;  %v1190_v22 = vld [vmem:[%s1489_s1 + $0x10] sm:$0xff]  }
  0x12   : > { %1075 = vmatpush3.bf16.msra.mxu0 %v1174_v6  ;;  %v1183_v15 = vld [vmem:[%s1489_s1 + $0xa0] sm:$0xff]   ;;  %v1187_v19 = vld [vmem:[%s1489_s1 + $0x98] sm:$0xff]   ;;  %v1191_v23 = vld [vmem:[%s1489_s1 + $0x90] sm:$0xff]  }
  0x13   : > { %1097 = vmatpush3.bf16.msra.mxu1 %v1175_v7  ;;  %1076 = vmatprep.subr.bf16.mxu0 %v1176_v8  ;;  %v1192_v24 = vld [vmem:[%s1489_s1 + $0x48] sm:$0xff]   ;;  %v1196_v28 = vld [vmem:[%s1489_s1 + $0x40] sm:$0xff]   ;;  %v1200_v40 = vld [vmem:[%s1489_s1 + $0x178] sm:$0xff]  }
  0x14   : > { %1098 = vmatprep.subr.bf16.mxu1 %v1177_v9  ;;  %v1193_v25 = vld [vmem:[%s1489_s1 + $0xc8] sm:$0xff]   ;;  %v1197_v29 = vld [vmem:[%s1489_s1 + $0xc0] sm:$0xff]   ;;  %v1201_v41 = vld [vmem:[%s1489_s1 + $0x1f8] sm:$0xff]  }
  0x15   : > { %v1194_v26 = vld [vmem:[%s1489_s1 + $0x8] sm:$0xff]   ;;  %v1198_v30 = vld [vmem:[%s1489_s1] sm:$0xff]   ;;  %v1202_v42 = vld [vmem:[%s1489_s1 + $0x138] sm:$0xff]  }
  0x16   : > { %1077 = vmatpush3.bf16.msra.mxu0 %v1178_v10  ;;  %v1195_v27 = vld [vmem:[%s1489_s1 + $0x88] sm:$0xff]   ;;  %v1199_v31 = vld [vmem:[%s1489_s1 + $0x80] sm:$0xff]   ;;  %v1203_v43 = vld [vmem:[%s1489_s1 + $0x1b8] sm:$0xff]  }
  0x17   : > { %1099 = vmatpush3.bf16.msra.mxu1 %v1179_v11  ;;  %1078 = vmatprep.subr.bf16.mxu0 %v1180_v12  ;;  %v178_v32 = vld [vmem:[%s1366_s28] sm:$0xff]  ;;  %v179_v34 = vld [vmem:[%s1366_s28 + $0x8] sm:$0xff]  ;;  %v1204_v44 = vld [vmem:[%s1489_s1 + $0x170] sm:$0xff]  }
  0x18   : > { %1100 = vmatprep.subr.bf16.mxu1 %v1181_v13  ;;  %v182_v33 = vld [vmem:[%s1366_s28 + $0x20] sm:$0xff]  ;;  %v183_v37 = vld [vmem:[%s1366_s28 + $0x28] sm:$0xff]  ;;  %v1205_v45 = vld [vmem:[%s1489_s1 + $0x1f0] sm:$0xff]  }
  0x19   : > { %v988_v35 = vcombine.low %v178_v32, %v182_v33  ;;  %v989_v36 = vcombine.high %v178_v32, %v182_v33  ;;  %v990_v38 = vcombine.low %v179_v34, %v183_v37  ;;  %v991_v39 = vcombine.high %v179_v34, %v183_v37  ;;  %v1206_v46 = vld [vmem:[%s1489_s1 + $0x130] sm:$0xff]   ;;  %v1208_v48 = vld [vmem:[%s1489_s1 + $0x168] sm:$0xff]   ;;  %v1212_v52 = vld [vmem:[%s1489_s1 + $0x160] sm:$0xff]  }
  0x1a   : > { %1079 = vmatpush3.bf16.msra.mxu0 %v1182_v14  ;;  %v1207_v47 = vld [vmem:[%s1489_s1 + $0x1b0] sm:$0xff]   ;;  %v1209_v49 = vld [vmem:[%s1489_s1 + $0x1e8] sm:$0xff]   ;;  %v1213_v53 = vld [vmem:[%s1489_s1 + $0x1e0] sm:$0xff]  }
  0x1b   : > { %1101 = vmatpush3.bf16.msra.mxu1 %v1183_v15  ;;  %1080 = vmatprep.subr.bf16.mxu0 %v1184_v16  ;;  %v1210_v50 = vld [vmem:[%s1489_s1 + $0x128] sm:$0xff]   ;;  %v1214_v54 = vld [vmem:[%s1489_s1 + $0x120] sm:$0xff]   ;;  %v1216_v56 = vld [vmem:[%s1489_s1 + $0x158] sm:$0xff]  }
  0x1c   : > { %1102 = vmatprep.subr.bf16.mxu1 %v1185_v17  ;;  %777 = vmatprep.mubr.bf16.mxu0 %v989_v36  ;;  %v1211_v51 = vld [vmem:[%s1489_s1 + $0x1a8] sm:$0xff]   ;;  %v1215_v55 = vld [vmem:[%s1489_s1 + $0x1a0] sm:$0xff]   ;;  %v1217_v57 = vld [vmem:[%s1489_s1 + $0x1d8] sm:$0xff]  }
  0x1d   : > { %818 = vmatprep.mubr.bf16.mxu1 %v991_v39  ;;  %v1218_v58 = vld [vmem:[%s1489_s1 + $0x118] sm:$0xff]   ;;  %v1220_v60 = vld [vmem:[%s1489_s1 + $0x150] sm:$0xff]   ;;  %v1224_v0 = vld [vmem:[%s1489_s1 + $0x148] sm:$0xff]  }
  0x1e   : > { %1081 = vmatpush3.bf16.msra.mxu0 %v1186_v18  ;;  %v1219_v59 = vld [vmem:[%s1489_s1 + $0x198] sm:$0xff]   ;;  %v1221_v61 = vld [vmem:[%s1489_s1 + $0x1d0] sm:$0xff]   ;;  %v1225_v1 = vld [vmem:[%s1489_s1 + $0x1c8] sm:$0xff]  }
  0x1f   : > { %1103 = vmatpush3.bf16.msra.mxu1 %v1187_v19  ;;  %1082 = vmatprep.subr.bf16.mxu0 %v1188_v20  ;;  %v1222_v62 = vld [vmem:[%s1489_s1 + $0x110] sm:$0xff]   ;;  %v1226_v2 = vld [vmem:[%s1489_s1 + $0x108] sm:$0xff]   ;;  %v1228_v4 = vld [vmem:[%s1489_s1 + $0x140] sm:$0xff]  }
  0x20   : > { %1104 = vmatprep.subr.bf16.mxu1 %v1189_v21  ;;  %v1223_v63 = vld [vmem:[%s1489_s1 + $0x190] sm:$0xff]   ;;  %v1227_v3 = vld [vmem:[%s1489_s1 + $0x188] sm:$0xff]   ;;  %v1229_v5 = vld [vmem:[%s1489_s1 + $0x1c0] sm:$0xff]  }
  0x21   : > { %v1230_v6 = vld [vmem:[%s1489_s1 + $0x100] sm:$0xff]   ;;  %v180_v8 = vld [vmem:[%s1366_s28 + $0x10] sm:$0xff]  ;;  %v181_v12 = vld [vmem:[%s1366_s28 + $0x18] sm:$0xff] }
  0x22   : > { %1083 = vmatpush3.bf16.msra.mxu0 %v1190_v22  ;;  %v1231_v7 = vld [vmem:[%s1489_s1 + $0x180] sm:$0xff]   ;;  %v184_v9 = vld [vmem:[%s1366_s28 + $0x30] sm:$0xff]  ;;  %v185_v13 = vld [vmem:[%s1366_s28 + $0x38] sm:$0xff]  ;;  %s986_s28 = sshll.u32 %s1493_s21, 2 }
  0x23   : > { %1105 = vmatpush3.bf16.msra.mxu1 %v1191_v23  ;;  %1084 = vmatprep.subr.bf16.mxu0 %v1192_v24  ;;  %v992_v10 = vcombine.low %v180_v8, %v184_v9  ;;  %v993_v11 = vcombine.high %v180_v8, %v184_v9  ;;  %v994_v14 = vcombine.low %v181_v12, %v185_v13  ;;  %v987_v23 = vld [vmem:[%s1490_s2] ss:$0 sm:$0xff]  ;;  %s175_s29 = scalar_lea.vmem %s1491_s3, %s986_s28 }
  0x24   : > { %1106 = vmatprep.subr.bf16.mxu1 %v1193_v25  ;;  %v995_v15 = vcombine.high %v181_v12, %v185_v13 }
  0x26   : > { %1085 = vmatpush3.bf16.msra.mxu0 %v1194_v26 }
  0x27   : > { %1107 = vmatpush3.bf16.msra.mxu1 %v1195_v27  ;;  %1086 = vmatprep.subr.bf16.mxu0 %v1196_v28 }
  0x28   : > { %1108 = vmatprep.subr.bf16.mxu1 %v1197_v29 }
  0x2a   : > { %1087 = vmatpush3.bf16.msra.mxu0 %v1198_v30 }
  0x2b   : > { %1109 = vmatpush3.bf16.msra.mxu1 %v1199_v31  ;;  %1116 = vmatprep.subr.bf16.mxu0 %v1200_v40 }
  0x2c   : > { %1138 = vmatprep.subr.bf16.mxu1 %v1201_v41 }
  0x2d   : > { %778 = vmatmul.mubr.bf16.vlgmr.msra.gmra.mxu0 %v988_v35 }
  0x2e   : > { %819 = vmatmul.mubr.bf16.vlgmr.msra.gmra.mxu1 %v990_v38  ;;  %1117 = vmatpush3.bf16.msra.mxu0 %v1202_v42 }
  0x2f   : > { %1139 = vmatpush3.bf16.msra.mxu1 %v1203_v43  ;;  %1118 = vmatprep.subr.bf16.mxu0 %v1204_v44 }
  0x30   : > { %1140 = vmatprep.subr.bf16.mxu1 %v1205_v45  ;;  %859 = vmatprep.mubr.bf16.mxu0 %v993_v11 }
  0x31   : > { %900 = vmatprep.mubr.bf16.mxu1 %v995_v15 }
  0x32   : > { %1119 = vmatpush3.bf16.msra.mxu0 %v1206_v46 }
  0x33   : > { %1141 = vmatpush3.bf16.msra.mxu1 %v1207_v47  ;;  %1120 = vmatprep.subr.bf16.mxu0 %v1208_v48 }
  0x34   : > { %1142 = vmatprep.subr.bf16.mxu1 %v1209_v49 }
  0x36   : > { %1121 = vmatpush3.bf16.msra.mxu0 %v1210_v50 }
  0x37   : > { %1143 = vmatpush3.bf16.msra.mxu1 %v1211_v51  ;;  %1122 = vmatprep.subr.bf16.mxu0 %v1212_v52 }
  0x38   : > { %1144 = vmatprep.subr.bf16.mxu1 %v1213_v53 }
  0x3a   : > { %1123 = vmatpush3.bf16.msra.mxu0 %v1214_v54 }
  0x3b   : > { %1145 = vmatpush3.bf16.msra.mxu1 %v1215_v55  ;;  %1124 = vmatprep.subr.bf16.mxu0 %v1216_v56 }
  0x3c   : > { %1146 = vmatprep.subr.bf16.mxu1 %v1217_v57 }
  0x3e   : > { %1125 = vmatpush3.bf16.msra.mxu0 %v1218_v58 }
  0x3f   : > { %1147 = vmatpush3.bf16.msra.mxu1 %v1219_v59  ;;  %1126 = vmatprep.subr.bf16.mxu0 %v1220_v60 }
  0x40   : > { %1148 = vmatprep.subr.bf16.mxu1 %v1221_v61 }
  0x42   : > { %1127 = vmatpush3.bf16.msra.mxu0 %v1222_v62 }
  0x43   : > { %1149 = vmatpush3.bf16.msra.mxu1 %v1223_v63  ;;  %1128 = vmatprep.subr.bf16.mxu0 %v1224_v0 }
  0x44   : > { %1150 = vmatprep.subr.bf16.mxu1 %v1225_v1 }
  0x46   : > { %1129 = vmatpush3.bf16.msra.mxu0 %v1226_v2 }
  0x47   : > { %1151 = vmatpush3.bf16.msra.mxu1 %v1227_v3  ;;  %1130 = vmatprep.subr.bf16.mxu0 %v1228_v4 }
  0x48   : > { %1152 = vmatprep.subr.bf16.mxu1 %v1229_v5 }
  0x4a   : > { %1131 = vmatpush3.bf16.msra.mxu0 %v1230_v6 }
  0x4b   : > { %1153 = vmatpush3.bf16.msra.mxu1 %v1231_v7 }
  0x4d   : > { %860 = vmatmul.mubr.bf16.vlgmr.msra.gmra.mxu0 %v992_v10 }
  0x4e   : > { %901 = vmatmul.mubr.bf16.vlgmr.msra.gmra.mxu1 %v994_v14 }
  0xed   : > { %v1088_v16 = vpop.f32.mrf.mxu0 }
  0xee   : > { %v1110_v17 = vpop.f32.mrf.mxu1 }
  0xef   : > { %v1089_v18 = vpop.f32.mrf.mxu0 }
  0xf0   : > { %v1111_v19 = vpop.f32.mrf.mxu1  ;;  %v1090_v21 = vadd.f32 %v1089_v18, %v1088_v16 }
  0xf1   : > { %v1091_v20 = vpop.f32.mrf.mxu0  ;;  %v1112_v26 = vadd.f32 %v1111_v19, %v1110_v17 }
  0xf2   : > { %v1113_v22 = vpop.f32.mrf.mxu1  ;;  %v780_v25 = vadd.f32 %v1090_v21, %v987_v23 }
  0xf3   : > { %v1092_v24 = vpop.f32.mrf.mxu0 }
  0xf4   : > { %v1093_v27 = vadd.f32 %v1092_v24, %v1091_v20  ;;  %v1114_v28 = vpop.f32.mrf.mxu1  ;;  %v821_v32 = vadd.f32 %v1112_v26, %v780_v25 }
  0xf5   : > { %v1115_v37 = vadd.f32 %v1114_v28, %v1113_v22 }
  0xf6   : > { %v783_v33 = vadd.f32 %v1093_v27, %v987_v23 }
  0xf8   : > { %v824_v41 = vadd.f32 %v1115_v37, %v783_v33 }
 0x10d   : > { %v1132_v29 = vpop.f32.mrf.mxu0 }
 0x10e   : > { %v1154_v30 = vpop.f32.mrf.mxu1 }
 0x10f   : > { %v1133_v31 = vpop.f32.mrf.mxu0 }
 0x110   : > { %v1134_v34 = vadd.f32 %v1133_v31, %v1132_v29  ;;  %v1155_v35 = vpop.f32.mrf.mxu1 }
 0x111   : > { %v1135_v36 = vpop.f32.mrf.mxu0  ;;  %v1156_v42 = vadd.f32 %v1155_v35, %v1154_v30 }
 0x112   : > { %v862_v38 = vadd.f32 %v1134_v34, %v821_v32  ;;  %v1157_v39 = vpop.f32.mrf.mxu1 }
 0x113   : > { %v1136_v40 = vpop.f32.mrf.mxu0 }
 0x114   : > { %v1137_v43 = vadd.f32 %v1136_v40, %v1135_v36  ;;  %v1158_v44 = vpop.f32.mrf.mxu1  ;;  %v903_v45 = vadd.f32 %v1156_v42, %v862_v38 }
 0x115   : > { %v1159_v47 = vadd.f32 %v1158_v44, %v1157_v39 }
 0x116   : > { %v865_v46 = vadd.f32 %v1137_v43, %v824_v41  ;;  %v909_v49 = vmax.f32 %v903_v45, 0.0 }
 0x118   : > { %v906_v48 = vadd.f32 %v1159_v47, %v865_v46 }
 0x11a   : > { %v910_v50 = vmax.f32 %v906_v48, 0.0 }
 0x11c   : > { %v1070_v51 = vpack.c.bf16 %v910_v50, %v909_v49 }
 0x11e   : > { %1071 = vst [vmem:[%s175_s29] sm:$0xff] %v1070_v51  }
 0x11f PF: > { %s13_s12 = sadd.s32 1, %s1238_s12  }
 0x120   : > { %p10_p4 = scmp.ge.s32.totalorder %s13_s12, 4  }
 0x122   :  { %12 = sbr.rel (!%p10_p4) target bundleno = 1 (0x1), region = 62 }

// kernel: cae_forward.14
= control target key start
LH: loop header
LB: loop body
LE: loop exit
PB: predicated region body
PF: predicated region fallthrough
CT: control target
= control target key end

     0   :  { %s735_s12 = smov 0   ;;  %s864_s0 = inlined_call_operand.vmem [shape: bf16[64,256], index: 0, kind: input, shape index: {}]   ;;  %s865_s1 = inlined_call_operand.vmem [shape: bf16[256,256], index: 1, kind: input, shape index: {}]   ;;  %s866_s2 = inlined_call_operand.vmem [shape: f32[1,256], index: 2, kind: input, shape index: {}]   ;;  %s867_s3 = inlined_call_operand.vmem [shape: bf16[64,256], index: 3, kind: output, shape index: {}]  }
   0x1 LB: > { %s554_s13 = sadd.s32 4294967295, %s713_s12   ;;  %p558_p0 = scmp.ge.s32.totalorder %s713_s12, 1  ;;  %s713_s12 = sphi %s735_s12, %s13_s12  }
   0x2   : > { %p139_p1 = scmp.lt.s32.totalorder %s713_s12, 3 }
   0x4   : > { %p140_p2 = pnand %p558_p0, %p139_p1 }
   0x5   : > { %s559_s24 = sshll.u32 (!%p140_p2), %s554_s13, 2 }
   0x6   : > { %143 = sbr.rel (%p140_p2) target bundleno = 282 (0x11a), region = 32  ;;  %p166_p3 = scmp.lt.s32.totalorder (!%p140_p2), %s559_s24, 7 }
   0xb   : > { %v653_v0 = vld [vmem:[%s865_s1 + $0x74] ss:$8 sps:$4 sm:$0xff]   ;;  %v655_v1 = vld [vmem:[%s865_s1 + $0x70] ss:$8 sps:$4 sm:$0xff]   ;;  %v656_v2 = vld [vmem:[%s865_s1 + $0x64] ss:$8 sps:$4 sm:$0xff]   ;;  %v217_v36 = vlaneseq }
   0xc   : > { %407 = vmatprep.subr.bf16.mxu0 %v653_v0  ;;  %613 = vmatprep.subr.bf16.mxu1 %v653_v0  ;;  %v658_v3 = vld [vmem:[%s865_s1 + $0x60] ss:$8 sps:$4 sm:$0xff]   ;;  %v659_v4 = vld [vmem:[%s865_s1 + $0x54] ss:$8 sps:$4 sm:$0xff]   ;;  %v661_v5 = vld [vmem:[%s865_s1 + $0x50] ss:$8 sps:$4 sm:$0xff]  }
   0xd   : > { %408 = vmatpush1.bf16.msra.mxu0 %v655_v1  ;;  %629 = vmatpush1.bf16.msra.mxu1 %v655_v1  ;;  %v662_v6 = vld [vmem:[%s865_s1 + $0x44] ss:$8 sps:$4 sm:$0xff]   ;;  %v664_v7 = vld [vmem:[%s865_s1 + $0x40] ss:$8 sps:$4 sm:$0xff]   ;;  %v665_v8 = vld [vmem:[%s865_s1 + $0x34] ss:$8 sps:$4 sm:$0xff]  }
   0xe   : > { %409 = vmatprep.subr.bf16.mxu0 %v656_v2  ;;  %614 = vmatprep.subr.bf16.mxu1 %v656_v2  ;;  %s869_s24 = smov (!%p166_p3, %s559_s24), 7  ;;  %v667_v9 = vld [vmem:[%s865_s1 + $0x30] ss:$8 sps:$4 sm:$0xff]   ;;  %v668_v10 = vld [vmem:[%s865_s1 + $0x24] ss:$8 sps:$4 sm:$0xff]   ;;  %v218_v37 = vshrl.u32 %v217_v36, 7 }
   0xf   : > { %s607_s10 = sshll.u32 %s869_s24, 3  ;;  %v670_v11 = vld [vmem:[%s865_s1 + $0x20] ss:$8 sps:$4 sm:$0xff]   ;;  %v671_v12 = vld [vmem:[%s865_s1 + $0x14] ss:$8 sps:$4 sm:$0xff]  }
  0x10   : > { %s787_s16 = scalar_lea.vmem %s864_s0, %s607_s10  ;;  %v673_v14 = vld [vmem:[%s865_s1 + $0x10] ss:$8 sps:$4 sm:$0xff]   ;;  %v674_v16 = vld [vmem:[%s865_s1 + $0x4] ss:$8 sps:$4 sm:$0xff]   ;;  %v676_v17 = vld [vmem:[%s865_s1] ss:$8 sps:$4 sm:$0xff]   ;;  %s177_s13 = scalar_lea.vmem %s867_s3, %s607_s10 }
  0x11   : > { %410 = vmatpush1.bf16.msra.mxu0 %v658_v3  ;;  %630 = vmatpush1.bf16.msra.mxu1 %v658_v3  ;;  %v703_v13 = vld [vmem:[%s787_s16 + $0x4] ss:$8 sps:$4 sm:$0xff]   ;;  %v706_v15 = vld [vmem:[%s787_s16 + $0x14] ss:$8 sps:$4 sm:$0xff]   ;;  %v679_v19 = vld [vmem:[%s865_s1 + $0xf0] ss:$8 sps:$4 sm:$0xff]  }
  0x12   : > { %411 = vmatprep.subr.bf16.mxu0 %v659_v4  ;;  %615 = vmatprep.subr.bf16.mxu1 %v659_v4  ;;  %v677_v18 = vld [vmem:[%s865_s1 + $0xf4] ss:$8 sps:$4 sm:$0xff]   ;;  %v680_v20 = vld [vmem:[%s865_s1 + $0xe4] ss:$8 sps:$4 sm:$0xff]   ;;  %v682_v21 = vld [vmem:[%s865_s1 + $0xe0] ss:$8 sps:$4 sm:$0xff]  }
  0x13   : > { %439 = vmatprep.mubr.bf16.mxu0 %v703_v13  ;;  %449 = vmatprep.mubr.bf16.mxu1 %v706_v15  ;;  %v683_v22 = vld [vmem:[%s865_s1 + $0xd4] ss:$8 sps:$4 sm:$0xff]   ;;  %v685_v23 = vld [vmem:[%s865_s1 + $0xd0] ss:$8 sps:$4 sm:$0xff]   ;;  %v686_v24 = vld [vmem:[%s865_s1 + $0xc4] ss:$8 sps:$4 sm:$0xff]  }
  0x14   : > { %v688_v25 = vld [vmem:[%s865_s1 + $0xc0] ss:$8 sps:$4 sm:$0xff]   ;;  %v689_v26 = vld [vmem:[%s865_s1 + $0xb4] ss:$8 sps:$4 sm:$0xff]   ;;  %v691_v27 = vld [vmem:[%s865_s1 + $0xb0] ss:$8 sps:$4 sm:$0xff]  }
  0x15   : > { %412 = vmatpush1.bf16.msra.mxu0 %v661_v5  ;;  %631 = vmatpush1.bf16.msra.mxu1 %v661_v5  ;;  %v692_v28 = vld [vmem:[%s865_s1 + $0xa4] ss:$8 sps:$4 sm:$0xff]   ;;  %v694_v29 = vld [vmem:[%s865_s1 + $0xa0] ss:$8 sps:$4 sm:$0xff]   ;;  %v695_v30 = vld [vmem:[%s865_s1 + $0x94] ss:$8 sps:$4 sm:$0xff]  }
  0x16   : > { %413 = vmatprep.subr.bf16.mxu0 %v662_v6  ;;  %616 = vmatprep.subr.bf16.mxu1 %v662_v6  ;;  %v697_v31 = vld [vmem:[%s865_s1 + $0x90] ss:$8 sps:$4 sm:$0xff]   ;;  %v698_v32 = vld [vmem:[%s865_s1 + $0x84] ss:$8 sps:$4 sm:$0xff]   ;;  %v700_v33 = vld [vmem:[%s865_s1 + $0x80] ss:$8 sps:$4 sm:$0xff]  }
  0x17   : > { %v701_v34 = vld [vmem:[%s787_s16] ss:$8 sps:$4 sm:$0xff]   ;;  %v704_v35 = vld [vmem:[%s787_s16 + $0x10] ss:$8 sps:$4 sm:$0xff]   ;;  %v219_v38 = vsub.s32 0, %v218_v37  ;;  %v223_v40 = vsub.s32 1, %v218_v37 }
  0x18   : > { %v215_v39 = vld [vmem:[%s866_s2] sm:$0x3] }
  0x19   : > { %414 = vmatpush1.bf16.msra.mxu0 %v664_v7  ;;  %632 = vmatpush1.bf16.msra.mxu1 %v664_v7  ;;  %v220_v41 = vrot.slane %v215_v39, %v219_v38  ;;  %v224_v42 = vrot.slane %v215_v39, %v223_v40 }
  0x1a   : > { %415 = vmatprep.subr.bf16.mxu0 %v665_v8  ;;  %617 = vmatprep.subr.bf16.mxu1 %v665_v8 }
  0x1d   : > { %416 = vmatpush1.bf16.msra.mxu0 %v667_v9  ;;  %633 = vmatpush1.bf16.msra.mxu1 %v667_v9 }
  0x1e   : > { %417 = vmatprep.subr.bf16.mxu0 %v668_v10  ;;  %618 = vmatprep.subr.bf16.mxu1 %v668_v10 }
  0x21   : > { %418 = vmatpush1.bf16.msra.mxu0 %v670_v11  ;;  %634 = vmatpush1.bf16.msra.mxu1 %v670_v11 }
  0x22   : > { %419 = vmatprep.subr.bf16.mxu0 %v671_v12  ;;  %619 = vmatprep.subr.bf16.mxu1 %v671_v12 }
  0x25   : > { %420 = vmatpush1.bf16.msra.mxu0 %v673_v14  ;;  %635 = vmatpush1.bf16.msra.mxu1 %v673_v14 }
  0x26   : > { %421 = vmatprep.subr.bf16.mxu0 %v674_v16  ;;  %620 = vmatprep.subr.bf16.mxu1 %v674_v16 }
  0x29   : > { %422 = vmatpush1.bf16.msra.mxu0 %v676_v17  ;;  %636 = vmatpush1.bf16.msra.mxu1 %v676_v17 }
  0x2a   : > { %423 = vmatprep.subr.bf16.mxu0 %v677_v18  ;;  %621 = vmatprep.subr.bf16.mxu1 %v677_v18 }
  0x2d   : > { %424 = vmatpush2.bf16.msra.mxu0 %v679_v19  ;;  %637 = vmatpush2.bf16.msra.mxu1 %v679_v19 }
  0x2e   : > { %425 = vmatprep.subr.bf16.mxu0 %v680_v20  ;;  %622 = vmatprep.subr.bf16.mxu1 %v680_v20 }
  0x31   : > { %426 = vmatpush2.bf16.msra.mxu0 %v682_v21  ;;  %638 = vmatpush2.bf16.msra.mxu1 %v682_v21 }
  0x32   : > { %427 = vmatprep.subr.bf16.mxu0 %v683_v22  ;;  %623 = vmatprep.subr.bf16.mxu1 %v683_v22 }
  0x35   : > { %428 = vmatpush2.bf16.msra.mxu0 %v685_v23  ;;  %639 = vmatpush2.bf16.msra.mxu1 %v685_v23 }
  0x36   : > { %429 = vmatprep.subr.bf16.mxu0 %v686_v24  ;;  %624 = vmatprep.subr.bf16.mxu1 %v686_v24 }
  0x39   : > { %430 = vmatpush2.bf16.msra.mxu0 %v688_v25  ;;  %640 = vmatpush2.bf16.msra.mxu1 %v688_v25 }
  0x3a   : > { %431 = vmatprep.subr.bf16.mxu0 %v689_v26  ;;  %625 = vmatprep.subr.bf16.mxu1 %v689_v26 }
  0x3d   : > { %432 = vmatpush2.bf16.msra.mxu0 %v691_v27  ;;  %641 = vmatpush2.bf16.msra.mxu1 %v691_v27 }
  0x3e   : > { %433 = vmatprep.subr.bf16.mxu0 %v692_v28  ;;  %626 = vmatprep.subr.bf16.mxu1 %v692_v28 }
  0x41   : > { %434 = vmatpush2.bf16.msra.mxu0 %v694_v29  ;;  %642 = vmatpush2.bf16.msra.mxu1 %v694_v29 }
  0x42   : > { %435 = vmatprep.subr.bf16.mxu0 %v695_v30  ;;  %627 = vmatprep.subr.bf16.mxu1 %v695_v30 }
  0x45   : > { %436 = vmatpush2.bf16.msra.mxu0 %v697_v31  ;;  %643 = vmatpush2.bf16.msra.mxu1 %v697_v31 }
  0x46   : > { %437 = vmatprep.subr.bf16.mxu0 %v698_v32  ;;  %628 = vmatprep.subr.bf16.mxu1 %v698_v32 }
  0x49   : > { %438 = vmatpush2.bf16.msra.mxu0 %v700_v33  ;;  %644 = vmatpush2.bf16.msra.mxu1 %v700_v33 }
  0x4c   : > { %440 = vmatmul.mubr.bf16.vlgmr.msra.gmra.mxu0 %v701_v34  ;;  %450 = vmatmul.mubr.bf16.vlgmr.msra.gmra.mxu1 %v704_v35 }
 0x10c   : > { %v441_v43 = vpop.f32.mrf.mxu0  ;;  %v451_v44 = vpop.f32.mrf.mxu1 }
 0x10d   : > { %v442_v45 = vadd.f32 %v441_v43, %v220_v41  ;;  %v452_v52 = vadd.f32 %v451_v44, %v220_v41 }
 0x10e   : > { %v443_v46 = vpop.f32.mrf.mxu0  ;;  %v453_v47 = vpop.f32.mrf.mxu1 }
 0x10f   : > { %v444_v48 = vadd.f32 %v443_v46, %v224_v42  ;;  %v460_v51 = vmax.f32 %v442_v45, 0.0  ;;  %v454_v54 = vadd.f32 %v453_v47, %v224_v42  ;;  %v464_v62 = vmax.f32 %v452_v52, 0.0 }
 0x110   : > { %v445_v49 = vpop.f32.mrf.mxu0  ;;  %v455_v50 = vpop.f32.mrf.mxu1 }
 0x111   : > { %v461_v53 = vmax.f32 %v444_v48, 0.0  ;;  %v446_v55 = vadd.f32 %v445_v49, %v220_v41  ;;  %v456_v59 = vadd.f32 %v455_v50, %v220_v41  ;;  %v465_v63 = vmax.f32 %v454_v54, 0.0 }
 0x112   : > { %v447_v56 = vpop.f32.mrf.mxu0  ;;  %v457_v57 = vpop.f32.mrf.mxu1 }
 0x113   : > { %v609_v58 = vpack.c.bf16 %v461_v53, %v460_v51  ;;  %v448_v60 = vadd.f32 %v447_v56, %v224_v42  ;;  %v458_v61 = vadd.f32 %v457_v57, %v224_v42  ;;  %v462_v0 = vmax.f32 %v446_v55, 0.0 }
 0x114   : > { %v466_v3 = vmax.f32 %v456_v59, 0.0  ;;  %v611_v5 = vpack.c.bf16 %v465_v63, %v464_v62 }
 0x115   : > { %492 = vst [vmem:[%s177_s13] sm:$0xff] %v609_v58  ;;  %v463_v1 = vmax.f32 %v448_v60, 0.0  ;;  %v467_v2 = vmax.f32 %v458_v61, 0.0 }
 0x116   : > { %494 = vst [vmem:[%s177_s13 + $0x10] sm:$0xff] %v611_v5 }
 0x117   : > { %v610_v4 = vpack.c.bf16 %v463_v1, %v462_v0  ;;  %v612_v6 = vpack.c.bf16 %v467_v2, %v466_v3 }
 0x119   : > { %493 = vst [vmem:[%s177_s13 + $0x8] sm:$0xff] %v610_v4  ;;  %495 = vst [vmem:[%s177_s13 + $0x18] sm:$0xff] %v612_v6 }
 0x11a PF: > { %s13_s12 = sadd.s32 1, %s713_s12  }
 0x11b   : > { %p10_p4 = scmp.ge.s32.totalorder %s13_s12, 4  }
 0x11d   :  { %12 = sbr.rel (!%p10_p4) target bundleno = 1 (0x1), region = 62 }

// kernel: cae_forward.13
= control target key start
LH: loop header
LB: loop body
LE: loop exit
PB: predicated region body
PF: predicated region fallthrough
CT: control target
= control target key end

     0   :  { %v167_v36 = vlaneseq  ;;  %v3013_v37 = vmov 1966171168   ;;  %s4013_s0 = inlined_call_operand.vmem [shape: bf16[2,1024], index: 0, kind: input, shape index: {}]   ;;  %s4014_s1 = inlined_call_operand.vmem [shape: bf16[1024,256], index: 1, kind: input, shape index: {}]   ;;  %s4015_s2 = inlined_call_operand.vmem [shape: f32[1,256], index: 2, kind: input, shape index: {}]   ;;  %s4016_s3 = inlined_call_operand.vmem [shape: bf16[256,128], index: 3, kind: input, shape index: {}]   ;;  %s4017_s4 = inlined_call_operand.vmem [shape: f32[1,128], index: 4, kind: input, shape index: {}]   ;;  %s4018_s5 = inlined_call_operand.vmem [shape: bf16[128,256], index: 5, kind: input, shape index: {}]   ;;  %s4019_s6 = inlined_call_operand.vmem [shape: f32[1,256], index: 6, kind: input, shape index: {}]   ;;  %s4020_s7 = inlined_call_operand.vmem [shape: bf16[256,1024], index: 7, kind: input, shape index: {}]   ;;  %s4021_s8 = inlined_call_operand.vmem [shape: f32[1,1024], index: 8, kind: input, shape index: {}]   ;;  %s4022_s9 = inlined_call_operand.hbm [shape: f32[2,128], index: 9, kind: output, shape index: {0}]   ;;  %s4023_s10 = inlined_call_operand.vmem [shape: bf16[2,1024], index: 10, kind: output, shape index: {1}]  }
   0x1   :  { %v2758_v0 = vld [vmem:[%s4014_s1 + $0x74] ss:$8 sps:$4 sm:$0xff]   ;;  %v2762_v2 = vld [vmem:[%s4014_s1 + $0x70] ss:$8 sps:$4 sm:$0xff]   ;;  %v2764_v4 = vld [vmem:[%s4014_s1 + $0x64] ss:$8 sps:$4 sm:$0xff]   ;;  %v180_v38 = vunpack.c.l.s4 %v3013_v37 }
   0x2   :  { %v2760_v1 = vld [vmem:[%s4014_s1 + $0x174] ss:$8 sps:$4 sm:$0xff]   ;;  %875 = vmatprep.subr.bf16.mxu0 %v2758_v0  ;;  %v2763_v3 = vld [vmem:[%s4014_s1 + $0x170] ss:$8 sps:$4 sm:$0xff]   ;;  %v2766_v5 = vld [vmem:[%s4014_s1 + $0x164] ss:$8 sps:$4 sm:$0xff]  }
   0x3   :  { %916 = vmatprep.subr.bf16.mxu1 %v2760_v1  ;;  %876 = vmatpush1.bf16.msra.mxu0 %v2762_v2  ;;  %v2768_v6 = vld [vmem:[%s4014_s1 + $0x60] ss:$8 sps:$4 sm:$0xff]   ;;  %v2770_v8 = vld [vmem:[%s4014_s1 + $0x54] ss:$8 sps:$4 sm:$0xff]   ;;  %v2774_v10 = vld [vmem:[%s4014_s1 + $0x50] ss:$8 sps:$4 sm:$0xff]   ;;  %v181_v43 = vunpack.c.0.s8 %v180_v38 }
   0x4   :  { %917 = vmatpush1.bf16.msra.mxu1 %v2763_v3  ;;  %877 = vmatprep.subr.bf16.mxu0 %v2764_v4  ;;  %v2769_v7 = vld [vmem:[%s4014_s1 + $0x160] ss:$8 sps:$4 sm:$0xff]   ;;  %v2772_v9 = vld [vmem:[%s4014_s1 + $0x154] ss:$8 sps:$4 sm:$0xff]   ;;  %v2775_v11 = vld [vmem:[%s4014_s1 + $0x150] ss:$8 sps:$4 sm:$0xff]  }
   0x5   :  { %918 = vmatprep.subr.bf16.mxu1 %v2766_v5  ;;  %v2776_v12 = vld [vmem:[%s4014_s1 + $0x44] ss:$8 sps:$4 sm:$0xff]   ;;  %v2780_v14 = vld [vmem:[%s4014_s1 + $0x40] ss:$8 sps:$4 sm:$0xff]   ;;  %v2782_v16 = vld [vmem:[%s4014_s1 + $0x34] ss:$8 sps:$4 sm:$0xff]  }
   0x6   :  { %v2778_v13 = vld [vmem:[%s4014_s1 + $0x144] ss:$8 sps:$4 sm:$0xff]   ;;  %v2781_v15 = vld [vmem:[%s4014_s1 + $0x140] ss:$8 sps:$4 sm:$0xff]   ;;  %v2784_v17 = vld [vmem:[%s4014_s1 + $0x134] ss:$8 sps:$4 sm:$0xff]  }
   0x7   :  { %878 = vmatpush1.bf16.msra.mxu0 %v2768_v6  ;;  %v2786_v18 = vld [vmem:[%s4014_s1 + $0x30] ss:$8 sps:$4 sm:$0xff]   ;;  %v2788_v20 = vld [vmem:[%s4014_s1 + $0x24] ss:$8 sps:$4 sm:$0xff]   ;;  %v2792_v22 = vld [vmem:[%s4014_s1 + $0x20] ss:$8 sps:$4 sm:$0xff]  }
   0x8   :  { %919 = vmatpush1.bf16.msra.mxu1 %v2769_v7  ;;  %879 = vmatprep.subr.bf16.mxu0 %v2770_v8  ;;  %v2787_v19 = vld [vmem:[%s4014_s1 + $0x130] ss:$8 sps:$4 sm:$0xff]   ;;  %v2790_v21 = vld [vmem:[%s4014_s1 + $0x124] ss:$8 sps:$4 sm:$0xff]   ;;  %v2793_v23 = vld [vmem:[%s4014_s1 + $0x120] ss:$8 sps:$4 sm:$0xff]  }
   0x9   :  { %920 = vmatprep.subr.bf16.mxu1 %v2772_v9  ;;  %v2794_v24 = vld [vmem:[%s4014_s1 + $0x14] ss:$8 sps:$4 sm:$0xff]   ;;  %v2798_v26 = vld [vmem:[%s4014_s1 + $0x10] ss:$8 sps:$4 sm:$0xff]   ;;  %v2800_v28 = vld [vmem:[%s4014_s1 + $0x4] ss:$8 sps:$4 sm:$0xff]  }
   0xa   :  { %v2796_v25 = vld [vmem:[%s4014_s1 + $0x114] ss:$8 sps:$4 sm:$0xff]   ;;  %v2799_v27 = vld [vmem:[%s4014_s1 + $0x110] ss:$8 sps:$4 sm:$0xff]   ;;  %v2802_v29 = vld [vmem:[%s4014_s1 + $0x104] ss:$8 sps:$4 sm:$0xff]  }
   0xb   :  { %880 = vmatpush1.bf16.msra.mxu0 %v2774_v10  ;;  %v2804_v30 = vld [vmem:[%s4014_s1] ss:$8 sps:$4 sm:$0xff]   ;;  %v2806_v32 = vld [vmem:[%s4014_s1 + $0xf4] ss:$8 sps:$4 sm:$0xff]   ;;  %v2810_v34 = vld [vmem:[%s4014_s1 + $0xf0] ss:$8 sps:$4 sm:$0xff]  }
   0xc   :  { %921 = vmatpush1.bf16.msra.mxu1 %v2775_v11  ;;  %881 = vmatprep.subr.bf16.mxu0 %v2776_v12  ;;  %v2805_v31 = vld [vmem:[%s4014_s1 + $0x100] ss:$8 sps:$4 sm:$0xff]   ;;  %v2808_v33 = vld [vmem:[%s4014_s1 + $0x1f4] ss:$8 sps:$4 sm:$0xff]   ;;  %v2811_v35 = vld [vmem:[%s4014_s1 + $0x1f0] ss:$8 sps:$4 sm:$0xff]  }
   0xd   :  { %922 = vmatprep.subr.bf16.mxu1 %v2778_v13  ;;  %v2812_v39 = vld [vmem:[%s4014_s1 + $0xe4] ss:$8 sps:$4 sm:$0xff]   ;;  %v2816_v41 = vld [vmem:[%s4014_s1 + $0xe0] ss:$8 sps:$4 sm:$0xff]   ;;  %v3188_v42 = vshrl.u32 %v167_v36, 7 }
   0xe   :  { %v2814_v40 = vld [vmem:[%s4014_s1 + $0x1e4] ss:$8 sps:$4 sm:$0xff]   ;;  %v2817_v44 = vld [vmem:[%s4014_s1 + $0x1e0] ss:$8 sps:$4 sm:$0xff]   ;;  %v2818_v45 = vld [vmem:[%s4014_s1 + $0xd4] ss:$8 sps:$4 sm:$0xff]  }
   0xf   :  { %882 = vmatpush1.bf16.msra.mxu0 %v2780_v14  ;;  %v2820_v46 = vld [vmem:[%s4014_s1 + $0x1d4] ss:$8 sps:$4 sm:$0xff]   ;;  %v2822_v47 = vld [vmem:[%s4014_s1 + $0xd0] ss:$8 sps:$4 sm:$0xff]   ;;  %v3206_v49 = vsub.s32 %v181_v43, %v3188_v42  ;;  %v2824_v50 = vld [vmem:[%s4014_s1 + $0xc4] ss:$8 sps:$4 sm:$0xff]  }
  0x10   :  { %923 = vmatpush1.bf16.msra.mxu1 %v2781_v15  ;;  %883 = vmatprep.subr.bf16.mxu0 %v2782_v16  ;;  %v2823_v48 = vld [vmem:[%s4014_s1 + $0x1d0] ss:$8 sps:$4 sm:$0xff]   ;;  %v2826_v51 = vld [vmem:[%s4014_s1 + $0x1c4] ss:$8 sps:$4 sm:$0xff]   ;;  %v2828_v53 = vld [vmem:[%s4014_s1 + $0xc0] ss:$8 sps:$4 sm:$0xff]  }
  0x11   :  { %924 = vmatprep.subr.bf16.mxu1 %v2784_v17  ;;  %v36_v52 = vld [vmem:[%s4013_s0] sm:$0xff]  ;;  %v2830_v56 = vld [vmem:[%s4014_s1 + $0xb4] ss:$8 sps:$4 sm:$0xff]   ;;  %v2834_v59 = vld [vmem:[%s4014_s1 + $0xb0] ss:$8 sps:$4 sm:$0xff]  }
  0x12   :  { %v185_v54 = vrot.slane %v36_v52, %v3206_v49  ;;  %v2829_v55 = vld [vmem:[%s4014_s1 + $0x1c0] ss:$8 sps:$4 sm:$0xff]   ;;  %v2832_v57 = vld [vmem:[%s4014_s1 + $0x1b4] ss:$8 sps:$4 sm:$0xff]   ;;  %v2835_v61 = vld [vmem:[%s4014_s1 + $0x1b0] ss:$8 sps:$4 sm:$0xff]   ;;  %v178_v1 = vcombine.high %v36_v52, %v36_v52 }
  0x13   :  { %884 = vmatpush1.bf16.msra.mxu0 %v2786_v18  ;;  %v2836_v62 = vld [vmem:[%s4014_s1 + $0xa4] ss:$8 sps:$4 sm:$0xff]   ;;  %v2840_v2 = vld [vmem:[%s4014_s1 + $0xa0] ss:$8 sps:$4 sm:$0xff]   ;;  %v2842_v4 = vld [vmem:[%s4014_s1 + $0x94] ss:$8 sps:$4 sm:$0xff]  }
  0x14   :  { %925 = vmatpush1.bf16.msra.mxu1 %v2787_v19  ;;  %885 = vmatprep.subr.bf16.mxu0 %v2788_v20  ;;  %v193_v58 = vcombine.high %v185_v54, %v185_v54  ;;  %v2838_v63 = vld [vmem:[%s4014_s1 + $0x1a4] ss:$8 sps:$4 sm:$0xff]   ;;  %v2841_v3 = vld [vmem:[%s4014_s1 + $0x1a0] ss:$8 sps:$4 sm:$0xff]   ;;  %v2844_v5 = vld [vmem:[%s4014_s1 + $0x194] ss:$8 sps:$4 sm:$0xff]   ;;  %v3256_v6 = vrot.slane %v178_v1, %v3206_v49  ;;  %v201_v13 = vrot.slane %v185_v54, %v3206_v49 }
  0x15   :  { %926 = vmatprep.subr.bf16.mxu1 %v2790_v21  ;;  %v2846_v7 = vld [vmem:[%s4014_s1 + $0x90] ss:$8 sps:$4 sm:$0xff]   ;;  %v2848_v9 = vld [vmem:[%s4014_s1 + $0x84] ss:$8 sps:$4 sm:$0xff]   ;;  %v2852_v12 = vld [vmem:[%s4014_s1 + $0x80] ss:$8 sps:$4 sm:$0xff]  }
  0x16   :  { %v215_v60 = vrot.slane %v193_v58, %v3206_v49  ;;  %v2847_v8 = vld [vmem:[%s4014_s1 + $0x190] ss:$8 sps:$4 sm:$0xff]   ;;  %v2850_v10 = vld [vmem:[%s4014_s1 + $0x184] ss:$8 sps:$4 sm:$0xff]   ;;  %v194_v11 = vcombine.high %v3256_v6, %v3256_v6  ;;  %v2853_v14 = vld [vmem:[%s4014_s1 + $0x180] ss:$8 sps:$4 sm:$0xff]   ;;  %v223_v18 = vcombine.high %v201_v13, %v201_v13 }
  0x17   :  { %886 = vmatpush1.bf16.msra.mxu0 %v2792_v22  ;;  %v2857_v15 = vld [vmem:[%s4014_s1 + $0x274] ss:$8 sps:$4 sm:$0xff]   ;;  %v2855_v19 = vld [vmem:[%s4014_s1 + $0x270] ss:$8 sps:$4 sm:$0xff]   ;;  %v2863_v21 = vld [vmem:[%s4014_s1 + $0x264] ss:$8 sps:$4 sm:$0xff]  }
  0x18   :  { %927 = vmatpush1.bf16.msra.mxu1 %v2793_v23  ;;  %887 = vmatprep.subr.bf16.mxu0 %v2794_v24  ;;  %v225_v0 = vcombine.high %v215_v60, %v215_v60  ;;  %v2860_v16 = vld [vmem:[%s4014_s1 + $0x374] ss:$8 sps:$4 sm:$0xff]   ;;  %v222_v17 = vrot.slane %v194_v11, %v3206_v49  ;;  %v2858_v20 = vld [vmem:[%s4014_s1 + $0x370] ss:$8 sps:$4 sm:$0xff]   ;;  %v2866_v22 = vld [vmem:[%s4014_s1 + $0x364] ss:$8 sps:$4 sm:$0xff]  }
  0x19   :  { %928 = vmatprep.subr.bf16.mxu1 %v2796_v25  ;;  %907 = vmatprep.mubr.bf16.mxu0 %v215_v60  ;;  %v2861_v24 = vld [vmem:[%s4014_s1 + $0x260] ss:$8 sps:$4 sm:$0xff]   ;;  %v2879_v36 = vld [vmem:[%s4014_s1 + $0x230] ss:$8 sps:$4 sm:$0xff]   ;;  %v2887_v38 = vld [vmem:[%s4014_s1 + $0x224] ss:$8 sps:$4 sm:$0xff]  }
  0x1a   :  { %948 = vmatprep.mubr.bf16.mxu1 %v225_v0  ;;  %v226_v23 = vcombine.high %v222_v17, %v222_v17  ;;  %v2864_v25 = vld [vmem:[%s4014_s1 + $0x360] ss:$8 sps:$4 sm:$0xff]   ;;  %v2882_v37 = vld [vmem:[%s4014_s1 + $0x330] ss:$8 sps:$4 sm:$0xff]   ;;  %v2893_v43 = vld [vmem:[%s4014_s1 + $0x214] ss:$8 sps:$4 sm:$0xff]  }
  0x1b   :  { %888 = vmatpush1.bf16.msra.mxu0 %v2798_v26  ;;  %v2869_v26 = vld [vmem:[%s4014_s1 + $0x254] ss:$8 sps:$4 sm:$0xff]   ;;  %v2903_v54 = vld [vmem:[%s4014_s1 + $0x2f0] ss:$8 sps:$4 sm:$0xff]   ;;  %v2909_v58 = vld [vmem:[%s4014_s1 + $0x2e0] ss:$8 sps:$4 sm:$0xff]  }
  0x1c   :  { %929 = vmatpush1.bf16.msra.mxu1 %v2799_v27  ;;  %889 = vmatprep.subr.bf16.mxu0 %v2800_v28  ;;  %v2872_v27 = vld [vmem:[%s4014_s1 + $0x354] ss:$8 sps:$4 sm:$0xff]   ;;  %v2867_v28 = vld [vmem:[%s4014_s1 + $0x250] ss:$8 sps:$4 sm:$0xff]  }
  0x1d   :  { %930 = vmatprep.subr.bf16.mxu1 %v2802_v29  ;;  %v2870_v29 = vld [vmem:[%s4014_s1 + $0x350] ss:$8 sps:$4 sm:$0xff]   ;;  %v2905_v52 = vld [vmem:[%s4014_s1 + $0x2f4] ss:$8 sps:$4 sm:$0xff]  }
  0x1e   :  { %v2917_v60 = vld [vmem:[%s4014_s1 + $0x2d4] ss:$8 sps:$4 sm:$0xff]  }
  0x1f   :  { %890 = vmatpush1.bf16.msra.mxu0 %v2804_v30  ;;  %v2875_v30 = vld [vmem:[%s4014_s1 + $0x244] ss:$8 sps:$4 sm:$0xff]  }
  0x20   :  { %931 = vmatpush1.bf16.msra.mxu1 %v2805_v31  ;;  %891 = vmatprep.subr.bf16.mxu0 %v2806_v32  ;;  %v2878_v31 = vld [vmem:[%s4014_s1 + $0x344] ss:$8 sps:$4 sm:$0xff]   ;;  %v2873_v32 = vld [vmem:[%s4014_s1 + $0x240] ss:$8 sps:$4 sm:$0xff]  }
  0x21   :  { %932 = vmatprep.subr.bf16.mxu1 %v2808_v33  ;;  %v2876_v33 = vld [vmem:[%s4014_s1 + $0x340] ss:$8 sps:$4 sm:$0xff]  }
  0x23   :  { %892 = vmatpush2.bf16.msra.mxu0 %v2810_v34  ;;  %v2881_v34 = vld [vmem:[%s4014_s1 + $0x234] ss:$8 sps:$4 sm:$0xff]  }
  0x24   :  { %933 = vmatpush2.bf16.msra.mxu1 %v2811_v35  ;;  %893 = vmatprep.subr.bf16.mxu0 %v2812_v39  ;;  %v2884_v35 = vld [vmem:[%s4014_s1 + $0x334] ss:$8 sps:$4 sm:$0xff]   ;;  %v2890_v39 = vld [vmem:[%s4014_s1 + $0x324] ss:$8 sps:$4 sm:$0xff]  }
  0x25   :  { %934 = vmatprep.subr.bf16.mxu1 %v2814_v40  ;;  %v2885_v40 = vld [vmem:[%s4014_s1 + $0x220] ss:$8 sps:$4 sm:$0xff]  }
  0x27   :  { %894 = vmatpush2.bf16.msra.mxu0 %v2816_v41  ;;  %v2888_v41 = vld [vmem:[%s4014_s1 + $0x320] ss:$8 sps:$4 sm:$0xff]  }
  0x28   :  { %935 = vmatpush2.bf16.msra.mxu1 %v2817_v44  ;;  %895 = vmatprep.subr.bf16.mxu0 %v2818_v45  ;;  %v2896_v44 = vld [vmem:[%s4014_s1 + $0x314] ss:$8 sps:$4 sm:$0xff]   ;;  %v2891_v45 = vld [vmem:[%s4014_s1 + $0x210] ss:$8 sps:$4 sm:$0xff]  }
  0x29   :  { %936 = vmatprep.subr.bf16.mxu1 %v2820_v46  ;;  %v2894_v46 = vld [vmem:[%s4014_s1 + $0x310] ss:$8 sps:$4 sm:$0xff]  }
  0x2b   :  { %896 = vmatpush2.bf16.msra.mxu0 %v2822_v47  ;;  %v2899_v47 = vld [vmem:[%s4014_s1 + $0x204] ss:$8 sps:$4 sm:$0xff]  }
  0x2c   :  { %937 = vmatpush2.bf16.msra.mxu1 %v2823_v48  ;;  %897 = vmatprep.subr.bf16.mxu0 %v2824_v50  ;;  %v2902_v48 = vld [vmem:[%s4014_s1 + $0x304] ss:$8 sps:$4 sm:$0xff]   ;;  %v2897_v50 = vld [vmem:[%s4014_s1 + $0x200] ss:$8 sps:$4 sm:$0xff]  }
  0x2d   :  { %938 = vmatprep.subr.bf16.mxu1 %v2826_v51  ;;  %v2900_v51 = vld [vmem:[%s4014_s1 + $0x300] ss:$8 sps:$4 sm:$0xff]  }
  0x2f   :  { %898 = vmatpush2.bf16.msra.mxu0 %v2828_v53  ;;  %v2908_v53 = vld [vmem:[%s4014_s1 + $0x3f4] ss:$8 sps:$4 sm:$0xff]  }
  0x30   :  { %939 = vmatpush2.bf16.msra.mxu1 %v2829_v55  ;;  %899 = vmatprep.subr.bf16.mxu0 %v2830_v56  ;;  %v2906_v55 = vld [vmem:[%s4014_s1 + $0x3f0] ss:$8 sps:$4 sm:$0xff]   ;;  %v2911_v56 = vld [vmem:[%s4014_s1 + $0x2e4] ss:$8 sps:$4 sm:$0xff]  }
  0x31   :  { %940 = vmatprep.subr.bf16.mxu1 %v2832_v57  ;;  %v2914_v57 = vld [vmem:[%s4014_s1 + $0x3e4] ss:$8 sps:$4 sm:$0xff]  }
  0x33   :  { %900 = vmatpush2.bf16.msra.mxu0 %v2834_v59  ;;  %v2912_v59 = vld [vmem:[%s4014_s1 + $0x3e0] ss:$8 sps:$4 sm:$0xff]  }
  0x34   :  { %941 = vmatpush2.bf16.msra.mxu1 %v2835_v61  ;;  %901 = vmatprep.subr.bf16.mxu0 %v2836_v62  ;;  %v2920_v61 = vld [vmem:[%s4014_s1 + $0x3d4] ss:$8 sps:$4 sm:$0xff]  }
  0x35   :  { %942 = vmatprep.subr.bf16.mxu1 %v2838_v63 }
  0x37   :  { %902 = vmatpush2.bf16.msra.mxu0 %v2840_v2 }
  0x38   :  { %943 = vmatpush2.bf16.msra.mxu1 %v2841_v3  ;;  %903 = vmatprep.subr.bf16.mxu0 %v2842_v4 }
  0x39   :  { %944 = vmatprep.subr.bf16.mxu1 %v2844_v5 }
  0x3b   :  { %904 = vmatpush2.bf16.msra.mxu0 %v2846_v7 }
  0x3c   :  { %945 = vmatpush2.bf16.msra.mxu1 %v2847_v8  ;;  %905 = vmatprep.subr.bf16.mxu0 %v2848_v9 }
  0x3d   :  { %946 = vmatprep.subr.bf16.mxu1 %v2850_v10 }
  0x3f   :  { %906 = vmatpush2.bf16.msra.mxu0 %v2852_v12 }
  0x40   :  { %947 = vmatpush2.bf16.msra.mxu1 %v2853_v14  ;;  %957 = vmatprep.subr.bf16.mxu0 %v2857_v15 }
  0x41   :  { %998 = vmatprep.subr.bf16.mxu1 %v2860_v16 }
  0x42   :  { %908 = vmatmul.mubr.bf16.vlgmr.msra.gmra.mxu0 %v201_v13 }
  0x43   :  { %949 = vmatmul.mubr.bf16.vlgmr.msra.gmra.mxu1 %v223_v18  ;;  %958 = vmatpush1.bf16.msra.mxu0 %v2855_v19 }
  0x44   :  { %999 = vmatpush1.bf16.msra.mxu1 %v2858_v20  ;;  %959 = vmatprep.subr.bf16.mxu0 %v2863_v21 }
  0x45   :  { %1000 = vmatprep.subr.bf16.mxu1 %v2866_v22  ;;  %989 = vmatprep.mubr.bf16.mxu0 %v222_v17 }
  0x46   :  { %1030 = vmatprep.mubr.bf16.mxu1 %v226_v23 }
  0x47   :  { %960 = vmatpush1.bf16.msra.mxu0 %v2861_v24 }
  0x48   :  { %1001 = vmatpush1.bf16.msra.mxu1 %v2864_v25  ;;  %961 = vmatprep.subr.bf16.mxu0 %v2869_v26 }
  0x49   :  { %1002 = vmatprep.subr.bf16.mxu1 %v2872_v27 }
  0x4b   :  { %962 = vmatpush1.bf16.msra.mxu0 %v2867_v28 }
  0x4c   :  { %1003 = vmatpush1.bf16.msra.mxu1 %v2870_v29  ;;  %963 = vmatprep.subr.bf16.mxu0 %v2875_v30 }
  0x4d   :  { %1004 = vmatprep.subr.bf16.mxu1 %v2878_v31 }
  0x4f   :  { %964 = vmatpush1.bf16.msra.mxu0 %v2873_v32 }
  0x50   :  { %1005 = vmatpush1.bf16.msra.mxu1 %v2876_v33  ;;  %965 = vmatprep.subr.bf16.mxu0 %v2881_v34 }
  0x51   :  { %1006 = vmatprep.subr.bf16.mxu1 %v2884_v35 }
  0x53   :  { %966 = vmatpush1.bf16.msra.mxu0 %v2879_v36 }
  0x54   :  { %1007 = vmatpush1.bf16.msra.mxu1 %v2882_v37  ;;  %967 = vmatprep.subr.bf16.mxu0 %v2887_v38 }
  0x55   :  { %1008 = vmatprep.subr.bf16.mxu1 %v2890_v39 }
  0x57   :  { %968 = vmatpush1.bf16.msra.mxu0 %v2885_v40 }
  0x58   :  { %1009 = vmatpush1.bf16.msra.mxu1 %v2888_v41  ;;  %969 = vmatprep.subr.bf16.mxu0 %v2893_v43 }
  0x59   :  { %1010 = vmatprep.subr.bf16.mxu1 %v2896_v44 }
  0x5b   :  { %970 = vmatpush1.bf16.msra.mxu0 %v2891_v45 }
  0x5c   :  { %1011 = vmatpush1.bf16.msra.mxu1 %v2894_v46  ;;  %971 = vmatprep.subr.bf16.mxu0 %v2899_v47 }
  0x5d   :  { %1012 = vmatprep.subr.bf16.mxu1 %v2902_v48 }
  0x5f   :  { %972 = vmatpush1.bf16.msra.mxu0 %v2897_v50 }
  0x60   :  { %1013 = vmatpush1.bf16.msra.mxu1 %v2900_v51  ;;  %973 = vmatprep.subr.bf16.mxu0 %v2905_v52 }
  0x61   :  { %1014 = vmatprep.subr.bf16.mxu1 %v2908_v53 }
  0x63   :  { %974 = vmatpush2.bf16.msra.mxu0 %v2903_v54 }
  0x64   :  { %1015 = vmatpush2.bf16.msra.mxu1 %v2906_v55  ;;  %975 = vmatprep.subr.bf16.mxu0 %v2911_v56 }
  0x65   :  { %1016 = vmatprep.subr.bf16.mxu1 %v2914_v57 }
  0x66   :  { %16 = vsyncpa [#allocation3], 0  ;;  %v2915_v62 = vld [vmem:[%s4014_s1 + $0x2d0] ss:$8 sps:$4 sm:$0xff]   ;;  %v2923_v0 = vld [vmem:[%s4014_s1 + $0x2c4] ss:$8 sps:$4 sm:$0xff]   ;;  %v208_v19 = vrot.slane %v3256_v6, %v3206_v49 }
  0x67   :  { %976 = vmatpush2.bf16.msra.mxu0 %v2909_v58  ;;  %v2918_v63 = vld [vmem:[%s4014_s1 + $0x3d0] ss:$8 sps:$4 sm:$0xff]   ;;  %v2926_v1 = vld [vmem:[%s4014_s1 + $0x3c4] ss:$8 sps:$4 sm:$0xff]   ;;  %v2921_v2 = vld [vmem:[%s4014_s1 + $0x2c0] ss:$8 sps:$4 sm:$0xff]  }
  0x68   :  { %1017 = vmatpush2.bf16.msra.mxu1 %v2912_v59  ;;  %977 = vmatprep.subr.bf16.mxu0 %v2917_v60  ;;  %v2924_v3 = vld [vmem:[%s4014_s1 + $0x3c0] ss:$8 sps:$4 sm:$0xff]   ;;  %v2929_v4 = vld [vmem:[%s4014_s1 + $0x2b4] ss:$8 sps:$4 sm:$0xff]   ;;  %v2927_v7 = vld [vmem:[%s4014_s1 + $0x2b0] ss:$8 sps:$4 sm:$0xff]   ;;  %v224_v22 = vcombine.high %v208_v19, %v208_v19 }
  0x69   :  { %1018 = vmatprep.subr.bf16.mxu1 %v2920_v61  ;;  %v2932_v5 = vld [vmem:[%s4014_s1 + $0x3b4] ss:$8 sps:$4 sm:$0xff]   ;;  %v2930_v8 = vld [vmem:[%s4014_s1 + $0x3b0] ss:$8 sps:$4 sm:$0xff]   ;;  %v2935_v9 = vld [vmem:[%s4014_s1 + $0x2a4] ss:$8 sps:$4 sm:$0xff]  }
  0x6a   :  { %v2938_v10 = vld [vmem:[%s4014_s1 + $0x3a4] ss:$8 sps:$4 sm:$0xff]   ;;  %v2933_v11 = vld [vmem:[%s4014_s1 + $0x2a0] ss:$8 sps:$4 sm:$0xff]   ;;  %v2941_v13 = vld [vmem:[%s4014_s1 + $0x294] ss:$8 sps:$4 sm:$0xff]  }
  0x6b   :  { %978 = vmatpush2.bf16.msra.mxu0 %v2915_v62  ;;  %v2936_v12 = vld [vmem:[%s4014_s1 + $0x3a0] ss:$8 sps:$4 sm:$0xff]   ;;  %v2944_v14 = vld [vmem:[%s4014_s1 + $0x394] ss:$8 sps:$4 sm:$0xff]   ;;  %v2939_v15 = vld [vmem:[%s4014_s1 + $0x290] ss:$8 sps:$4 sm:$0xff]  }
  0x6c   :  { %1019 = vmatpush2.bf16.msra.mxu1 %v2918_v63  ;;  %979 = vmatprep.subr.bf16.mxu0 %v2923_v0  ;;  %v2942_v16 = vld [vmem:[%s4014_s1 + $0x390] ss:$8 sps:$4 sm:$0xff]   ;;  %v2947_v17 = vld [vmem:[%s4014_s1 + $0x284] ss:$8 sps:$4 sm:$0xff]   ;;  %v2945_v20 = vld [vmem:[%s4014_s1 + $0x280] ss:$8 sps:$4 sm:$0xff]  }
  0x6d   :  { %1020 = vmatprep.subr.bf16.mxu1 %v2926_v1  ;;  %v2950_v18 = vld [vmem:[%s4014_s1 + $0x384] ss:$8 sps:$4 sm:$0xff]   ;;  %v2948_v21 = vld [vmem:[%s4014_s1 + $0x380] ss:$8 sps:$4 sm:$0xff]   ;;  %v2951_v6 = vld [vmem:[%s4016_s3 + $0x78] sm:$0xff]   ;;  %v3559_v60 = vsub.s32 0, %v3188_v42 }
  0x6e   :  { %v2952_v23 = vld [vmem:[%s4016_s3 + $0x38] sm:$0xff]   ;;  %v2953_v24 = vld [vmem:[%s4016_s3 + $0x70] sm:$0xff]   ;;  %v2955_v26 = vld [vmem:[%s4016_s3 + $0x68] sm:$0xff]   ;;  %v3565_v62 = vsub.s32 1, %v3188_v42 }
  0x6f   :  { %980 = vmatpush2.bf16.msra.mxu0 %v2921_v2  ;;  %v2954_v25 = vld [vmem:[%s4016_s3 + $0x30] sm:$0xff]   ;;  %v2956_v27 = vld [vmem:[%s4016_s3 + $0x28] sm:$0xff]   ;;  %v2957_v28 = vld [vmem:[%s4016_s3 + $0x60] sm:$0xff]  }
  0x70   :  { %1021 = vmatpush2.bf16.msra.mxu1 %v2924_v3  ;;  %981 = vmatprep.subr.bf16.mxu0 %v2929_v4  ;;  %v2958_v29 = vld [vmem:[%s4016_s3 + $0x20] sm:$0xff]   ;;  %v2959_v30 = vld [vmem:[%s4016_s3 + $0x58] sm:$0xff]   ;;  %v2961_v32 = vld [vmem:[%s4016_s3 + $0x50] sm:$0xff]  }
  0x71   :  { %1022 = vmatprep.subr.bf16.mxu1 %v2932_v5  ;;  %v2960_v31 = vld [vmem:[%s4016_s3 + $0x18] sm:$0xff]   ;;  %v2962_v33 = vld [vmem:[%s4016_s3 + $0x10] sm:$0xff]   ;;  %v2963_v34 = vld [vmem:[%s4016_s3 + $0x48] sm:$0xff]  }
  0x72   :  { %v2964_v35 = vld [vmem:[%s4016_s3 + $0x8] sm:$0xff]   ;;  %v2965_v36 = vld [vmem:[%s4016_s3 + $0x40] sm:$0xff]   ;;  %v2967_v38 = vld [vmem:[%s4018_s5 + $0x70] ss:$8 sps:$4 sm:$0xff]  }
  0x73   :  { %982 = vmatpush2.bf16.msra.mxu0 %v2927_v7  ;;  %v2966_v37 = vld [vmem:[%s4016_s3] sm:$0xff]   ;;  %v2969_v39 = vld [vmem:[%s4018_s5 + $0x74] ss:$8 sps:$4 sm:$0xff]   ;;  %v2973_v44 = vld [vmem:[%s4018_s5 + $0x50] ss:$8 sps:$4 sm:$0xff]  }
  0x74   :  { %1023 = vmatpush2.bf16.msra.mxu1 %v2930_v8  ;;  %983 = vmatprep.subr.bf16.mxu0 %v2935_v9  ;;  %v2972_v40 = vld [vmem:[%s4018_s5 + $0x64] ss:$8 sps:$4 sm:$0xff]   ;;  %v2970_v41 = vld [vmem:[%s4018_s5 + $0x60] ss:$8 sps:$4 sm:$0xff]   ;;  %v2975_v43 = vld [vmem:[%s4018_s5 + $0x54] ss:$8 sps:$4 sm:$0xff]  }
  0x75   :  { %1024 = vmatprep.subr.bf16.mxu1 %v2938_v10  ;;  %v2978_v45 = vld [vmem:[%s4018_s5 + $0x44] ss:$8 sps:$4 sm:$0xff]   ;;  %v2976_v46 = vld [vmem:[%s4018_s5 + $0x40] ss:$8 sps:$4 sm:$0xff]   ;;  %v2981_v47 = vld [vmem:[%s4018_s5 + $0x34] ss:$8 sps:$4 sm:$0xff]  }
  0x76   :  { %v2979_v48 = vld [vmem:[%s4018_s5 + $0x30] ss:$8 sps:$4 sm:$0xff]   ;;  %v2984_v50 = vld [vmem:[%s4018_s5 + $0x24] ss:$8 sps:$4 sm:$0xff]   ;;  %v2982_v51 = vld [vmem:[%s4018_s5 + $0x20] ss:$8 sps:$4 sm:$0xff]  }
  0x77   :  { %984 = vmatpush2.bf16.msra.mxu0 %v2933_v11  ;;  %v165_v61 = vld [vmem:[%s4015_s2] sm:$0x3] }
  0x78   :  { %1025 = vmatpush2.bf16.msra.mxu1 %v2936_v12  ;;  %985 = vmatprep.subr.bf16.mxu0 %v2941_v13  ;;  %v170_v63 = vrot.slane %v165_v61, %v3559_v60  ;;  %v174_v0 = vrot.slane %v165_v61, %v3565_v62  ;;  %v1373_v61 = vld [vmem:[%s4020_s7] sm:$0xff] }
  0x79   :  { %1026 = vmatprep.subr.bf16.mxu1 %v2944_v14 }
  0x7b   :  { %986 = vmatpush2.bf16.msra.mxu0 %v2939_v15 }
  0x7c   :  { %1027 = vmatpush2.bf16.msra.mxu1 %v2942_v16  ;;  %987 = vmatprep.subr.bf16.mxu0 %v2947_v17 }
  0x7d   :  { %1028 = vmatprep.subr.bf16.mxu1 %v2950_v18 }
  0x7f   :  { %988 = vmatpush2.bf16.msra.mxu0 %v2945_v20 }
  0x80   :  { %1029 = vmatpush2.bf16.msra.mxu1 %v2948_v21  ;;  %2733 = vmatprep.subr.bf16.mxu0 %v2951_v6  ;;  %v2985_v6 = vld [vmem:[%s4018_s5 + $0x10] ss:$8 sps:$4 sm:$0xff]  }
  0x81   :  { %1328 = vmatprep.subr.bf16.mxu1 %v2969_v39  ;;  %v1417_v39 = vld [vmem:[%s4020_s7 + $0x160] sm:$0xff] }
  0x82   :  { %990 = vmatmul.mubr.bf16.vlgmr.msra.gmra.mxu0 %v208_v19 }
  0x83   :  { %1031 = vmatmul.mubr.bf16.vlgmr.msra.gmra.mxu1 %v224_v22  ;;  %2734 = vmatpush3.bf16.msra.mxu0 %v2952_v23  ;;  %v2987_v22 = vld [vmem:[%s4018_s5 + $0x14] ss:$8 sps:$4 sm:$0xff]   ;;  %v2990_v23 = vld [vmem:[%s4018_s5 + $0x4] ss:$8 sps:$4 sm:$0xff]  }
  0x84   :  { %2735 = vmatprep.subr.bf16.mxu0 %v2953_v24  ;;  %1329 = vmatpush1.bf16.msra.mxu1 %v2967_v38  ;;  %v2988_v24 = vld [vmem:[%s4018_s5] ss:$8 sps:$4 sm:$0xff]  }
  0x85   :  { %1330 = vmatprep.subr.bf16.mxu1 %v2972_v40  ;;  %v1413_v38 = vld [vmem:[%s4020_s7 + $0x140] sm:$0xff] }
  0x86   :  { %v2642_v40 = vcombine.high %v1413_v38, %v1417_v39 }
  0x87   :  { %2736 = vmatpush3.bf16.msra.mxu0 %v2954_v25  ;;  %v3014_v25 = vmov 0  }
  0x88   :  { %2737 = vmatprep.subr.bf16.mxu0 %v2955_v26  ;;  %1331 = vmatpush1.bf16.msra.mxu1 %v2970_v41  ;;  %v1429_v26 = vld [vmem:[%s4020_s7 + $0x1c0] sm:$0xff]  ;;  %v2641_v41 = vcombine.low %v1413_v38, %v1417_v39 }
  0x89   :  { %1332 = vmatprep.subr.bf16.mxu1 %v2975_v43  ;;  %1360 = vmatprep.mubr.bf16.mxu1 %v3014_v25  ;;  %v1405_v43 = vld [vmem:[%s4020_s7 + $0x100] sm:$0xff] }
  0x8b   :  { %2738 = vmatpush3.bf16.msra.mxu0 %v2956_v27  ;;  %v1433_v27 = vld [vmem:[%s4020_s7 + $0x1e0] sm:$0xff] }
  0x8c   :  { %2739 = vmatprep.subr.bf16.mxu0 %v2957_v28  ;;  %1333 = vmatpush1.bf16.msra.mxu1 %v2973_v44  ;;  %v3590_v28 = vld [vmem:[%s4020_s7 + $0x1c8] sm:$0xff]  ;;  %v1409_v44 = vld [vmem:[%s4020_s7 + $0x120] sm:$0xff] }
  0x8d   :  { %1334 = vmatprep.subr.bf16.mxu1 %v2978_v45  ;;  %v2634_v45 = vcombine.high %v1405_v43, %v1409_v44 }
  0x8f   :  { %2740 = vmatpush3.bf16.msra.mxu0 %v2958_v29  ;;  %v2657_v29 = vcombine.low %v1429_v26, %v1433_v27 }
  0x90   :  { %2741 = vmatprep.subr.bf16.mxu0 %v2959_v30  ;;  %1335 = vmatpush1.bf16.msra.mxu1 %v2976_v46  ;;  %v2658_v30 = vcombine.high %v1429_v26, %v1433_v27  ;;  %v2633_v46 = vcombine.low %v1405_v43, %v1409_v44  ;;  %v2568_v27 = vld [vmem:[%s4017_s4] ss:$0 sm:$0xff] }
  0x91   :  { %1336 = vmatprep.subr.bf16.mxu1 %v2981_v47  ;;  %v1397_v47 = vld [vmem:[%s4020_s7 + $0xc0] sm:$0xff] }
  0x93   :  { %2742 = vmatpush3.bf16.msra.mxu0 %v2960_v31  ;;  %v3595_v31 = vld [vmem:[%s4020_s7 + $0x1e8] sm:$0xff] }
  0x94   :  { %2743 = vmatprep.subr.bf16.mxu0 %v2961_v32  ;;  %1337 = vmatpush1.bf16.msra.mxu1 %v2979_v48  ;;  %v1421_v32 = vld [vmem:[%s4020_s7 + $0x180] sm:$0xff] }
  0x95   :  { %1338 = vmatprep.subr.bf16.mxu1 %v2984_v50  ;;  %v1401_v48 = vld [vmem:[%s4020_s7 + $0xe0] sm:$0xff] }
  0x96   :  { %v2626_v50 = vcombine.high %v1397_v47, %v1401_v48 }
  0x97   :  { %2744 = vmatpush3.bf16.msra.mxu0 %v2962_v33  ;;  %v1425_v33 = vld [vmem:[%s4020_s7 + $0x1a0] sm:$0xff] }
  0x98   :  { %2745 = vmatprep.subr.bf16.mxu0 %v2963_v34  ;;  %1339 = vmatpush1.bf16.msra.mxu1 %v2982_v51  ;;  %v2659_v34 = vcombine.low %v3590_v28, %v3595_v31  ;;  %v2625_v51 = vcombine.low %v1397_v47, %v1401_v48 }
  0x99   :  { %1340 = vmatprep.subr.bf16.mxu1 %v2987_v22 }
  0x9b   :  { %2746 = vmatpush3.bf16.msra.mxu0 %v2964_v35  ;;  %v2660_v35 = vcombine.high %v3590_v28, %v3595_v31  ;;  %v1398_v28 = vld [vmem:[%s4020_s7 + $0xc8] sm:$0xff] }
  0x9c   :  { %2747 = vmatprep.subr.bf16.mxu0 %v2965_v36  ;;  %1341 = vmatpush1.bf16.msra.mxu1 %v2985_v6  ;;  %v2650_v36 = vcombine.high %v1421_v32, %v1425_v33  ;;  %v1453_v6 = vld [vmem:[%s4020_s7 + $0x280] sm:$0xff]  ;;  %v1402_v31 = vld [vmem:[%s4020_s7 + $0xe8] sm:$0xff] }
  0x9d   :  { %1342 = vmatprep.subr.bf16.mxu1 %v2990_v23  ;;  %v1457_v23 = vld [vmem:[%s4020_s7 + $0x2a0] sm:$0xff] }
  0x9e   :  { %v2681_v25 = vcombine.low %v1453_v6, %v1457_v23 }
  0x9f   :  { %2748 = vmatpush3.bf16.msra.mxu0 %v2966_v37  ;;  %v2649_v37 = vcombine.low %v1421_v32, %v1425_v33  ;;  %v1422_v33 = vld [vmem:[%s4020_s7 + $0x188] sm:$0xff] }
  0xa0   :  { %1343 = vmatpush1.bf16.msra.mxu1 %v2988_v24  ;;  %2183 = vmatprep.subr.bf16.mxu0 %v2658_v30  ;;  %v2682_v24 = vcombine.high %v1453_v6, %v1457_v23  ;;  %v1458_v6 = vld [vmem:[%s4020_s7 + $0x2a8] sm:$0xff] }
  0xa1   :  { %2224 = vmatprep.subr.bf16.mxu1 %v2660_v35  ;;  %v1426_v35 = vld [vmem:[%s4020_s7 + $0x1a8] sm:$0xff] }
  0xa2   :  { %v2652_v39 = vcombine.high %v1422_v33, %v1426_v35  ;;  %v2651_v43 = vcombine.low %v1422_v33, %v1426_v35 }
 0x102   :  { %v909_v52 = vpop.f32.mrf.mxu0 }
 0x103   :  { %v950_v53 = vpop.f32.mrf.mxu1  ;;  %v910_v1 = vadd.f32 %v909_v52, %v170_v63  ;;  %v1389_v52 = vld [vmem:[%s4020_s7 + $0x80] sm:$0xff] }
 0x104   :  { %v911_v54 = vpop.f32.mrf.mxu0  ;;  %v1377_v63 = vld [vmem:[%s4020_s7 + $0x20] sm:$0xff] }
 0x105   :  { %v952_v55 = vpop.f32.mrf.mxu1  ;;  %v912_v2 = vadd.f32 %v911_v54, %v174_v0  ;;  %v951_v3 = vadd.f32 %v950_v53, %v910_v1  ;;  %v1393_v53 = vld [vmem:[%s4020_s7 + $0xa0] sm:$0xff]  ;;  %v2602_v0 = vcombine.high %v1373_v61, %v1377_v63  ;;  %v2601_v1 = vcombine.low %v1373_v61, %v1377_v63  ;;  %v1378_v61 = vld [vmem:[%s4020_s7 + $0x28] sm:$0xff] }
 0x106   :  { %v913_v56 = vpop.f32.mrf.mxu0  ;;  %v2618_v54 = vcombine.high %v1389_v52, %v1393_v53 }
 0x107   :  { %v954_v57 = vpop.f32.mrf.mxu1  ;;  %v953_v7 = vadd.f32 %v952_v55, %v912_v2  ;;  %v2617_v55 = vcombine.low %v1389_v52, %v1393_v53  ;;  %v1381_v56 = vld [vmem:[%s4020_s7 + $0x40] sm:$0xff]  ;;  %v1394_v52 = vld [vmem:[%s4020_s7 + $0xa8] sm:$0xff]  ;;  %v2627_v53 = vcombine.low %v1398_v28, %v1402_v31 }
 0x108   :  { %v914_v58 = vpop.f32.mrf.mxu0  ;;  %v1385_v57 = vld [vmem:[%s4020_s7 + $0x60] sm:$0xff] }
 0x109   :  { %v955_v59 = vpop.f32.mrf.mxu1  ;;  %v2610_v58 = vcombine.high %v1381_v56, %v1385_v57  ;;  %v1493_v2 = vld [vmem:[%s4020_s7 + $0x3c0] sm:$0xff] }
 0x10a   :  { %v2609_v59 = vcombine.low %v1381_v56, %v1385_v57  ;;  %v1386_v56 = vld [vmem:[%s4020_s7 + $0x68] sm:$0xff] }
 0x142   :  { %v991_v4 = vpop.f32.mrf.mxu0 }
 0x143   :  { %v1032_v5 = vpop.f32.mrf.mxu1  ;;  %v992_v8 = vadd.f32 %v991_v4, %v951_v3  ;;  %v1497_v3 = vld [vmem:[%s4020_s7 + $0x3e0] sm:$0xff] }
 0x144   :  { %v993_v9 = vpop.f32.mrf.mxu0  ;;  %v2722_v4 = vcombine.high %v1493_v2, %v1497_v3 }
 0x145   :  { %v1034_v10 = vpop.f32.mrf.mxu1  ;;  %v1033_v11 = vadd.f32 %v1032_v5, %v992_v8  ;;  %v994_v12 = vadd.f32 %v993_v9, %v953_v7  ;;  %v2721_v5 = vcombine.low %v1493_v2, %v1497_v3  ;;  %v1485_v7 = vld [vmem:[%s4020_s7 + $0x380] sm:$0xff]  ;;  %v1498_v2 = vld [vmem:[%s4020_s7 + $0x3e8] sm:$0xff] }
 0x146   :  { %v995_v13 = vpop.f32.mrf.mxu0  ;;  %v1489_v8 = vld [vmem:[%s4020_s7 + $0x3a0] sm:$0xff] }
 0x147   :  { %v1036_v14 = vpop.f32.mrf.mxu1  ;;  %v1035_v15 = vadd.f32 %v1034_v10, %v994_v12  ;;  %v1039_v16 = vmax.f32 %v1033_v11, 0.0  ;;  %v2714_v9 = vcombine.high %v1485_v7, %v1489_v8  ;;  %v2713_v10 = vcombine.low %v1485_v7, %v1489_v8  ;;  %v1477_v11 = vld [vmem:[%s4020_s7 + $0x340] sm:$0xff]  ;;  %v1490_v7 = vld [vmem:[%s4020_s7 + $0x3a8] sm:$0xff] }
 0x148   :  { %v996_v17 = vpop.f32.mrf.mxu0  ;;  %v1481_v12 = vld [vmem:[%s4020_s7 + $0x360] sm:$0xff] }
 0x149   :  { %v1037_v18 = vpop.f32.mrf.mxu1  ;;  %v1040_v19 = vmax.f32 %v1035_v15, 0.0  ;;  %v1041_v21 = vpack.c.bf16 %v1039_v16, %v1039_v16  ;;  %v2706_v13 = vcombine.high %v1477_v11, %v1481_v12  ;;  %v2705_v14 = vcombine.low %v1477_v11, %v1481_v12  ;;  %v1469_v15 = vld [vmem:[%s4020_s7 + $0x300] sm:$0xff]  ;;  %v1482_v11 = vld [vmem:[%s4020_s7 + $0x368] sm:$0xff] }
 0x14a   :  { %v1473_v16 = vld [vmem:[%s4020_s7 + $0x320] sm:$0xff] }
 0x14b   :  { %v1042_v20 = vpack.c.bf16 %v1040_v19, %v1040_v19  ;;  %v2698_v17 = vcombine.high %v1469_v15, %v1473_v16  ;;  %v2697_v18 = vcombine.low %v1469_v15, %v1473_v16  ;;  %v1461_v19 = vld [vmem:[%s4020_s7 + $0x2c0] sm:$0xff]  ;;  %v1474_v15 = vld [vmem:[%s4020_s7 + $0x328] sm:$0xff] }
 0x14d   :  { %1210 = vmatprep.mubr.bf16.mxu0 %v1042_v20  ;;  %v1465_v20 = vld [vmem:[%s4020_s7 + $0x2e0] sm:$0xff] }
 0x14e   :  { %1211 = vmatmul.mubr.bf16.vlgmr.msra.gmra.mxu0 %v1041_v21  ;;  %v2690_v21 = vcombine.high %v1461_v19, %v1465_v20  ;;  %v2689_v22 = vcombine.low %v1461_v19, %v1465_v20  ;;  %v1466_v19 = vld [vmem:[%s4020_s7 + $0x2e8] sm:$0xff] }
 0x14f   :  { %2184 = vmatpush1.bf16.msra.mxu0 %v2657_v29 }
 0x150   :  { %2185 = vmatprep.subr.bf16.mxu0 %v2650_v36 }
 0x153   :  { %2186 = vmatpush1.bf16.msra.mxu0 %v2649_v37 }
 0x154   :  { %2187 = vmatprep.subr.bf16.mxu0 %v2642_v40  ;;  %v1414_v40 = vld [vmem:[%s4020_s7 + $0x148] sm:$0xff] }
 0x157   :  { %2188 = vmatpush1.bf16.msra.mxu0 %v2641_v41  ;;  %v1418_v41 = vld [vmem:[%s4020_s7 + $0x168] sm:$0xff] }
 0x158   :  { %2189 = vmatprep.subr.bf16.mxu0 %v2634_v45  ;;  %v2644_v44 = vcombine.high %v1414_v40, %v1418_v41  ;;  %v1406_v45 = vld [vmem:[%s4020_s7 + $0x108] sm:$0xff]  ;;  %v2643_v47 = vcombine.low %v1414_v40, %v1418_v41 }
 0x159   :  { %v1442_v41 = vld [vmem:[%s4020_s7 + $0x228] sm:$0xff] }
 0x15b   :  { %2190 = vmatpush1.bf16.msra.mxu0 %v2633_v46  ;;  %v1410_v46 = vld [vmem:[%s4020_s7 + $0x128] sm:$0xff] }
 0x15c   :  { %2191 = vmatprep.subr.bf16.mxu0 %v2626_v50  ;;  %v2636_v48 = vcombine.high %v1406_v45, %v1410_v46  ;;  %v2628_v50 = vcombine.high %v1398_v28, %v1402_v31  ;;  %v1436_v31 = vld [vmem:[%s4020_s7 + $0x1f8] sm:$0xff] }
 0x15f   :  { %2192 = vmatpush1.bf16.msra.mxu0 %v2625_v51  ;;  %v1390_v51 = vld [vmem:[%s4020_s7 + $0x88] sm:$0xff] }
 0x160   :  { %2193 = vmatprep.subr.bf16.mxu0 %v2618_v54  ;;  %v2620_v54 = vcombine.high %v1390_v51, %v1394_v52  ;;  %v2619_v57 = vcombine.low %v1390_v51, %v1394_v52  ;;  %v1236_v52 = vld [vmem:[%s4019_s6] sm:$0x3] }
 0x163   :  { %2194 = vmatpush1.bf16.msra.mxu0 %v2617_v55  ;;  %v1382_v55 = vld [vmem:[%s4020_s7 + $0x48] sm:$0xff] }
 0x164   :  { %2195 = vmatprep.subr.bf16.mxu0 %v2610_v58  ;;  %v2612_v58 = vcombine.high %v1382_v55, %v1386_v56  ;;  %v2611_v63 = vcombine.low %v1382_v55, %v1386_v56 }
 0x167   :  { %2196 = vmatpush1.bf16.msra.mxu0 %v2609_v59  ;;  %v1374_v59 = vld [vmem:[%s4020_s7 + $0x8] sm:$0xff] }
 0x168   :  { %2197 = vmatprep.subr.bf16.mxu0 %v2602_v0  ;;  %v2604_v0 = vcombine.high %v1374_v59, %v1378_v61  ;;  %v2603_v3 = vcombine.low %v1374_v59, %v1378_v61 }
 0x16b   :  { %2198 = vmatpush1.bf16.msra.mxu0 %v2601_v1  ;;  %v1494_v1 = vld [vmem:[%s4020_s7 + $0x3c8] sm:$0xff] }
 0x16c   :  { %2199 = vmatprep.subr.bf16.mxu0 %v2722_v4  ;;  %v2724_v4 = vcombine.high %v1494_v1, %v1498_v2  ;;  %v2723_v8 = vcombine.low %v1494_v1, %v1498_v2  ;;  %v1427_v2 = vld [vmem:[%s4020_s7 + $0x1b0] sm:$0xff] }
 0x16f   :  { %2200 = vmatpush2.bf16.msra.mxu0 %v2721_v5  ;;  %v1486_v5 = vld [vmem:[%s4020_s7 + $0x388] sm:$0xff] }
 0x170   :  { %2201 = vmatprep.subr.bf16.mxu0 %v2714_v9  ;;  %v2716_v9 = vcombine.high %v1486_v5, %v1490_v7  ;;  %v2715_v12 = vcombine.low %v1486_v5, %v1490_v7 }
 0x173   :  { %2202 = vmatpush2.bf16.msra.mxu0 %v2713_v10  ;;  %v1478_v10 = vld [vmem:[%s4020_s7 + $0x348] sm:$0xff] }
 0x174   :  { %2203 = vmatprep.subr.bf16.mxu0 %v2706_v13  ;;  %v2708_v13 = vcombine.high %v1478_v10, %v1482_v11  ;;  %v2707_v16 = vcombine.low %v1478_v10, %v1482_v11  ;;  %v1419_v11 = vld [vmem:[%s4020_s7 + $0x170] sm:$0xff] }
 0x177   :  { %2204 = vmatpush2.bf16.msra.mxu0 %v2705_v14  ;;  %v1470_v14 = vld [vmem:[%s4020_s7 + $0x308] sm:$0xff] }
 0x178   :  { %2205 = vmatprep.subr.bf16.mxu0 %v2698_v17  ;;  %v2700_v17 = vcombine.high %v1470_v14, %v1474_v15  ;;  %v2699_v20 = vcombine.low %v1470_v14, %v1474_v15 }
 0x17b   :  { %2206 = vmatpush2.bf16.msra.mxu0 %v2697_v18  ;;  %v1462_v18 = vld [vmem:[%s4020_s7 + $0x2c8] sm:$0xff] }
 0x17c   :  { %2207 = vmatprep.subr.bf16.mxu0 %v2690_v21  ;;  %v2692_v21 = vcombine.high %v1462_v18, %v1466_v19  ;;  %v2691_v23 = vcombine.low %v1462_v18, %v1466_v19  ;;  %v1407_v18 = vld [vmem:[%s4020_s7 + $0x110] sm:$0xff] }
 0x17d   :  { %v1411_v19 = vld [vmem:[%s4020_s7 + $0x130] sm:$0xff] }
 0x17f   :  { %2208 = vmatpush2.bf16.msra.mxu0 %v2689_v22  ;;  %v1454_v22 = vld [vmem:[%s4020_s7 + $0x288] sm:$0xff] }
 0x180   :  { %2209 = vmatprep.subr.bf16.mxu0 %v2682_v24  ;;  %v2684_v24 = vcombine.high %v1454_v22, %v1458_v6 }
 0x183   :  { %2210 = vmatpush2.bf16.msra.mxu0 %v2681_v25  ;;  %v2683_v25 = vcombine.low %v1454_v22, %v1458_v6 }
 0x20e   :  { %v2749_v26 = vpop.f32.mrf.mxu0 }
 0x210   :  { %v2750_v29 = vpop.f32.mrf.mxu0 }
 0x211   :  { %v2751_v30 = vadd.f32 %v2750_v29, %v2749_v26  ;;  %v1445_v26 = vld [vmem:[%s4020_s7 + $0x240] sm:$0xff]  ;;  %v1446_v29 = vld [vmem:[%s4020_s7 + $0x248] sm:$0xff] }
 0x212   :  { %v2752_v32 = vpop.f32.mrf.mxu0 }
 0x213   :  { %v1213_v36 = vadd.f32 %v2751_v30, %v2568_v27  ;;  %v1449_v27 = vld [vmem:[%s4020_s7 + $0x260] sm:$0xff]  ;;  %v1450_v32 = vld [vmem:[%s4020_s7 + $0x268] sm:$0xff] }
 0x214   :  { %v2753_v37 = vpop.f32.mrf.mxu0  ;;  %v2674_v30 = vcombine.high %v1445_v26, %v1449_v27  ;;  %v2673_v33 = vcombine.low %v1445_v26, %v1449_v27  ;;  %v2675_v35 = vcombine.low %v1446_v29, %v1450_v32  ;;  %v1403_v26 = vld [vmem:[%s4020_s7 + $0xf0] sm:$0xff]  ;;  %v1400_v27 = vld [vmem:[%s4020_s7 + $0xd8] sm:$0xff] }
 0x215   :  { %v1219_v38 = vpack.c.bf16 %v1213_v36, %v1213_v36  ;;  %1218 = vst [vmem:[#allocation2] sm:$0x3] %v1213_v36  ;;  %v2676_v36 = vcombine.high %v1446_v29, %v1450_v32  ;;  %v1437_v37 = vld [vmem:[%s4020_s7 + $0x200] sm:$0xff]  ;;  %v1404_v29 = vld [vmem:[%s4020_s7 + $0xf8] sm:$0xff] }
 0x216   :  { %2211 = vmatprep.subr.bf16.mxu0 %v2674_v30  ;;  %v2637_v30 = vcombine.low %v1407_v18, %v1411_v19 }
 0x217   :  { %1361 = vmatmul.mubr.bf16.vlgmr.msra.gmra.mxu1 %v1219_v38  ;;  %2212 = vmatpush2.bf16.msra.mxu0 %v2673_v33  ;;  %v1441_v38 = vld [vmem:[%s4020_s7 + $0x220] sm:$0xff] }
 0x218   :  { %2225 = vmatpush1.bf16.msra.mxu1 %v2659_v34  ;;  %v2635_v34 = vcombine.low %v1406_v45, %v1410_v46  ;;  %v2666_v40 = vcombine.high %v1437_v37, %v1441_v38  ;;  %v1431_v46 = vld [vmem:[%s4020_s7 + $0x1d0] sm:$0xff] }
 0x219   :  { %2226 = vmatprep.subr.bf16.mxu1 %v2652_v39  ;;  %v1438_v39 = vld [vmem:[%s4020_s7 + $0x208] sm:$0xff] }
 0x21a   :  { %v2668_v45 = vcombine.high %v1438_v39, %v1442_v41  ;;  %2213 = vmatprep.subr.bf16.mxu0 %v2666_v40 }
 0x21c   :  { %2227 = vmatpush1.bf16.msra.mxu1 %v2651_v43  ;;  %v2665_v43 = vcombine.low %v1437_v37, %v1441_v38  ;;  %v1395_v37 = vld [vmem:[%s4020_s7 + $0xb0] sm:$0xff]  ;;  %v1392_v38 = vld [vmem:[%s4020_s7 + $0x98] sm:$0xff] }
 0x21d   :  { %2228 = vmatprep.subr.bf16.mxu1 %v2644_v44  ;;  %v2667_v44 = vcombine.low %v1438_v39, %v1442_v41  ;;  %v1396_v39 = vld [vmem:[%s4020_s7 + $0xb8] sm:$0xff]  ;;  %v2631_v41 = vcombine.low %v1400_v27, %v1404_v29 }
 0x21e   :  { %2214 = vmatpush2.bf16.msra.mxu0 %v2665_v43 }
 0x220   :  { %2229 = vmatpush1.bf16.msra.mxu1 %v2643_v47  ;;  %v1435_v47 = vld [vmem:[%s4020_s7 + $0x1f0] sm:$0xff] }
 0x221   :  { %2230 = vmatprep.subr.bf16.mxu1 %v2636_v48  ;;  %v1432_v48 = vld [vmem:[%s4020_s7 + $0x1d8] sm:$0xff]  ;;  %v2662_v28 = vcombine.high %v1431_v46, %v1435_v47 }
 0x222   :  { %v2664_v51 = vcombine.high %v1432_v48, %v1436_v31 }
 0x223   :  { %2265 = vmatprep.subr.bf16.mxu0 %v2662_v28 }
 0x224   :  { %2231 = vmatpush1.bf16.msra.mxu1 %v2635_v34  ;;  %v2661_v34 = vcombine.low %v1431_v46, %v1435_v47  ;;  %v1387_v46 = vld [vmem:[%s4020_s7 + $0x70] sm:$0xff]  ;;  %v1384_v47 = vld [vmem:[%s4020_s7 + $0x58] sm:$0xff] }
 0x225   :  { %2232 = vmatprep.subr.bf16.mxu1 %v2628_v50  ;;  %v2663_v50 = vcombine.low %v1432_v48, %v1436_v31  ;;  %v1388_v48 = vld [vmem:[%s4020_s7 + $0x78] sm:$0xff]  ;;  %v2623_v31 = vcombine.low %v1392_v38, %v1396_v39 }
 0x228   :  { %2233 = vmatpush1.bf16.msra.mxu1 %v2627_v53  ;;  %v1241_v53 = vrot.slane %v1236_v52, %v3559_v60 }
 0x229   :  { %2234 = vmatprep.subr.bf16.mxu1 %v2620_v54  ;;  %v1245_v54 = vrot.slane %v1236_v52, %v3565_v62  ;;  %v1379_v52 = vld [vmem:[%s4020_s7 + $0x30] sm:$0xff] }
 0x22c   :  { %2235 = vmatpush1.bf16.msra.mxu1 %v2619_v57 }
 0x22d   :  { %2236 = vmatprep.subr.bf16.mxu1 %v2612_v58 }
 0x230   :  { %2237 = vmatpush1.bf16.msra.mxu1 %v2611_v63 }
 0x231   :  { %2238 = vmatprep.subr.bf16.mxu1 %v2604_v0  ;;  %v1423_v0 = vld [vmem:[%s4020_s7 + $0x190] sm:$0xff] }
 0x232   :  { %v2653_v14 = vcombine.low %v1423_v0, %v1427_v2 }
 0x234   :  { %2239 = vmatpush1.bf16.msra.mxu1 %v2603_v3  ;;  %v1424_v3 = vld [vmem:[%s4020_s7 + $0x198] sm:$0xff] }
 0x235   :  { %2240 = vmatprep.subr.bf16.mxu1 %v2724_v4  ;;  %v1428_v4 = vld [vmem:[%s4020_s7 + $0x1b8] sm:$0xff] }
 0x236   :  { %v2656_v10 = vcombine.high %v1424_v3, %v1428_v4  ;;  %v2655_v15 = vcombine.low %v1424_v3, %v1428_v4 }
 0x238   :  { %2241 = vmatpush2.bf16.msra.mxu1 %v2723_v8  ;;  %v1415_v8 = vld [vmem:[%s4020_s7 + $0x150] sm:$0xff] }
 0x239   :  { %2242 = vmatprep.subr.bf16.mxu1 %v2716_v9  ;;  %v2654_v9 = vcombine.high %v1423_v0, %v1427_v2  ;;  %v2645_v22 = vcombine.low %v1415_v8, %v1419_v11  ;;  %v1500_v0 = vld [vmem:[%s4020_s7 + $0x3f8] sm:$0xff] }
 0x23c   :  { %2243 = vmatpush2.bf16.msra.mxu1 %v2715_v12  ;;  %v1416_v12 = vld [vmem:[%s4020_s7 + $0x158] sm:$0xff] }
 0x23d   :  { %2244 = vmatprep.subr.bf16.mxu1 %v2708_v13  ;;  %v1420_v13 = vld [vmem:[%s4020_s7 + $0x178] sm:$0xff] }
 0x23e   :  { %v2647_v6 = vcombine.low %v1416_v12, %v1420_v13 }
 0x240   :  { %2245 = vmatpush2.bf16.msra.mxu1 %v2707_v16  ;;  %v2646_v16 = vcombine.high %v1415_v8, %v1419_v11  ;;  %v1491_v8 = vld [vmem:[%s4020_s7 + $0x3b0] sm:$0xff] }
 0x241   :  { %2246 = vmatprep.subr.bf16.mxu1 %v2700_v17  ;;  %v2648_v17 = vcombine.high %v1416_v12, %v1420_v13 }
 0x244   :  { %2247 = vmatpush2.bf16.msra.mxu1 %v2699_v20  ;;  %v1408_v20 = vld [vmem:[%s4020_s7 + $0x118] sm:$0xff] }
 0x245   :  { %2248 = vmatprep.subr.bf16.mxu1 %v2692_v21  ;;  %v1412_v21 = vld [vmem:[%s4020_s7 + $0x138] sm:$0xff] }
 0x246   :  { %v2639_v32 = vcombine.low %v1408_v20, %v1412_v21 }
 0x248   :  { %2249 = vmatpush2.bf16.msra.mxu1 %v2691_v23  ;;  %v2638_v23 = vcombine.high %v1407_v18, %v1411_v19  ;;  %v1484_v18 = vld [vmem:[%s4020_s7 + $0x378] sm:$0xff] }
 0x249   :  { %2250 = vmatprep.subr.bf16.mxu1 %v2684_v24  ;;  %v2640_v24 = vcombine.high %v1408_v20, %v1412_v21 }
 0x24c   :  { %2251 = vmatpush2.bf16.msra.mxu1 %v2683_v25  ;;  %v1399_v25 = vld [vmem:[%s4020_s7 + $0xd0] sm:$0xff] }
 0x24d   :  { %2252 = vmatprep.subr.bf16.mxu1 %v2676_v36  ;;  %v2630_v33 = vcombine.high %v1399_v25, %v1403_v26  ;;  %v1391_v36 = vld [vmem:[%s4020_s7 + $0x90] sm:$0xff]  ;;  %v2629_v40 = vcombine.low %v1399_v25, %v1403_v26  ;;  %v1476_v25 = vld [vmem:[%s4020_s7 + $0x338] sm:$0xff] }
 0x24e   :  { %v2622_v43 = vcombine.high %v1391_v36, %v1395_v37  ;;  %v2621_v28 = vcombine.low %v1391_v36, %v1395_v37  ;;  %v1468_v36 = vld [vmem:[%s4020_s7 + $0x2f8] sm:$0xff] }
 0x250   :  { %2253 = vmatpush2.bf16.msra.mxu1 %v2675_v35  ;;  %v2632_v35 = vcombine.high %v1400_v27, %v1404_v29 }
 0x251   :  { %2254 = vmatprep.subr.bf16.mxu1 %v2668_v45  ;;  %v1383_v45 = vld [vmem:[%s4020_s7 + $0x50] sm:$0xff] }
 0x254   :  { %2255 = vmatpush2.bf16.msra.mxu1 %v2667_v44  ;;  %v2624_v44 = vcombine.high %v1392_v38, %v1396_v39 }
 0x255   :  { %2306 = vmatprep.subr.bf16.mxu1 %v2664_v51  ;;  %v1375_v51 = vld [vmem:[%s4020_s7 + $0x10] sm:$0xff] }
 0x2d7   :  { %v1362_v55 = vpop.f32.mrf.mxu1 }
 0x2d8   :  { %v1363_v56 = vadd.f32 %v1362_v55, %v1241_v53  ;;  %v1376_v53 = vld [vmem:[%s4020_s7 + $0x18] sm:$0xff]  ;;  %v2613_v55 = vcombine.low %v1383_v45, %v1387_v46 }
 0x2d9   :  { %v1364_v57 = vpop.f32.mrf.mxu1 }
 0x2da   :  { %v1365_v58 = vadd.f32 %v1364_v57, %v1245_v54  ;;  %v1369_v59 = vmax.f32 %v1363_v56, 0.0  ;;  %v1380_v54 = vld [vmem:[%s4020_s7 + $0x38] sm:$0xff]  ;;  %v2615_v56 = vcombine.low %v1384_v47, %v1388_v48  ;;  %v2606_v57 = vcombine.high %v1375_v51, %v1379_v52 }
 0x2db   :  { %v1366_v61 = vpop.f32.mrf.mxu1  ;;  %v2607_v2 = vcombine.low %v1376_v53, %v1380_v54 }
 0x2dc   :  { %v1370_v63 = vmax.f32 %v1365_v58, 0.0  ;;  %v3816_v7 = vpack.c.bf16 %v1369_v59, %v1369_v59  ;;  %v2608_v58 = vcombine.high %v1376_v53, %v1380_v54  ;;  %v1495_v59 = vld [vmem:[%s4020_s7 + $0x3d0] sm:$0xff] }
 0x2dd   :  { %v1367_v1 = vpop.f32.mrf.mxu1  ;;  %v1499_v61 = vld [vmem:[%s4020_s7 + $0x3f0] sm:$0xff] }
 0x2de   :  { %v1372_v5 = vpack.c.bf16 %v1370_v63, %v1370_v63  ;;  %v1496_v63 = vld [vmem:[%s4020_s7 + $0x3d8] sm:$0xff]  ;;  %v2605_v1 = vcombine.low %v1375_v51, %v1379_v52  ;;  %v2726_v3 = vcombine.high %v1495_v59, %v1499_v61  ;;  %v2725_v11 = vcombine.low %v1495_v59, %v1499_v61 }
 0x2df   :  { %v2728_v4 = vcombine.high %v1496_v63, %v1500_v0  ;;  %v2727_v12 = vcombine.low %v1496_v63, %v1500_v0  ;;  %v1452_v51 = vld [vmem:[%s4020_s7 + $0x278] sm:$0xff] }
 0x2e0   :  { %2215 = vmatprep.mubr.bf16.mxu0 %v1372_v5  ;;  %2256 = vmatprep.mubr.bf16.mxu1 %v1372_v5  ;;  %v1444_v59 = vld [vmem:[%s4020_s7 + $0x238] sm:$0xff] }
 0x2e1   :  { %2216 = vmatmul.mubr.bf16.vlgmr.msra.gmra.mxu0 %v3816_v7  ;;  %2257 = vmatmul.mubr.bf16.vlgmr.msra.gmra.mxu1 %v3816_v7 }
 0x2e2   :  { %2266 = vmatpush1.bf16.msra.mxu0 %v2661_v34  ;;  %2307 = vmatpush1.bf16.msra.mxu1 %v2663_v50  ;;  %v2614_v34 = vcombine.high %v1383_v45, %v1387_v46  ;;  %v2616_v50 = vcombine.high %v1384_v47, %v1388_v48  ;;  %v1460_v45 = vld [vmem:[%s4020_s7 + $0x2b8] sm:$0xff] }
 0x2e3   :  { %2297 = vmatprep.mubr.bf16.mxu0 %v1372_v5  ;;  %2338 = vmatprep.mubr.bf16.mxu1 %v1372_v5  ;;  %v1487_v5 = vld [vmem:[%s4020_s7 + $0x390] sm:$0xff] }
 0x2e4   :  { %2267 = vmatprep.subr.bf16.mxu0 %v2654_v9  ;;  %2308 = vmatprep.subr.bf16.mxu1 %v2656_v10  ;;  %v1488_v9 = vld [vmem:[%s4020_s7 + $0x398] sm:$0xff]  ;;  %v2718_v13 = vcombine.high %v1487_v5, %v1491_v8  ;;  %v2717_v19 = vcombine.low %v1487_v5, %v1491_v8 }
 0x2e5   :  { %v1492_v10 = vld [vmem:[%s4020_s7 + $0x3b8] sm:$0xff] }
 0x2e6   :  { %2268 = vmatpush1.bf16.msra.mxu0 %v2653_v14  ;;  %2309 = vmatpush1.bf16.msra.mxu1 %v2655_v15  ;;  %v2720_v14 = vcombine.high %v1488_v9, %v1492_v10  ;;  %v1479_v15 = vld [vmem:[%s4020_s7 + $0x350] sm:$0xff]  ;;  %v2719_v20 = vcombine.low %v1488_v9, %v1492_v10 }
 0x2e7   :  { %2269 = vmatprep.subr.bf16.mxu0 %v2646_v16  ;;  %2310 = vmatprep.subr.bf16.mxu1 %v2648_v17  ;;  %v1483_v16 = vld [vmem:[%s4020_s7 + $0x370] sm:$0xff]  ;;  %v1480_v17 = vld [vmem:[%s4020_s7 + $0x358] sm:$0xff] }
 0x2e8   :  { %v2710_v21 = vcombine.high %v1479_v15, %v1483_v16  ;;  %v2709_v26 = vcombine.low %v1479_v15, %v1483_v16  ;;  %v2711_v27 = vcombine.low %v1480_v17, %v1484_v18 }
 0x2ea   :  { %2270 = vmatpush1.bf16.msra.mxu0 %v2645_v22  ;;  %2311 = vmatpush1.bf16.msra.mxu1 %v2647_v6  ;;  %v2712_v22 = vcombine.high %v1480_v17, %v1484_v18  ;;  %v1471_v6 = vld [vmem:[%s4020_s7 + $0x310] sm:$0xff] }
 0x2eb   :  { %2271 = vmatprep.subr.bf16.mxu0 %v2638_v23  ;;  %2312 = vmatprep.subr.bf16.mxu1 %v2640_v24  ;;  %v1475_v23 = vld [vmem:[%s4020_s7 + $0x330] sm:$0xff]  ;;  %v1472_v24 = vld [vmem:[%s4020_s7 + $0x318] sm:$0xff] }
 0x2ec   :  { %v2702_v29 = vcombine.high %v1471_v6, %v1475_v23  ;;  %v2701_v37 = vcombine.low %v1471_v6, %v1475_v23  ;;  %v2703_v38 = vcombine.low %v1472_v24, %v1476_v25 }
 0x2ee   :  { %2272 = vmatpush1.bf16.msra.mxu0 %v2637_v30  ;;  %2313 = vmatpush1.bf16.msra.mxu1 %v2639_v32  ;;  %v2704_v30 = vcombine.high %v1472_v24, %v1476_v25  ;;  %v1463_v32 = vld [vmem:[%s4020_s7 + $0x2d0] sm:$0xff] }
 0x2ef   :  { %2273 = vmatprep.subr.bf16.mxu0 %v2630_v33  ;;  %2314 = vmatprep.subr.bf16.mxu1 %v2632_v35  ;;  %v1467_v33 = vld [vmem:[%s4020_s7 + $0x2f0] sm:$0xff]  ;;  %v1464_v35 = vld [vmem:[%s4020_s7 + $0x2d8] sm:$0xff] }
 0x2f0   :  { %v2694_v39 = vcombine.high %v1463_v32, %v1467_v33  ;;  %v2693_v46 = vcombine.low %v1463_v32, %v1467_v33  ;;  %v2695_v47 = vcombine.low %v1464_v35, %v1468_v36 }
 0x2f2   :  { %2274 = vmatpush1.bf16.msra.mxu0 %v2629_v40  ;;  %2315 = vmatpush1.bf16.msra.mxu1 %v2631_v41  ;;  %v2696_v40 = vcombine.high %v1464_v35, %v1468_v36  ;;  %v1455_v41 = vld [vmem:[%s4020_s7 + $0x290] sm:$0xff] }
 0x2f3   :  { %2275 = vmatprep.subr.bf16.mxu0 %v2622_v43  ;;  %2316 = vmatprep.subr.bf16.mxu1 %v2624_v44  ;;  %v1459_v43 = vld [vmem:[%s4020_s7 + $0x2b0] sm:$0xff]  ;;  %v1456_v44 = vld [vmem:[%s4020_s7 + $0x298] sm:$0xff] }
 0x2f4   :  { %v2686_v48 = vcombine.high %v1455_v41, %v1459_v43  ;;  %v2685_v52 = vcombine.low %v1455_v41, %v1459_v43  ;;  %v2687_v53 = vcombine.low %v1456_v44, %v1460_v45 }
 0x2f6   :  { %2276 = vmatpush1.bf16.msra.mxu0 %v2621_v28  ;;  %2317 = vmatpush1.bf16.msra.mxu1 %v2623_v31  ;;  %v2688_v28 = vcombine.high %v1456_v44, %v1460_v45  ;;  %v1447_v31 = vld [vmem:[%s4020_s7 + $0x250] sm:$0xff] }
 0x2f7   :  { %2277 = vmatprep.subr.bf16.mxu0 %v2614_v34  ;;  %2318 = vmatprep.subr.bf16.mxu1 %v2616_v50  ;;  %v1451_v34 = vld [vmem:[%s4020_s7 + $0x270] sm:$0xff]  ;;  %v1448_v50 = vld [vmem:[%s4020_s7 + $0x258] sm:$0xff] }
 0x2f8   :  { %v2678_v54 = vcombine.high %v1447_v31, %v1451_v34  ;;  %v2677_v61 = vcombine.low %v1447_v31, %v1451_v34  ;;  %v2679_v63 = vcombine.low %v1448_v50, %v1452_v51 }
 0x2fa   :  { %2278 = vmatpush1.bf16.msra.mxu0 %v2613_v55  ;;  %2319 = vmatpush1.bf16.msra.mxu1 %v2615_v56  ;;  %v2680_v55 = vcombine.high %v1448_v50, %v1452_v51  ;;  %v1439_v56 = vld [vmem:[%s4020_s7 + $0x210] sm:$0xff] }
 0x2fb   :  { %2279 = vmatprep.subr.bf16.mxu0 %v2606_v57  ;;  %2320 = vmatprep.subr.bf16.mxu1 %v2608_v58  ;;  %v1443_v57 = vld [vmem:[%s4020_s7 + $0x230] sm:$0xff]  ;;  %v1440_v58 = vld [vmem:[%s4020_s7 + $0x218] sm:$0xff]  ;;  %s3015_s7 = smov [#allocation2]  }
 0x2fc   :  { %v2670_v0 = vcombine.high %v1439_v56, %v1443_v57  ;;  %s2428_s18 = sshll.u32 %s3015_s7, 4  ;;  %s2429_s18 = int_to_ptr.vmem [resolvable:$true] %s2428_s18 }
 0x2fd   :  { %s2991_s3 = scalar_lea.vmem %s2429_s18, 32  ;;  %p2996_p1 = scmp.lt.s32.totalorder %s2429_s18, %s2429_s18 }
 0x2fe   :  { %2280 = vmatpush1.bf16.msra.mxu0 %v2605_v1  ;;  %2321 = vmatpush1.bf16.msra.mxu1 %v2607_v2  ;;  %v2672_v1 = vcombine.high %v1440_v58, %v1444_v59  ;;  %v2669_v2 = vcombine.low %v1439_v56, %v1443_v57  ;;  %p2992_p0 = scmp.ne.s32.totalorder %s2429_s18, %s2991_s3  ;;  %p2997_p2 = scmp.lt.s32.totalorder %s2991_s3, %s2991_s3 }
 0x2ff   :  { %2281 = vmatprep.subr.bf16.mxu0 %v2726_v3  ;;  %2322 = vmatprep.subr.bf16.mxu1 %v2728_v4  ;;  %v2671_v3 = vcombine.low %v1440_v58, %v1444_v59 }
 0x300   :  { %p2998_p3 = por %p2997_p2, %p2996_p1 }
 0x302   :  { %2282 = vmatpush2.bf16.msra.mxu0 %v2725_v11  ;;  %2323 = vmatpush2.bf16.msra.mxu1 %v2727_v12  ;;  %p2999_p4 = pnand %p2998_p3, %p2992_p0 }
 0x303   :  { %2283 = vmatprep.subr.bf16.mxu0 %v2718_v13  ;;  %2324 = vmatprep.subr.bf16.mxu1 %v2720_v14 }
 0x306   :  { %2284 = vmatpush2.bf16.msra.mxu0 %v2717_v19  ;;  %2325 = vmatpush2.bf16.msra.mxu1 %v2719_v20 }
 0x307   :  { %2285 = vmatprep.subr.bf16.mxu0 %v2710_v21  ;;  %2326 = vmatprep.subr.bf16.mxu1 %v2712_v22 }
 0x30a   :  { %2286 = vmatpush2.bf16.msra.mxu0 %v2709_v26  ;;  %2327 = vmatpush2.bf16.msra.mxu1 %v2711_v27 }
 0x30b   :  { %2287 = vmatprep.subr.bf16.mxu0 %v2702_v29  ;;  %2328 = vmatprep.subr.bf16.mxu1 %v2704_v30 }
 0x30e   :  { %2288 = vmatpush2.bf16.msra.mxu0 %v2701_v37  ;;  %2329 = vmatpush2.bf16.msra.mxu1 %v2703_v38 }
 0x30f   :  { %2289 = vmatprep.subr.bf16.mxu0 %v2694_v39  ;;  %2330 = vmatprep.subr.bf16.mxu1 %v2696_v40 }
 0x312   :  { %2290 = vmatpush2.bf16.msra.mxu0 %v2693_v46  ;;  %2331 = vmatpush2.bf16.msra.mxu1 %v2695_v47 }
 0x313   :  { %2291 = vmatprep.subr.bf16.mxu0 %v2686_v48  ;;  %2332 = vmatprep.subr.bf16.mxu1 %v2688_v28 }
 0x316   :  { %2292 = vmatpush2.bf16.msra.mxu0 %v2685_v52  ;;  %2333 = vmatpush2.bf16.msra.mxu1 %v2687_v53 }
 0x317   :  { %2293 = vmatprep.subr.bf16.mxu0 %v2678_v54  ;;  %2334 = vmatprep.subr.bf16.mxu1 %v2680_v55 }
 0x31a   :  { %2294 = vmatpush2.bf16.msra.mxu0 %v2677_v61  ;;  %2335 = vmatpush2.bf16.msra.mxu1 %v2679_v63 }
 0x31b   :  { %2295 = vmatprep.subr.bf16.mxu0 %v2670_v0  ;;  %2336 = vmatprep.subr.bf16.mxu1 %v2672_v1 }
 0x31e   :  { %2296 = vmatpush2.bf16.msra.mxu0 %v2669_v2  ;;  %2337 = vmatpush2.bf16.msra.mxu1 %v2671_v3 }
 0x321   :  { %2298 = vmatmul.mubr.bf16.vlgmr.msra.gmra.mxu0 %v3816_v7  ;;  %2339 = vmatmul.mubr.bf16.vlgmr.msra.gmra.mxu1 %v3816_v7 }
 0x322   :  { %3002 = shalt.err (!%p2999_p4)
}
 0x323   :  { %2431 = dma.vmem_to_hbm [thread:$0]  %s2429_s18, 32, %s4022_s9, [#allocation3]   ;;  %v1513_v4 = vsub.s32 2, %v3188_v42  ;;  %v1501_v7 = vld [vmem:[%s4021_s8] sm:$0xff]  ;;  %v1517_v5 = vsub.s32 3, %v3188_v42  ;;  %v1521_v32 = vsub.s32 4, %v3188_v42 }
 0x324   :  { %v1506_v8 = vrot.slane %v1501_v7, %v3559_v60  ;;  %v1510_v10 = vrot.slane %v1501_v7, %v3565_v62  ;;  %v1529_v33 = vsub.s32 6, %v3188_v42  ;;  %v1525_v35 = vsub.s32 5, %v3188_v42 }
 0x325   :  { %v1514_v9 = vrot.slane %v1501_v7, %v1513_v4  ;;  %v1518_v11 = vrot.slane %v1501_v7, %v1517_v5  ;;  %v1533_v36 = vsub.s32 7, %v3188_v42  ;;  %v1522_v37 = vrot.slane %v1501_v7, %v1521_v32 }
 0x326   :  { %v1530_v38 = vrot.slane %v1501_v7, %v1529_v33  ;;  %v1526_v39 = vrot.slane %v1501_v7, %v1525_v35 }
 0x327   :  { %v1534_v40 = vrot.slane %v1501_v7, %v1533_v36 }
 0x3a1   :  { %v2217_v12 = vpop.f32.mrf.mxu0  ;;  %v2258_v13 = vpop.f32.mrf.mxu1 }
 0x3a2   :  { %v2218_v14 = vadd.f32 %v2217_v12, %v1506_v8  ;;  %v2259_v15 = vadd.f32 %v2258_v13, %v1514_v9 }
 0x3a3   :  { %v2219_v16 = vpop.f32.mrf.mxu0  ;;  %v2260_v17 = vpop.f32.mrf.mxu1 }
 0x3a4   :  { %v2220_v18 = vadd.f32 %v2219_v16, %v1510_v10  ;;  %v2261_v19 = vadd.f32 %v2260_v17, %v1518_v11  ;;  %v2347_v22 = vmax.f32 %v2218_v14, 0.0  ;;  %v2349_v6 = vmax.f32 %v2259_v15, 0.0 }
 0x3a5   :  { %v2221_v20 = vpop.f32.mrf.mxu0  ;;  %v2262_v21 = vpop.f32.mrf.mxu1 }
 0x3a6   :  { %v2348_v23 = vmax.f32 %v2220_v18, 0.0  ;;  %v2350_v24 = vmax.f32 %v2261_v19, 0.0 }
 0x3a7   :  { %v2222_v25 = vpop.f32.mrf.mxu0  ;;  %v2263_v60 = vpop.f32.mrf.mxu1 }
 0x3a8   :  { %v2729_v26 = vpack.c.bf16 %v2348_v23, %v2347_v22  ;;  %v2730_v27 = vpack.c.bf16 %v2350_v24, %v2349_v6 }
 0x3aa   :  { %v2381_v62 = vrot.slane %v2729_v26, %v3206_v49  ;;  %v2388_v29 = vrot.slane %v2730_v27, %v3206_v49 }
 0x3ac   :  { %v2403_v30 = vcombine.low %v2381_v62, %v2388_v29 }
 0x3ae   :  { %v2411_v61 = vrot.slane %v2403_v30, %v3206_v49 }
 0x3e1   :  { %v2299_v41 = vpop.f32.mrf.mxu0  ;;  %v2340_v43 = vpop.f32.mrf.mxu1 }
 0x3e2   :  { %v2300_v44 = vadd.f32 %v2299_v41, %v1522_v37  ;;  %v2341_v45 = vadd.f32 %v2340_v43, %v1530_v38 }
 0x3e3   :  { %v2301_v46 = vpop.f32.mrf.mxu0  ;;  %v2342_v47 = vpop.f32.mrf.mxu1 }
 0x3e4   :  { %v2302_v48 = vadd.f32 %v2301_v46, %v1526_v39  ;;  %v2343_v28 = vadd.f32 %v2342_v47, %v1534_v40  ;;  %v2351_v50 = vmax.f32 %v2300_v44, 0.0  ;;  %v2353_v51 = vmax.f32 %v2341_v45, 0.0 }
 0x3e5   :  { %v2303_v31 = vpop.f32.mrf.mxu0  ;;  %v2344_v34 = vpop.f32.mrf.mxu1 }
 0x3e6   :  { %v2352_v52 = vmax.f32 %v2302_v48, 0.0  ;;  %v2354_v53 = vmax.f32 %v2343_v28, 0.0 }
 0x3e7   :  { %v2304_v54 = vpop.f32.mrf.mxu0  ;;  %v2345_v42 = vpop.f32.mrf.mxu1 }
 0x3e8   :  { %v2731_v55 = vpack.c.bf16 %v2352_v52, %v2351_v50  ;;  %v2732_v56 = vpack.c.bf16 %v2354_v53, %v2353_v51 }
 0x3ea   :  { %v2395_v57 = vrot.slane %v2731_v55, %v3206_v49  ;;  %v2402_v58 = vrot.slane %v2732_v56, %v3206_v49 }
 0x3ec   :  { %v2404_v59 = vcombine.low %v2395_v57, %v2402_v58 }
 0x3ee   :  { %v2418_v63 = vrot.slane %v2404_v59, %v3206_v49 }
 0x3f0   :  { %v2419_v0 = vcombine.low %v2411_v61, %v2418_v63 }
 0x3f2   :  { %2421 = vst [vmem:[%s4023_s10] sm:$0xff] %v2419_v0 }
 0x3f3   :  { %3011 = dma.done.wait [#allocation3], 32  }
 0x3f4   :  { %3012 = vsyncadd [#allocation3], 4294967264 }
 0x3f5   :  { %2439 = vsyncpa [#allocation3], 1 }

// kernel: cae_forward.15
= control target key start
LH: loop header
LB: loop body
LE: loop exit
PB: predicated region body
PF: predicated region fallthrough
CT: control target
= control target key end

     0   :  { %s831_s12 = smov 0   ;;  %s925_s0 = inlined_call_operand.vmem [shape: bf16[192,256], index: 0, kind: input, shape index: {}]   ;;  %s926_s1 = inlined_call_operand.vmem [shape: bf16[256,128], index: 1, kind: input, shape index: {}]   ;;  %s927_s2 = inlined_call_operand.vmem [shape: f32[1,128], index: 2, kind: input, shape index: {}]   ;;  %s928_s3 = inlined_call_operand.vmem [shape: bf16[192,128], index: 3, kind: output, shape index: {}]  }
   0x1 LB: > { %s594_s13 = sadd.s32 4294967295, %s809_s12   ;;  %p598_p0 = scmp.ge.s32.totalorder %s809_s12, 1  ;;  %s809_s12 = sphi %s831_s12, %s13_s12  }
   0x2   : > { %p139_p1 = scmp.lt.s32.totalorder %s809_s12, 3 }
   0x4   : > { %p140_p2 = pnand %p598_p0, %p139_p1 }
   0x5   : > { %s164_s16 = smul.u32 (!%p140_p2), 12, %s594_s13 }
   0x6   : > { %143 = sbr.rel (%p140_p2) target bundleno = 268 (0x10c), region = 32 }
   0x7   : > { %p165_p3 = scmp.lt.s32.totalorder (!%p140_p2), %s164_s16, 23 }
   0xb   : > { %v769_v0 = vld [vmem:[%s926_s1 + $0x78] sm:$0xff]   ;;  %v771_v2 = vld [vmem:[%s926_s1 + $0x70] sm:$0xff]   ;;  %v773_v4 = vld [vmem:[%s926_s1 + $0x68] sm:$0xff]   ;;  %s930_s16 = smov (!%p165_p3, %s164_s16), 23 }
   0xc   : > { %v770_v1 = vld [vmem:[%s926_s1 + $0x38] sm:$0xff]   ;;  %693 = vmatprep.subr.bf16.mxu0 %v769_v0  ;;  %745 = vmatprep.subr.bf16.mxu1 %v769_v0  ;;  %v772_v3 = vld [vmem:[%s926_s1 + $0x30] sm:$0xff]   ;;  %v774_v5 = vld [vmem:[%s926_s1 + $0x28] sm:$0xff]   ;;  %s645_s4 = sshll.u32 %s930_s16, 3  ;;  %s601_s28 = sshll.u32 %s930_s16, 2 }
   0xd   : > { %694 = vmatpush3.bf16.msra.mxu0 %v770_v1  ;;  %753 = vmatpush3.bf16.msra.mxu1 %v770_v1  ;;  %v775_v6 = vld [vmem:[%s926_s1 + $0x60] sm:$0xff]   ;;  %v777_v8 = vld [vmem:[%s926_s1 + $0x58] sm:$0xff]   ;;  %s872_s9 = scalar_lea.vmem %s925_s0, %s645_s4  ;;  %v779_v10 = vld [vmem:[%s926_s1 + $0x50] sm:$0xff]   ;;  %s914_s4 = scalar_lea.vmem %s928_s3, %s601_s28 }
   0xe   : > { %695 = vmatprep.subr.bf16.mxu0 %v771_v2  ;;  %746 = vmatprep.subr.bf16.mxu1 %v771_v2  ;;  %v776_v7 = vld [vmem:[%s926_s1 + $0x20] sm:$0xff]   ;;  %v778_v9 = vld [vmem:[%s926_s1 + $0x18] sm:$0xff]   ;;  %v780_v13 = vld [vmem:[%s926_s1 + $0x10] sm:$0xff]  }
   0xf   : > { %v787_v11 = vld [vmem:[%s872_s9 + $0x4] ss:$8 sps:$4 sm:$0xff]   ;;  %v790_v12 = vld [vmem:[%s872_s9 + $0x34] ss:$8 sps:$4 sm:$0xff]   ;;  %v785_v18 = vld [vmem:[%s872_s9] ss:$8 sps:$4 sm:$0xff]  }
  0x10   : > { %v781_v14 = vld [vmem:[%s926_s1 + $0x48] sm:$0xff]   ;;  %417 = vmatprep.mubr.bf16.mxu0 %v787_v11  ;;  %441 = vmatprep.mubr.bf16.mxu1 %v790_v12  ;;  %v783_v16 = vld [vmem:[%s926_s1 + $0x40] sm:$0xff]   ;;  %v788_v19 = vld [vmem:[%s872_s9 + $0x30] ss:$8 sps:$4 sm:$0xff]  }
  0x11   : > { %696 = vmatpush3.bf16.msra.mxu0 %v772_v3  ;;  %754 = vmatpush3.bf16.msra.mxu1 %v772_v3  ;;  %v782_v15 = vld [vmem:[%s926_s1 + $0x8] sm:$0xff]   ;;  %v784_v17 = vld [vmem:[%s926_s1] sm:$0xff]   ;;  %v791_v20 = vld [vmem:[%s872_s9 + $0x14] ss:$8 sps:$4 sm:$0xff]  }
  0x12   : > { %697 = vmatprep.subr.bf16.mxu0 %v773_v4  ;;  %747 = vmatprep.subr.bf16.mxu1 %v773_v4  ;;  %v793_v21 = vld [vmem:[%s872_s9 + $0x44] ss:$8 sps:$4 sm:$0xff]   ;;  %v795_v22 = vld [vmem:[%s872_s9 + $0x10] ss:$8 sps:$4 sm:$0xff]   ;;  %v796_v23 = vld [vmem:[%s872_s9 + $0x40] ss:$8 sps:$4 sm:$0xff]  }
  0x13   : > { %v797_v24 = vld [vmem:[%s872_s9 + $0x24] ss:$8 sps:$4 sm:$0xff]   ;;  %v799_v25 = vld [vmem:[%s872_s9 + $0x54] ss:$8 sps:$4 sm:$0xff]   ;;  %v801_v26 = vld [vmem:[%s872_s9 + $0x20] ss:$8 sps:$4 sm:$0xff]  }
  0x14   : > { %v802_v27 = vld [vmem:[%s872_s9 + $0x50] ss:$8 sps:$4 sm:$0xff]   ;;  %v602_v32 = vld [vmem:[%s927_s2] ss:$0 sm:$0xff] }
  0x15   : > { %698 = vmatpush3.bf16.msra.mxu0 %v774_v5  ;;  %755 = vmatpush3.bf16.msra.mxu1 %v774_v5 }
  0x16   : > { %699 = vmatprep.subr.bf16.mxu0 %v775_v6  ;;  %748 = vmatprep.subr.bf16.mxu1 %v775_v6 }
  0x19   : > { %700 = vmatpush3.bf16.msra.mxu0 %v776_v7  ;;  %756 = vmatpush3.bf16.msra.mxu1 %v776_v7 }
  0x1a   : > { %701 = vmatprep.subr.bf16.mxu0 %v777_v8  ;;  %749 = vmatprep.subr.bf16.mxu1 %v777_v8 }
  0x1d   : > { %702 = vmatpush3.bf16.msra.mxu0 %v778_v9  ;;  %757 = vmatpush3.bf16.msra.mxu1 %v778_v9 }
  0x1e   : > { %703 = vmatprep.subr.bf16.mxu0 %v779_v10  ;;  %750 = vmatprep.subr.bf16.mxu1 %v779_v10 }
  0x21   : > { %704 = vmatpush3.bf16.msra.mxu0 %v780_v13  ;;  %758 = vmatpush3.bf16.msra.mxu1 %v780_v13 }
  0x22   : > { %705 = vmatprep.subr.bf16.mxu0 %v781_v14  ;;  %751 = vmatprep.subr.bf16.mxu1 %v781_v14 }
  0x25   : > { %706 = vmatpush3.bf16.msra.mxu0 %v782_v15  ;;  %759 = vmatpush3.bf16.msra.mxu1 %v782_v15 }
  0x26   : > { %707 = vmatprep.subr.bf16.mxu0 %v783_v16  ;;  %752 = vmatprep.subr.bf16.mxu1 %v783_v16 }
  0x29   : > { %708 = vmatpush3.bf16.msra.mxu0 %v784_v17  ;;  %760 = vmatpush3.bf16.msra.mxu1 %v784_v17 }
  0x2c   : > { %418 = vmatmul.mubr.bf16.vlgmr.msra.gmra.mxu0 %v785_v18  ;;  %442 = vmatmul.mubr.bf16.vlgmr.msra.gmra.mxu1 %v788_v19 }
  0x2d   : > { %425 = vmatprep.mubr.bf16.mxu0 %v791_v20  ;;  %449 = vmatprep.mubr.bf16.mxu1 %v793_v21 }
  0x34   : > { %426 = vmatmul.mubr.bf16.gmra.mxu0 %v795_v22  ;;  %450 = vmatmul.mubr.bf16.gmra.mxu1 %v796_v23 }
  0x35   : > { %433 = vmatprep.mubr.bf16.mxu0 %v797_v24  ;;  %457 = vmatprep.mubr.bf16.mxu1 %v799_v25 }
  0x3c   : > { %434 = vmatmul.mubr.bf16.gmra.mxu0 %v801_v26  ;;  %458 = vmatmul.mubr.bf16.gmra.mxu1 %v802_v27 }
  0xec   : > { %v709_v28 = vpop.f32.mrf.mxu0  ;;  %v727_v29 = vpop.f32.mrf.mxu1 }
  0xee   : > { %v710_v30 = vpop.f32.mrf.mxu0  ;;  %v728_v31 = vpop.f32.mrf.mxu1 }
  0xef   : > { %v711_v33 = vadd.f32 %v710_v30, %v709_v28  ;;  %v729_v34 = vadd.f32 %v728_v31, %v727_v29 }
  0xf0   : > { %v712_v35 = vpop.f32.mrf.mxu0  ;;  %v730_v36 = vpop.f32.mrf.mxu1 }
  0xf1   : > { %v420_v37 = vadd.f32 %v711_v33, %v602_v32  ;;  %v444_v38 = vadd.f32 %v729_v34, %v602_v32 }
  0xf2   : > { %v713_v39 = vpop.f32.mrf.mxu0  ;;  %v731_v40 = vpop.f32.mrf.mxu1 }
  0xf3   : > { %v714_v41 = vadd.f32 %v713_v39, %v712_v35  ;;  %v732_v42 = vadd.f32 %v731_v40, %v730_v36  ;;  %v466_v47 = vmax.f32 %v420_v37, 0.0  ;;  %v472_v48 = vmax.f32 %v444_v38, 0.0 }
  0xf4   : > { %v715_v43 = vpop.f32.mrf.mxu0  ;;  %v733_v44 = vpop.f32.mrf.mxu1 }
  0xf5   : > { %v423_v45 = vadd.f32 %v714_v41, %v602_v32  ;;  %v447_v46 = vadd.f32 %v732_v42, %v602_v32 }
  0xf6   : > { %v716_v49 = vpop.f32.mrf.mxu0  ;;  %v734_v50 = vpop.f32.mrf.mxu1 }
  0xf7   : > { %v467_v51 = vmax.f32 %v423_v45, 0.0  ;;  %v473_v52 = vmax.f32 %v447_v46, 0.0  ;;  %v717_v53 = vadd.f32 %v716_v49, %v715_v43  ;;  %v735_v54 = vadd.f32 %v734_v50, %v733_v44 }
  0xf8   : > { %v718_v55 = vpop.f32.mrf.mxu0  ;;  %v736_v56 = vpop.f32.mrf.mxu1 }
  0xf9   : > { %v661_v57 = vpack.c.bf16 %v467_v51, %v466_v47  ;;  %v676_v58 = vpack.c.bf16 %v473_v52, %v472_v48  ;;  %v428_v59 = vadd.f32 %v717_v53, %v602_v32  ;;  %v452_v60 = vadd.f32 %v735_v54, %v602_v32 }
  0xfa   : > { %v719_v61 = vpop.f32.mrf.mxu0  ;;  %v737_v62 = vpop.f32.mrf.mxu1 }
  0xfb   : > { %662 = vst [vmem:[%s914_s4] sm:$0xff] %v661_v57   ;;  %690 = vst [vmem:[%s914_s4 + $0x18] sm:$0xff] %v676_v58   ;;  %v720_v63 = vadd.f32 %v719_v61, %v718_v55  ;;  %v738_v0 = vadd.f32 %v737_v62, %v736_v56  ;;  %v468_v5 = vmax.f32 %v428_v59, 0.0  ;;  %v474_v6 = vmax.f32 %v452_v60, 0.0 }
  0xfc   : > { %v721_v1 = vpop.f32.mrf.mxu0  ;;  %v739_v2 = vpop.f32.mrf.mxu1 }
  0xfd   : > { %v431_v3 = vadd.f32 %v720_v63, %v602_v32  ;;  %v455_v4 = vadd.f32 %v738_v0, %v602_v32 }
  0xfe   : > { %v722_v7 = vpop.f32.mrf.mxu0  ;;  %v740_v8 = vpop.f32.mrf.mxu1 }
  0xff   : > { %v469_v9 = vmax.f32 %v431_v3, 0.0  ;;  %v475_v10 = vmax.f32 %v455_v4, 0.0  ;;  %v723_v11 = vadd.f32 %v722_v7, %v721_v1  ;;  %v741_v12 = vadd.f32 %v740_v8, %v739_v2 }
 0x100   : > { %v724_v13 = vpop.f32.mrf.mxu0  ;;  %v742_v14 = vpop.f32.mrf.mxu1 }
 0x101   : > { %v666_v15 = vpack.c.bf16 %v469_v9, %v468_v5  ;;  %v681_v16 = vpack.c.bf16 %v475_v10, %v474_v6  ;;  %v436_v19 = vadd.f32 %v723_v11, %v602_v32  ;;  %v460_v20 = vadd.f32 %v741_v12, %v602_v32 }
 0x102   : > { %v725_v17 = vpop.f32.mrf.mxu0  ;;  %v743_v18 = vpop.f32.mrf.mxu1 }
 0x103   : > { %688 = vst [vmem:[%s914_s4 + $0x8] sm:$0xff] %v666_v15   ;;  %691 = vst [vmem:[%s914_s4 + $0x20] sm:$0xff] %v681_v16   ;;  %v726_v21 = vadd.f32 %v725_v17, %v724_v13  ;;  %v744_v22 = vadd.f32 %v743_v18, %v742_v14  ;;  %v470_v25 = vmax.f32 %v436_v19, 0.0  ;;  %v476_v26 = vmax.f32 %v460_v20, 0.0 }
 0x105   : > { %v439_v23 = vadd.f32 %v726_v21, %v602_v32  ;;  %v463_v24 = vadd.f32 %v744_v22, %v602_v32 }
 0x107   : > { %v471_v27 = vmax.f32 %v439_v23, 0.0  ;;  %v477_v28 = vmax.f32 %v463_v24, 0.0 }
 0x109   : > { %v671_v29 = vpack.c.bf16 %v471_v27, %v470_v25  ;;  %v686_v30 = vpack.c.bf16 %v477_v28, %v476_v26 }
 0x10b   : > { %689 = vst [vmem:[%s914_s4 + $0x10] sm:$0xff] %v671_v29   ;;  %692 = vst [vmem:[%s914_s4 + $0x28] sm:$0xff] %v686_v30  }
 0x10c PF: > { %s13_s12 = sadd.s32 1, %s809_s12  }
 0x10d   : > { %p10_p4 = scmp.ge.s32.totalorder %s13_s12, 4  }
 0x10f   :  { %12 = sbr.rel (!%p10_p4) target bundleno = 1 (0x1), region = 62 }

// kernel: cae_forward.16
= control target key start
LH: loop header
LB: loop body
LE: loop exit
PB: predicated region body
PF: predicated region fallthrough
CT: control target
= control target key end

     0   :  { %s1295_s12 = smov 0   ;;  %s1482_s0 = inlined_call_operand.vmem [shape: bf16[608,128], index: 0, kind: input, shape index: {}]   ;;  %s1483_s1 = inlined_call_operand.vmem [shape: bf16[128,128], index: 1, kind: input, shape index: {}]   ;;  %s1484_s2 = inlined_call_operand.vmem [shape: f32[1,128], index: 2, kind: input, shape index: {}]   ;;  %s1485_s3 = inlined_call_operand.vmem [shape: bf16[608,128], index: 3, kind: output, shape index: {}]  }
   0x1 LB: > { %s867_s13 = sadd.s32 4294967295, %s1271_s12   ;;  %p871_p0 = scmp.ge.s32.totalorder %s1271_s12, 1  ;;  %s1271_s12 = sphi %s1295_s12, %s13_s12  }
   0x2   : > { %p138_p1 = scmp.lt.s32.totalorder %s1271_s12, 3 }
   0x4   : > { %p139_p2 = pnand %p871_p0, %p138_p1 }
   0x5   : > { %s162_s18 = smul.u32 (!%p139_p2), 38, %s867_s13 }
   0x6   : > { %142 = sbr.rel (%p139_p2) target bundleno = 320 (0x140), region = 32 }
   0x7   : > { %p163_p3 = scmp.lt.s32.totalorder (!%p139_p2), %s162_s18, 75 }
   0xb   : > { %v1238_v0 = vld [vmem:[%s1483_s1 + $0x38] sm:$0xff]   ;;  %v1273_v1 = vmov 0.0   ;;  %v1239_v2 = vld [vmem:[%s1483_s1 + $0x30] sm:$0xff]   ;;  %vm1274_vm0 = vmmov 0   ;;  %v1240_v3 = vld [vmem:[%s1483_s1 + $0x28] sm:$0xff]   ;;  %s1487_s18 = smov (!%p163_p3, %s162_s18), 75 }
   0xc   : > { %1120 = vmatprep.subr.bf16.mxu0 %v1273_v1  ;;  %1212 = vmatprep.subr.bf16.mxu1 %v1273_v1  ;;  %s872_s21 = sshll.u32 %s1487_s18, 2  ;;  %v1241_v4 = vld [vmem:[%s1483_s1 + $0x20] sm:$0xff]   ;;  %v1242_v5 = vld [vmem:[%s1483_s1 + $0x18] sm:$0xff]   ;;  %v1243_v6 = vld [vmem:[%s1483_s1 + $0x10] sm:$0xff]  }
   0xd   : > { %1121 = vmatpush3.bf16.msra.mxu0 %v1238_v0  ;;  %1220 = vmatpush3.bf16.msra.mxu1 %v1238_v0  ;;  %s1330_s24 = scalar_lea.vmem %s1482_s0, %s872_s21  ;;  %v1244_v7 = vld [vmem:[%s1483_s1 + $0x8] sm:$0xff]   ;;  %v1245_v8 = vld [vmem:[%s1483_s1] sm:$0xff]   ;;  %s1424_s13 = scalar_lea.vmem %s1485_s3, %s872_s21 }
   0xe   : > { %1122 = vmatprep.subr.bf16.mxu0 %v1273_v1  ;;  %1213 = vmatprep.subr.bf16.mxu1 %v1273_v1  ;;  %v1246_v9 = vld [vmem:[%s1330_s24] sm:$0xff]   ;;  %v1247_v10 = vld [vmem:[%s1330_s24 + $0x50] sm:$0xff]   ;;  %v1248_v11 = vld [vmem:[%s1330_s24 + $0x8] sm:$0xff]  }
   0xf   : > { %1136 = vmatprep.mubr.msk.bf16.mxu0 %vm1274_vm0, %v1273_v1  ;;  %1176 = vmatprep.mubr.msk.bf16.mxu1 %vm1274_vm0, %v1273_v1  ;;  %v1249_v12 = vld [vmem:[%s1330_s24 + $0x58] sm:$0xff]   ;;  %v1250_v13 = vld [vmem:[%s1330_s24 + $0x10] sm:$0xff]   ;;  %v1251_v14 = vld [vmem:[%s1330_s24 + $0x60] sm:$0xff]  }
  0x10   : > { %v1252_v15 = vld [vmem:[%s1330_s24 + $0x18] sm:$0xff]   ;;  %v1253_v16 = vld [vmem:[%s1330_s24 + $0x68] sm:$0xff]   ;;  %v1254_v17 = vld [vmem:[%s1330_s24 + $0x20] sm:$0xff]  }
  0x11   : > { %1123 = vmatpush3.bf16.msra.mxu0 %v1239_v2  ;;  %1221 = vmatpush3.bf16.msra.mxu1 %v1239_v2  ;;  %v1255_v18 = vld [vmem:[%s1330_s24 + $0x70] sm:$0xff]   ;;  %v1256_v19 = vld [vmem:[%s1330_s24 + $0x28] sm:$0xff]   ;;  %v1257_v20 = vld [vmem:[%s1330_s24 + $0x78] sm:$0xff]  }
  0x12   : > { %1124 = vmatprep.subr.bf16.mxu0 %v1273_v1  ;;  %1214 = vmatprep.subr.bf16.mxu1 %v1273_v1  ;;  %v1258_v21 = vld [vmem:[%s1330_s24 + $0x30] sm:$0xff]   ;;  %v1259_v22 = vld [vmem:[%s1330_s24 + $0x80] sm:$0xff]   ;;  %v1260_v23 = vld [vmem:[%s1330_s24 + $0x38] sm:$0xff]  }
  0x13   : > { %v1261_v24 = vld [vmem:[%s1330_s24 + $0x88] sm:$0xff]   ;;  %v1262_v25 = vld [vmem:[%s1330_s24 + $0x40] sm:$0xff]   ;;  %v1263_v26 = vld [vmem:[%s1330_s24 + $0x90] sm:$0xff]  }
  0x14   : > { %v1264_v27 = vld [vmem:[%s1330_s24 + $0x48] sm:$0xff]   ;;  %v1413_v28 = vld [vmem:[%s1484_s2] ss:$0 sm:$0xff] }
  0x15   : > { %1125 = vmatpush3.bf16.msra.mxu0 %v1240_v3  ;;  %1222 = vmatpush3.bf16.msra.mxu1 %v1240_v3 }
  0x16   : > { %1126 = vmatprep.subr.bf16.mxu0 %v1273_v1  ;;  %1215 = vmatprep.subr.bf16.mxu1 %v1273_v1 }
  0x19   : > { %1127 = vmatpush3.bf16.msra.mxu0 %v1241_v4  ;;  %1223 = vmatpush3.bf16.msra.mxu1 %v1241_v4 }
  0x1a   : > { %1128 = vmatprep.subr.bf16.mxu0 %v1273_v1  ;;  %1216 = vmatprep.subr.bf16.mxu1 %v1273_v1 }
  0x1d   : > { %1129 = vmatpush3.bf16.msra.mxu0 %v1242_v5  ;;  %1224 = vmatpush3.bf16.msra.mxu1 %v1242_v5 }
  0x1e   : > { %1130 = vmatprep.subr.bf16.mxu0 %v1273_v1  ;;  %1217 = vmatprep.subr.bf16.mxu1 %v1273_v1 }
  0x21   : > { %1131 = vmatpush3.bf16.msra.mxu0 %v1243_v6  ;;  %1225 = vmatpush3.bf16.msra.mxu1 %v1243_v6 }
  0x22   : > { %1132 = vmatprep.subr.bf16.mxu0 %v1273_v1  ;;  %1218 = vmatprep.subr.bf16.mxu1 %v1273_v1 }
  0x25   : > { %1133 = vmatpush3.bf16.msra.mxu0 %v1244_v7  ;;  %1226 = vmatpush3.bf16.msra.mxu1 %v1244_v7 }
  0x26   : > { %1134 = vmatprep.subr.bf16.mxu0 %v1273_v1  ;;  %1219 = vmatprep.subr.bf16.mxu1 %v1273_v1 }
  0x29   : > { %1135 = vmatpush3.bf16.msra.mxu0 %v1245_v8  ;;  %1227 = vmatpush3.bf16.msra.mxu1 %v1245_v8 }
  0x2c   : > { %1137 = vmatmul.mubr.bf16.vlgmr.msra.gmra.mxu0 %v1246_v9  ;;  %1177 = vmatmul.mubr.bf16.vlgmr.msra.gmra.mxu1 %v1247_v10 }
  0x2d   : > { %1140 = vmatprep.mubr.msk.bf16.mxu0 %vm1274_vm0, %v1273_v1  ;;  %1180 = vmatprep.mubr.msk.bf16.mxu1 %vm1274_vm0, %v1273_v1 }
  0x34   : > { %1141 = vmatmul.mubr.bf16.gmra.mxu0 %v1248_v11  ;;  %1181 = vmatmul.mubr.bf16.gmra.mxu1 %v1249_v12 }
  0x35   : > { %1144 = vmatprep.mubr.msk.bf16.mxu0 %vm1274_vm0, %v1273_v1  ;;  %1184 = vmatprep.mubr.msk.bf16.mxu1 %vm1274_vm0, %v1273_v1 }
  0x3c   : > { %1145 = vmatmul.mubr.bf16.gmra.mxu0 %v1250_v13  ;;  %1185 = vmatmul.mubr.bf16.gmra.mxu1 %v1251_v14 }
  0x3d   : > { %1148 = vmatprep.mubr.msk.bf16.mxu0 %vm1274_vm0, %v1273_v1  ;;  %1188 = vmatprep.mubr.msk.bf16.mxu1 %vm1274_vm0, %v1273_v1 }
  0x44   : > { %1149 = vmatmul.mubr.bf16.gmra.mxu0 %v1252_v15  ;;  %1189 = vmatmul.mubr.bf16.gmra.mxu1 %v1253_v16 }
  0x45   : > { %1152 = vmatprep.mubr.msk.bf16.mxu0 %vm1274_vm0, %v1273_v1  ;;  %1192 = vmatprep.mubr.msk.bf16.mxu1 %vm1274_vm0, %v1273_v1 }
  0x4c   : > { %1153 = vmatmul.mubr.bf16.gmra.mxu0 %v1254_v17  ;;  %1193 = vmatmul.mubr.bf16.gmra.mxu1 %v1255_v18 }
  0x4d   : > { %1156 = vmatprep.mubr.msk.bf16.mxu0 %vm1274_vm0, %v1273_v1  ;;  %1196 = vmatprep.mubr.msk.bf16.mxu1 %vm1274_vm0, %v1273_v1 }
  0x54   : > { %1157 = vmatmul.mubr.bf16.gmra.mxu0 %v1256_v19  ;;  %1197 = vmatmul.mubr.bf16.gmra.mxu1 %v1257_v20 }
  0x55   : > { %1160 = vmatprep.mubr.msk.bf16.mxu0 %vm1274_vm0, %v1273_v1  ;;  %1200 = vmatprep.mubr.msk.bf16.mxu1 %vm1274_vm0, %v1273_v1 }
  0x5c   : > { %1161 = vmatmul.mubr.bf16.gmra.mxu0 %v1258_v21  ;;  %1201 = vmatmul.mubr.bf16.gmra.mxu1 %v1259_v22 }
  0x5d   : > { %1164 = vmatprep.mubr.msk.bf16.mxu0 %vm1274_vm0, %v1273_v1  ;;  %1204 = vmatprep.mubr.msk.bf16.mxu1 %vm1274_vm0, %v1273_v1 }
  0x64   : > { %1165 = vmatmul.mubr.bf16.gmra.mxu0 %v1260_v23  ;;  %1205 = vmatmul.mubr.bf16.gmra.mxu1 %v1261_v24 }
  0x65   : > { %1168 = vmatprep.mubr.msk.bf16.mxu0 %vm1274_vm0, %v1273_v1  ;;  %1208 = vmatprep.mubr.msk.bf16.mxu1 %vm1274_vm0, %v1273_v1 }
  0x6c   : > { %1169 = vmatmul.mubr.bf16.gmra.mxu0 %v1262_v25  ;;  %1209 = vmatmul.mubr.bf16.gmra.mxu1 %v1263_v26 }
  0x6d   : > { %1172 = vmatprep.mubr.msk.bf16.mxu0 %vm1274_vm0, %v1273_v1 }
  0x74   : > { %1173 = vmatmul.mubr.bf16.gmra.mxu0 %v1264_v27 }
  0xec   : > { %v432_v29 = vpop.f32.mrf.mxu0  ;;  %v512_v30 = vpop.f32.mrf.mxu1 }
  0xed   : > { %v513_v31 = vadd.f32 %v1413_v28, %v512_v30  ;;  %v433_v34 = vadd.f32 %v1413_v28, %v432_v29 }
  0xee   : > { %v1138_v32 = vpop.f32.mrf.mxu0  ;;  %v1178_v33 = vpop.f32.mrf.mxu1 }
  0xef   : > { %v603_v37 = vmax.f32 %v513_v31, 0.0  ;;  %v583_v42 = vmax.f32 %v433_v34, 0.0 }
  0xf0   : > { %v435_v35 = vpop.f32.mrf.mxu0  ;;  %v515_v36 = vpop.f32.mrf.mxu1 }
  0xf1   : > { %v436_v38 = vadd.f32 %v1413_v28, %v435_v35  ;;  %v516_v39 = vadd.f32 %v1413_v28, %v515_v36 }
  0xf2   : > { %v1139_v40 = vpop.f32.mrf.mxu0  ;;  %v1179_v41 = vpop.f32.mrf.mxu1 }
  0xf3   : > { %v584_v43 = vmax.f32 %v436_v38, 0.0  ;;  %v604_v44 = vmax.f32 %v516_v39, 0.0 }
  0xf4   : > { %v440_v45 = vpop.f32.mrf.mxu0  ;;  %v520_v46 = vpop.f32.mrf.mxu1 }
  0xf5   : > { %v983_v47 = vpack.c.bf16 %v584_v43, %v583_v42  ;;  %v1033_v48 = vpack.c.bf16 %v604_v44, %v603_v37  ;;  %v521_v49 = vadd.f32 %v1413_v28, %v520_v46  ;;  %v441_v52 = vadd.f32 %v1413_v28, %v440_v45 }
  0xf6   : > { %v1142_v50 = vpop.f32.mrf.mxu0  ;;  %v1182_v51 = vpop.f32.mrf.mxu1 }
  0xf7   : > { %984 = vst [vmem:[%s1424_s13] sm:$0xff] %v983_v47   ;;  %1084 = vst [vmem:[%s1424_s13 + $0x50] sm:$0xff] %v1033_v48   ;;  %v605_v55 = vmax.f32 %v521_v49, 0.0  ;;  %v585_v60 = vmax.f32 %v441_v52, 0.0 }
  0xf8   : > { %v443_v53 = vpop.f32.mrf.mxu0  ;;  %v523_v54 = vpop.f32.mrf.mxu1 }
  0xf9   : > { %v444_v56 = vadd.f32 %v1413_v28, %v443_v53  ;;  %v524_v57 = vadd.f32 %v1413_v28, %v523_v54 }
  0xfa   : > { %v1143_v58 = vpop.f32.mrf.mxu0  ;;  %v1183_v59 = vpop.f32.mrf.mxu1 }
  0xfb   : > { %v586_v61 = vmax.f32 %v444_v56, 0.0  ;;  %v606_v62 = vmax.f32 %v524_v57, 0.0 }
  0xfc   : > { %v448_v63 = vpop.f32.mrf.mxu0  ;;  %v528_v0 = vpop.f32.mrf.mxu1 }
  0xfd   : > { %v988_v1 = vpack.c.bf16 %v586_v61, %v585_v60  ;;  %v1038_v2 = vpack.c.bf16 %v606_v62, %v605_v55  ;;  %v529_v3 = vadd.f32 %v1413_v28, %v528_v0  ;;  %v449_v6 = vadd.f32 %v1413_v28, %v448_v63 }
  0xfe   : > { %v1146_v4 = vpop.f32.mrf.mxu0  ;;  %v1186_v5 = vpop.f32.mrf.mxu1 }
  0xff   : > { %1075 = vst [vmem:[%s1424_s13 + $0x8] sm:$0xff] %v988_v1   ;;  %1085 = vst [vmem:[%s1424_s13 + $0x58] sm:$0xff] %v1038_v2   ;;  %v607_v9 = vmax.f32 %v529_v3, 0.0  ;;  %v587_v14 = vmax.f32 %v449_v6, 0.0 }
 0x100   : > { %v451_v7 = vpop.f32.mrf.mxu0  ;;  %v531_v8 = vpop.f32.mrf.mxu1 }
 0x101   : > { %v452_v10 = vadd.f32 %v1413_v28, %v451_v7  ;;  %v532_v11 = vadd.f32 %v1413_v28, %v531_v8 }
 0x102   : > { %v1147_v12 = vpop.f32.mrf.mxu0  ;;  %v1187_v13 = vpop.f32.mrf.mxu1 }
 0x103   : > { %v588_v15 = vmax.f32 %v452_v10, 0.0  ;;  %v608_v16 = vmax.f32 %v532_v11, 0.0 }
 0x104   : > { %v456_v17 = vpop.f32.mrf.mxu0  ;;  %v536_v18 = vpop.f32.mrf.mxu1 }
 0x105   : > { %v993_v19 = vpack.c.bf16 %v588_v15, %v587_v14  ;;  %v1043_v20 = vpack.c.bf16 %v608_v16, %v607_v9  ;;  %v537_v21 = vadd.f32 %v1413_v28, %v536_v18  ;;  %v457_v24 = vadd.f32 %v1413_v28, %v456_v17 }
 0x106   : > { %v1150_v22 = vpop.f32.mrf.mxu0  ;;  %v1190_v23 = vpop.f32.mrf.mxu1 }
 0x107   : > { %1076 = vst [vmem:[%s1424_s13 + $0x10] sm:$0xff] %v993_v19   ;;  %1086 = vst [vmem:[%s1424_s13 + $0x60] sm:$0xff] %v1043_v20   ;;  %v609_v27 = vmax.f32 %v537_v21, 0.0  ;;  %v589_v33 = vmax.f32 %v457_v24, 0.0 }
 0x108   : > { %v459_v25 = vpop.f32.mrf.mxu0  ;;  %v539_v26 = vpop.f32.mrf.mxu1 }
 0x109   : > { %v460_v29 = vadd.f32 %v1413_v28, %v459_v25  ;;  %v540_v30 = vadd.f32 %v1413_v28, %v539_v26 }
 0x10a   : > { %v1151_v31 = vpop.f32.mrf.mxu0  ;;  %v1191_v32 = vpop.f32.mrf.mxu1 }
 0x10b   : > { %v590_v34 = vmax.f32 %v460_v29, 0.0  ;;  %v610_v35 = vmax.f32 %v540_v30, 0.0 }
 0x10c   : > { %v464_v36 = vpop.f32.mrf.mxu0  ;;  %v544_v37 = vpop.f32.mrf.mxu1 }
 0x10d   : > { %v998_v38 = vpack.c.bf16 %v590_v34, %v589_v33  ;;  %v1048_v39 = vpack.c.bf16 %v610_v35, %v609_v27  ;;  %v545_v40 = vadd.f32 %v1413_v28, %v544_v37  ;;  %v465_v43 = vadd.f32 %v1413_v28, %v464_v36 }
 0x10e   : > { %v1154_v41 = vpop.f32.mrf.mxu0  ;;  %v1194_v42 = vpop.f32.mrf.mxu1 }
 0x10f   : > { %1077 = vst [vmem:[%s1424_s13 + $0x18] sm:$0xff] %v998_v38   ;;  %1087 = vst [vmem:[%s1424_s13 + $0x68] sm:$0xff] %v1048_v39   ;;  %v611_v46 = vmax.f32 %v545_v40, 0.0  ;;  %v591_v51 = vmax.f32 %v465_v43, 0.0 }
 0x110   : > { %v467_v44 = vpop.f32.mrf.mxu0  ;;  %v547_v45 = vpop.f32.mrf.mxu1 }
 0x111   : > { %v468_v47 = vadd.f32 %v1413_v28, %v467_v44  ;;  %v548_v48 = vadd.f32 %v1413_v28, %v547_v45 }
 0x112   : > { %v1155_v49 = vpop.f32.mrf.mxu0  ;;  %v1195_v50 = vpop.f32.mrf.mxu1 }
 0x113   : > { %v592_v52 = vmax.f32 %v468_v47, 0.0  ;;  %v612_v53 = vmax.f32 %v548_v48, 0.0 }
 0x114   : > { %v472_v54 = vpop.f32.mrf.mxu0  ;;  %v552_v55 = vpop.f32.mrf.mxu1 }
 0x115   : > { %v1003_v56 = vpack.c.bf16 %v592_v52, %v591_v51  ;;  %v1053_v57 = vpack.c.bf16 %v612_v53, %v611_v46  ;;  %v553_v58 = vadd.f32 %v1413_v28, %v552_v55  ;;  %v473_v61 = vadd.f32 %v1413_v28, %v472_v54 }
 0x116   : > { %v1158_v59 = vpop.f32.mrf.mxu0  ;;  %v1198_v60 = vpop.f32.mrf.mxu1 }
 0x117   : > { %1078 = vst [vmem:[%s1424_s13 + $0x20] sm:$0xff] %v1003_v56   ;;  %1088 = vst [vmem:[%s1424_s13 + $0x70] sm:$0xff] %v1053_v57   ;;  %v613_v0 = vmax.f32 %v553_v58, 0.0  ;;  %v593_v5 = vmax.f32 %v473_v61, 0.0 }
 0x118   : > { %v475_v62 = vpop.f32.mrf.mxu0  ;;  %v555_v63 = vpop.f32.mrf.mxu1 }
 0x119   : > { %v476_v1 = vadd.f32 %v1413_v28, %v475_v62  ;;  %v556_v2 = vadd.f32 %v1413_v28, %v555_v63 }
 0x11a   : > { %v1159_v3 = vpop.f32.mrf.mxu0  ;;  %v1199_v4 = vpop.f32.mrf.mxu1 }
 0x11b   : > { %v594_v6 = vmax.f32 %v476_v1, 0.0  ;;  %v614_v7 = vmax.f32 %v556_v2, 0.0 }
 0x11c   : > { %v480_v8 = vpop.f32.mrf.mxu0  ;;  %v560_v9 = vpop.f32.mrf.mxu1 }
 0x11d   : > { %v1008_v10 = vpack.c.bf16 %v594_v6, %v593_v5  ;;  %v1058_v11 = vpack.c.bf16 %v614_v7, %v613_v0  ;;  %v561_v12 = vadd.f32 %v1413_v28, %v560_v9  ;;  %v481_v15 = vadd.f32 %v1413_v28, %v480_v8 }
 0x11e   : > { %v1162_v13 = vpop.f32.mrf.mxu0  ;;  %v1202_v14 = vpop.f32.mrf.mxu1 }
 0x11f   : > { %1079 = vst [vmem:[%s1424_s13 + $0x28] sm:$0xff] %v1008_v10   ;;  %1089 = vst [vmem:[%s1424_s13 + $0x78] sm:$0xff] %v1058_v11   ;;  %v615_v18 = vmax.f32 %v561_v12, 0.0  ;;  %v595_v23 = vmax.f32 %v481_v15, 0.0 }
 0x120   : > { %v483_v16 = vpop.f32.mrf.mxu0  ;;  %v563_v17 = vpop.f32.mrf.mxu1 }
 0x121   : > { %v484_v19 = vadd.f32 %v1413_v28, %v483_v16  ;;  %v564_v20 = vadd.f32 %v1413_v28, %v563_v17 }
 0x122   : > { %v1163_v21 = vpop.f32.mrf.mxu0  ;;  %v1203_v22 = vpop.f32.mrf.mxu1 }
 0x123   : > { %v596_v24 = vmax.f32 %v484_v19, 0.0  ;;  %v616_v25 = vmax.f32 %v564_v20, 0.0 }
 0x124   : > { %v488_v26 = vpop.f32.mrf.mxu0  ;;  %v568_v27 = vpop.f32.mrf.mxu1 }
 0x125   : > { %v1013_v29 = vpack.c.bf16 %v596_v24, %v595_v23  ;;  %v1063_v30 = vpack.c.bf16 %v616_v25, %v615_v18  ;;  %v569_v31 = vadd.f32 %v1413_v28, %v568_v27  ;;  %v489_v34 = vadd.f32 %v1413_v28, %v488_v26 }
 0x126   : > { %v1166_v32 = vpop.f32.mrf.mxu0  ;;  %v1206_v33 = vpop.f32.mrf.mxu1 }
 0x127   : > { %1080 = vst [vmem:[%s1424_s13 + $0x30] sm:$0xff] %v1013_v29   ;;  %1090 = vst [vmem:[%s1424_s13 + $0x80] sm:$0xff] %v1063_v30   ;;  %v617_v37 = vmax.f32 %v569_v31, 0.0  ;;  %v597_v42 = vmax.f32 %v489_v34, 0.0 }
 0x128   : > { %v491_v35 = vpop.f32.mrf.mxu0  ;;  %v571_v36 = vpop.f32.mrf.mxu1 }
 0x129   : > { %v492_v38 = vadd.f32 %v1413_v28, %v491_v35  ;;  %v572_v39 = vadd.f32 %v1413_v28, %v571_v36 }
 0x12a   : > { %v1167_v40 = vpop.f32.mrf.mxu0  ;;  %v1207_v41 = vpop.f32.mrf.mxu1 }
 0x12b   : > { %v598_v43 = vmax.f32 %v492_v38, 0.0  ;;  %v618_v44 = vmax.f32 %v572_v39, 0.0 }
 0x12c   : > { %v496_v45 = vpop.f32.mrf.mxu0  ;;  %v576_v46 = vpop.f32.mrf.mxu1 }
 0x12d   : > { %v1018_v47 = vpack.c.bf16 %v598_v43, %v597_v42  ;;  %v1068_v48 = vpack.c.bf16 %v618_v44, %v617_v37  ;;  %v577_v49 = vadd.f32 %v1413_v28, %v576_v46  ;;  %v497_v52 = vadd.f32 %v1413_v28, %v496_v45 }
 0x12e   : > { %v1170_v50 = vpop.f32.mrf.mxu0  ;;  %v1210_v51 = vpop.f32.mrf.mxu1 }
 0x12f   : > { %1081 = vst [vmem:[%s1424_s13 + $0x38] sm:$0xff] %v1018_v47   ;;  %1091 = vst [vmem:[%s1424_s13 + $0x88] sm:$0xff] %v1068_v48   ;;  %v619_v55 = vmax.f32 %v577_v49, 0.0  ;;  %v599_v60 = vmax.f32 %v497_v52, 0.0 }
 0x130   : > { %v499_v53 = vpop.f32.mrf.mxu0  ;;  %v579_v54 = vpop.f32.mrf.mxu1 }
 0x131   : > { %v500_v56 = vadd.f32 %v1413_v28, %v499_v53  ;;  %v580_v57 = vadd.f32 %v1413_v28, %v579_v54 }
 0x132   : > { %v1171_v58 = vpop.f32.mrf.mxu0  ;;  %v1211_v59 = vpop.f32.mrf.mxu1 }
 0x133   : > { %v600_v61 = vmax.f32 %v500_v56, 0.0  ;;  %v620_v62 = vmax.f32 %v580_v57, 0.0 }
 0x134   : > { %v504_v63 = vpop.f32.mrf.mxu0 }
 0x135   : > { %v1023_v0 = vpack.c.bf16 %v600_v61, %v599_v60  ;;  %v1073_v1 = vpack.c.bf16 %v620_v62, %v619_v55  ;;  %v505_v3 = vadd.f32 %v1413_v28, %v504_v63 }
 0x136   : > { %v1174_v2 = vpop.f32.mrf.mxu0 }
 0x137   : > { %1082 = vst [vmem:[%s1424_s13 + $0x40] sm:$0xff] %v1023_v0   ;;  %1092 = vst [vmem:[%s1424_s13 + $0x90] sm:$0xff] %v1073_v1   ;;  %v601_v7 = vmax.f32 %v505_v3, 0.0 }
 0x138   : > { %v507_v4 = vpop.f32.mrf.mxu0 }
 0x139   : > { %v508_v5 = vadd.f32 %v1413_v28, %v507_v4 }
 0x13a   : > { %v1175_v6 = vpop.f32.mrf.mxu0 }
 0x13b   : > { %v602_v8 = vmax.f32 %v508_v5, 0.0 }
 0x13d   : > { %v1028_v9 = vpack.c.bf16 %v602_v8, %v601_v7 }
 0x13f   : > { %1083 = vst [vmem:[%s1424_s13 + $0x48] sm:$0xff] %v1028_v9  }
 0x140 PF: > { %s13_s12 = sadd.s32 1, %s1271_s12  }
 0x141   : > { %p10_p4 = scmp.ge.s32.totalorder %s13_s12, 4  }
 0x143   :  { %12 = sbr.rel (!%p10_p4) target bundleno = 1 (0x1), region = 62 }

// kernel: cae_forward.17
= control target key start
LH: loop header
LB: loop body
LE: loop exit
PB: predicated region body
PF: predicated region fallthrough
CT: control target
= control target key end

     0   :  { %s2391_s12 = smov 0   ;;  %s2578_s0 = inlined_call_operand.vmem [shape: bf16[2560,128], index: 0, kind: input, shape index: {}]   ;;  %s2579_s1 = inlined_call_operand.vmem [shape: bf16[128,128], index: 1, kind: input, shape index: {}]   ;;  %s2580_s2 = inlined_call_operand.vmem [shape: f32[1,128], index: 2, kind: input, shape index: {}]   ;;  %s2581_s3 = inlined_call_operand.vmem [shape: bf16[2560,128], index: 3, kind: output, shape index: {}]  }
   0x1 LB: > { %s1551_s13 = sadd.s32 4294967295, %s2369_s12   ;;  %p1555_p0 = scmp.ge.s32.totalorder %s2369_s12, 1  ;;  %s2369_s12 = sphi %s2391_s12, %s13_s12  }
   0x2   : > { %p138_p1 = scmp.lt.s32.totalorder %s2369_s12, 6 }
   0x4   : > { %p139_p2 = pnand %p1555_p0, %p138_p1 }
   0x5   : > { %s1556_s16 = sshll.u32 (!%p139_p2), %s1551_s13, 6 }
   0x6   : > { %142 = sbr.rel (%p139_p2) target bundleno = 392 (0x188), region = 32  ;;  %p163_p3 = scmp.lt.s32.totalorder (!%p139_p2), %s1556_s16, 319 }
   0xb   : > { %v2066_v0 = vld [vmem:[%s2579_s1 + $0x38] sm:$0xff]   ;;  %v2067_v1 = vld [vmem:[%s2579_s1 + $0x30] sm:$0xff]   ;;  %s2583_s16 = smov (!%p163_p3, %s1556_s16), 319  ;;  %v2068_v2 = vld [vmem:[%s2579_s1 + $0x28] sm:$0xff]  }
   0xc   : > { %1962 = vmatprep.subr.bf16.mxu0 %v2066_v0  ;;  %2042 = vmatprep.subr.bf16.mxu1 %v2066_v0  ;;  %s1557_s21 = sshll.u32 %s2583_s16, 2  ;;  %v2069_v3 = vld [vmem:[%s2579_s1 + $0x20] sm:$0xff]   ;;  %v2070_v6 = vld [vmem:[%s2579_s1 + $0x18] sm:$0xff]   ;;  %v2071_v7 = vld [vmem:[%s2579_s1 + $0x10] sm:$0xff]  }
   0xd   : > { %1963 = vmatpush3.bf16.msra.mxu0 %v2066_v0  ;;  %2050 = vmatpush3.bf16.msra.mxu1 %v2066_v0  ;;  %s2416_s24 = scalar_lea.vmem %s2578_s0, %s1557_s21  ;;  %v2072_v8 = vld [vmem:[%s2579_s1 + $0x8] sm:$0xff]   ;;  %v2073_v9 = vld [vmem:[%s2579_s1] sm:$0xff]   ;;  %s2504_s13 = scalar_lea.vmem %s2581_s3, %s1557_s21 }
   0xe   : > { %1964 = vmatprep.subr.bf16.mxu0 %v2067_v1  ;;  %2043 = vmatprep.subr.bf16.mxu1 %v2067_v1  ;;  %v2074_v4 = vld [vmem:[%s2416_s24] sm:$0xff]   ;;  %v2076_v10 = vld [vmem:[%s2416_s24 + $0x8] sm:$0xff]   ;;  %v2078_v12 = vld [vmem:[%s2416_s24 + $0x10] sm:$0xff]  }
   0xf   : > { %v2075_v5 = vld [vmem:[%s2416_s24 + $0x80] sm:$0xff]   ;;  %1978 = vmatprep.mubr.bf16.mxu0 %v2074_v4  ;;  %v2077_v11 = vld [vmem:[%s2416_s24 + $0x88] sm:$0xff]   ;;  %v2079_v13 = vld [vmem:[%s2416_s24 + $0x90] sm:$0xff]  }
  0x10   : > { %2010 = vmatprep.mubr.bf16.mxu1 %v2075_v5  ;;  %v2080_v14 = vld [vmem:[%s2416_s24 + $0x18] sm:$0xff]   ;;  %v2082_v16 = vld [vmem:[%s2416_s24 + $0x20] sm:$0xff]   ;;  %v2084_v18 = vld [vmem:[%s2416_s24 + $0x28] sm:$0xff]  }
  0x11   : > { %1965 = vmatpush3.bf16.msra.mxu0 %v2067_v1  ;;  %2051 = vmatpush3.bf16.msra.mxu1 %v2067_v1  ;;  %v2081_v15 = vld [vmem:[%s2416_s24 + $0x98] sm:$0xff]   ;;  %v2083_v17 = vld [vmem:[%s2416_s24 + $0xa0] sm:$0xff]   ;;  %v2085_v19 = vld [vmem:[%s2416_s24 + $0xa8] sm:$0xff]  }
  0x12   : > { %1966 = vmatprep.subr.bf16.mxu0 %v2068_v2  ;;  %2044 = vmatprep.subr.bf16.mxu1 %v2068_v2  ;;  %v2086_v20 = vld [vmem:[%s2416_s24 + $0x30] sm:$0xff]   ;;  %v2088_v22 = vld [vmem:[%s2416_s24 + $0x38] sm:$0xff]   ;;  %v2090_v24 = vld [vmem:[%s2416_s24 + $0x40] sm:$0xff]  }
  0x13   : > { %v2087_v21 = vld [vmem:[%s2416_s24 + $0xb0] sm:$0xff]   ;;  %v2089_v23 = vld [vmem:[%s2416_s24 + $0xb8] sm:$0xff]   ;;  %v2091_v25 = vld [vmem:[%s2416_s24 + $0xc0] sm:$0xff]  }
  0x14   : > { %v2092_v26 = vld [vmem:[%s2416_s24 + $0x48] sm:$0xff]   ;;  %v2094_v28 = vld [vmem:[%s2416_s24 + $0x50] sm:$0xff]   ;;  %v2096_v30 = vld [vmem:[%s2416_s24 + $0x58] sm:$0xff]  }
  0x15   : > { %1967 = vmatpush3.bf16.msra.mxu0 %v2068_v2  ;;  %2052 = vmatpush3.bf16.msra.mxu1 %v2068_v2  ;;  %v2093_v27 = vld [vmem:[%s2416_s24 + $0xc8] sm:$0xff]   ;;  %v2095_v29 = vld [vmem:[%s2416_s24 + $0xd0] sm:$0xff]   ;;  %v2097_v31 = vld [vmem:[%s2416_s24 + $0xd8] sm:$0xff]  }
  0x16   : > { %1968 = vmatprep.subr.bf16.mxu0 %v2069_v3  ;;  %2045 = vmatprep.subr.bf16.mxu1 %v2069_v3  ;;  %v2098_v32 = vld [vmem:[%s2416_s24 + $0x60] sm:$0xff]   ;;  %v2100_v34 = vld [vmem:[%s2416_s24 + $0x68] sm:$0xff]   ;;  %v2102_v36 = vld [vmem:[%s2416_s24 + $0x70] sm:$0xff]  }
  0x17   : > { %v2099_v33 = vld [vmem:[%s2416_s24 + $0xe0] sm:$0xff]   ;;  %v2101_v35 = vld [vmem:[%s2416_s24 + $0xe8] sm:$0xff]   ;;  %v2103_v37 = vld [vmem:[%s2416_s24 + $0xf0] sm:$0xff]  }
  0x18   : > { %v2104_v38 = vld [vmem:[%s2416_s24 + $0x78] sm:$0xff]   ;;  %v2468_v40 = vld [vmem:[%s2580_s2] ss:$0 sm:$0xff] }
  0x19   : > { %1969 = vmatpush3.bf16.msra.mxu0 %v2069_v3  ;;  %2053 = vmatpush3.bf16.msra.mxu1 %v2069_v3  ;;  %v2105_v39 = vld [vmem:[%s2416_s24 + $0xf8] sm:$0xff]  }
  0x1a   : > { %1970 = vmatprep.subr.bf16.mxu0 %v2070_v6  ;;  %2046 = vmatprep.subr.bf16.mxu1 %v2070_v6 }
  0x1d   : > { %1971 = vmatpush3.bf16.msra.mxu0 %v2070_v6  ;;  %2054 = vmatpush3.bf16.msra.mxu1 %v2070_v6 }
  0x1e   : > { %1972 = vmatprep.subr.bf16.mxu0 %v2071_v7  ;;  %2047 = vmatprep.subr.bf16.mxu1 %v2071_v7 }
  0x21   : > { %1973 = vmatpush3.bf16.msra.mxu0 %v2071_v7  ;;  %2055 = vmatpush3.bf16.msra.mxu1 %v2071_v7 }
  0x22   : > { %1974 = vmatprep.subr.bf16.mxu0 %v2072_v8  ;;  %2048 = vmatprep.subr.bf16.mxu1 %v2072_v8 }
  0x25   : > { %1975 = vmatpush3.bf16.msra.mxu0 %v2072_v8  ;;  %2056 = vmatpush3.bf16.msra.mxu1 %v2072_v8 }
  0x26   : > { %1976 = vmatprep.subr.bf16.mxu0 %v2073_v9  ;;  %2049 = vmatprep.subr.bf16.mxu1 %v2073_v9 }
  0x29   : > { %1977 = vmatpush3.bf16.msra.mxu0 %v2073_v9  ;;  %2057 = vmatpush3.bf16.msra.mxu1 %v2073_v9 }
  0x2c   : > { %1979 = vmatmul.mubr.bf16.vlgmr.msra.gmra.mxu0 %v2076_v10  ;;  %2011 = vmatmul.mubr.bf16.vlgmr.msra.gmra.mxu1 %v2077_v11 }
  0x2d   : > { %1982 = vmatprep.mubr.bf16.mxu0 %v2078_v12  ;;  %2014 = vmatprep.mubr.bf16.mxu1 %v2079_v13 }
  0x34   : > { %1983 = vmatmul.mubr.bf16.gmra.mxu0 %v2080_v14  ;;  %2015 = vmatmul.mubr.bf16.gmra.mxu1 %v2081_v15 }
  0x35   : > { %1986 = vmatprep.mubr.bf16.mxu0 %v2082_v16  ;;  %2018 = vmatprep.mubr.bf16.mxu1 %v2083_v17 }
  0x3c   : > { %1987 = vmatmul.mubr.bf16.gmra.mxu0 %v2084_v18  ;;  %2019 = vmatmul.mubr.bf16.gmra.mxu1 %v2085_v19 }
  0x3d   : > { %1990 = vmatprep.mubr.bf16.mxu0 %v2086_v20  ;;  %2022 = vmatprep.mubr.bf16.mxu1 %v2087_v21 }
  0x44   : > { %1991 = vmatmul.mubr.bf16.gmra.mxu0 %v2088_v22  ;;  %2023 = vmatmul.mubr.bf16.gmra.mxu1 %v2089_v23 }
  0x45   : > { %1994 = vmatprep.mubr.bf16.mxu0 %v2090_v24  ;;  %2026 = vmatprep.mubr.bf16.mxu1 %v2091_v25 }
  0x4c   : > { %1995 = vmatmul.mubr.bf16.gmra.mxu0 %v2092_v26  ;;  %2027 = vmatmul.mubr.bf16.gmra.mxu1 %v2093_v27 }
  0x4d   : > { %1998 = vmatprep.mubr.bf16.mxu0 %v2094_v28  ;;  %2030 = vmatprep.mubr.bf16.mxu1 %v2095_v29 }
  0x54   : > { %1999 = vmatmul.mubr.bf16.gmra.mxu0 %v2096_v30  ;;  %2031 = vmatmul.mubr.bf16.gmra.mxu1 %v2097_v31 }
  0x55   : > { %2002 = vmatprep.mubr.bf16.mxu0 %v2098_v32  ;;  %2034 = vmatprep.mubr.bf16.mxu1 %v2099_v33 }
  0x5c   : > { %2003 = vmatmul.mubr.bf16.gmra.mxu0 %v2100_v34  ;;  %2035 = vmatmul.mubr.bf16.gmra.mxu1 %v2101_v35 }
  0x5d   : > { %2006 = vmatprep.mubr.bf16.mxu0 %v2102_v36  ;;  %2038 = vmatprep.mubr.bf16.mxu1 %v2103_v37 }
  0x64   : > { %2007 = vmatmul.mubr.bf16.gmra.mxu0 %v2104_v38  ;;  %2039 = vmatmul.mubr.bf16.gmra.mxu1 %v2105_v39 }
  0xec   : > { %v1980_v41 = vpop.f32.mrf.mxu0  ;;  %v2012_v42 = vpop.f32.mrf.mxu1 }
  0xed   : > { %v545_v43 = vadd.f32 %v1980_v41, %v2468_v40  ;;  %v673_v44 = vadd.f32 %v2012_v42, %v2468_v40 }
  0xee   : > { %v536_v45 = vpop.f32.mrf.mxu0  ;;  %v664_v46 = vpop.f32.mrf.mxu1 }
  0xef   : > { %v793_v47 = vsub.f32 0.0, %v545_v43  ;;  %v825_v48 = vsub.f32 0.0, %v673_v44  ;;  %v537_v49 = vadd.f32 %v2468_v40, %v536_v45  ;;  %v665_v50 = vadd.f32 %v2468_v40, %v664_v46 }
  0xf0   : > { %v1981_v51 = vpop.f32.mrf.mxu0  ;;  %v2013_v52 = vpop.f32.mrf.mxu1 }
  0xf1   : > { %v859_v53 = vmul.f32 1.442695, %v793_v47  ;;  %v923_v54 = vmul.f32 1.442695, %v825_v48  ;;  %v791_v55 = vsub.f32 0.0, %v537_v49  ;;  %v823_v56 = vsub.f32 0.0, %v665_v50 }
  0xf2   : > { %v548_v57 = vadd.f32 %v1981_v51, %v2468_v40  ;;  %v676_v58 = vadd.f32 %v2013_v52, %v2468_v40  ;;  %v539_v59 = vpop.f32.mrf.mxu0  ;;  %v667_v60 = vpop.f32.mrf.mxu1 }
  0xf3   : > { %2106 = vpow2.f32 %v859_v53  ;;  %v855_v61 = vmul.f32 1.442695, %v791_v55  ;;  %v919_v62 = vmul.f32 1.442695, %v823_v56  ;;  %v540_v63 = vadd.f32 %v2468_v40, %v539_v59 }
  0xf4   : > { %2108 = vpow2.f32 %v923_v54  ;;  %v794_v0 = vsub.f32 0.0, %v548_v57  ;;  %v826_v1 = vsub.f32 0.0, %v676_v58  ;;  %v668_v2 = vadd.f32 %v2468_v40, %v667_v60  ;;  %v1984_v3 = vpop.f32.mrf.mxu0  ;;  %v2016_v4 = vpop.f32.mrf.mxu1 }
  0xf5   : > { %2110 = vpow2.f32 %v855_v61  ;;  %v792_v5 = vsub.f32 0.0, %v540_v63  ;;  %v561_v6 = vadd.f32 %v1984_v3, %v2468_v40  ;;  %v689_v7 = vadd.f32 %v2016_v4, %v2468_v40 }
  0xf6   : > { %2112 = vpow2.f32 %v919_v62  ;;  %v861_v8 = vmul.f32 1.442695, %v794_v0  ;;  %v925_v9 = vmul.f32 1.442695, %v826_v1  ;;  %v824_v10 = vsub.f32 0.0, %v668_v2  ;;  %v552_v11 = vpop.f32.mrf.mxu0  ;;  %v680_v12 = vpop.f32.mrf.mxu1 }
  0xf7   : > { %v857_v13 = vmul.f32 1.442695, %v792_v5  ;;  %v797_v14 = vsub.f32 0.0, %v561_v6  ;;  %v829_v15 = vsub.f32 0.0, %v689_v7  ;;  %v553_v16 = vadd.f32 %v2468_v40, %v552_v11 }
  0xf8   : > { %2114 = vpow2.f32 %v861_v8  ;;  %v921_v17 = vmul.f32 1.442695, %v824_v10  ;;  %v681_v18 = vadd.f32 %v2468_v40, %v680_v12  ;;  %v1985_v19 = vpop.f32.mrf.mxu0  ;;  %v2017_v20 = vpop.f32.mrf.mxu1 }
  0xf9   : > { %2116 = vpow2.f32 %v925_v9  ;;  %v867_v21 = vmul.f32 1.442695, %v797_v14  ;;  %v931_v22 = vmul.f32 1.442695, %v829_v15  ;;  %v795_v23 = vsub.f32 0.0, %v553_v16 }
  0xfa   : > { %2118 = vpow2.f32 %v857_v13  ;;  %v827_v24 = vsub.f32 0.0, %v681_v18  ;;  %v564_v25 = vadd.f32 %v1985_v19, %v2468_v40  ;;  %v692_v26 = vadd.f32 %v2017_v20, %v2468_v40  ;;  %v555_v27 = vpop.f32.mrf.mxu0  ;;  %v683_v28 = vpop.f32.mrf.mxu1 }
  0xfb   : > { %2120 = vpow2.f32 %v921_v17  ;;  %v863_v29 = vmul.f32 1.442695, %v795_v23  ;;  %v556_v30 = vadd.f32 %v2468_v40, %v555_v27  ;;  %v684_v31 = vadd.f32 %v2468_v40, %v683_v28 }
  0xfc   : > { %2122 = vpow2.f32 %v867_v21  ;;  %v927_v32 = vmul.f32 1.442695, %v827_v24  ;;  %v798_v33 = vsub.f32 0.0, %v564_v25  ;;  %v830_v34 = vsub.f32 0.0, %v692_v26  ;;  %v1988_v35 = vpop.f32.mrf.mxu0  ;;  %v2020_v36 = vpop.f32.mrf.mxu1 }
  0xfd   : > { %2124 = vpow2.f32 %v931_v22  ;;  %v796_v37 = vsub.f32 0.0, %v556_v30  ;;  %v828_v44 = vsub.f32 0.0, %v684_v31  ;;  %v577_v57 = vadd.f32 %v1988_v35, %v2468_v40 }
  0xfe   : > { %2126 = vpow2.f32 %v863_v29  ;;  %v869_v38 = vmul.f32 1.442695, %v798_v33  ;;  %v933_v39 = vmul.f32 1.442695, %v830_v34  ;;  %v568_v41 = vpop.f32.mrf.mxu0  ;;  %v696_v42 = vpop.f32.mrf.mxu1  ;;  %v705_v59 = vadd.f32 %v2020_v36, %v2468_v40 }
  0xff   : > { %2128 = vpow2.f32 %v927_v32  ;;  %v865_v43 = vmul.f32 1.442695, %v796_v37  ;;  %v929_v54 = vmul.f32 1.442695, %v828_v44  ;;  %v801_v4 = vsub.f32 0.0, %v577_v57 }
 0x100   : > { %v2107_v45 = vpop.eup %2106  ;;  %2130 = vpow2.f32 %v869_v38  ;;  %v1989_v46 = vpop.f32.mrf.mxu0  ;;  %v833_v7 = vsub.f32 0.0, %v705_v59  ;;  %v569_v8 = vadd.f32 %v2468_v40, %v568_v41  ;;  %v697_v11 = vadd.f32 %v2468_v40, %v696_v42 }
 0x101   : > { %v2109_v47 = vpop.eup %2108  ;;  %v985_v48 = vadd.f32 1.0, %v2107_v45  ;;  %2132 = vpow2.f32 %v933_v39  ;;  %v2021_v51 = vpop.f32.mrf.mxu1  ;;  %v580_v12 = vadd.f32 %v1989_v46, %v2468_v40  ;;  %v875_v20 = vmul.f32 1.442695, %v801_v4 }
 0x102   : > { %v2111_v49 = vpop.eup %2110  ;;  %v1017_v50 = vadd.f32 1.0, %v2109_v47  ;;  %2134 = vpow2.f32 %v865_v43  ;;  %v571_v55 = vpop.f32.mrf.mxu0  ;;  %v708_v16 = vadd.f32 %v2021_v51, %v2468_v40  ;;  %v939_v24 = vmul.f32 1.442695, %v833_v7 }
 0x103   : > { %v2113_v52 = vpop.eup %2112  ;;  %2136 = vrcp.f32 %v985_v48  ;;  %v983_v53 = vadd.f32 1.0, %v2111_v49  ;;  %v699_v62 = vpop.f32.mrf.mxu1  ;;  %v572_v21 = vadd.f32 %v2468_v40, %v571_v55  ;;  %v799_v25 = vsub.f32 0.0, %v569_v8 }
 0x104   : > { %2138 = vrcp.f32 %v1017_v50  ;;  %v1015_v56 = vadd.f32 1.0, %v2113_v52  ;;  %v1992_v1 = vpop.f32.mrf.mxu0  ;;  %v831_v28 = vsub.f32 0.0, %v697_v11  ;;  %v802_v29 = vsub.f32 0.0, %v580_v12 }
 0x105   : > { %v2115_v58 = vpop.eup %2114  ;;  %2140 = vrcp.f32 %v983_v53  ;;  %v2024_v13 = vpop.f32.mrf.mxu1  ;;  %v834_v33 = vsub.f32 0.0, %v708_v16  ;;  %v700_v34 = vadd.f32 %v2468_v40, %v699_v62  ;;  %v800_v38 = vsub.f32 0.0, %v572_v21 }
 0x106   : > { %v2117_v60 = vpop.eup %2116  ;;  %2142 = vrcp.f32 %v1015_v56  ;;  %v986_v61 = vadd.f32 1.0, %v2115_v58  ;;  %v584_v17 = vpop.f32.mrf.mxu0  ;;  %v593_v39 = vadd.f32 %v1992_v1, %v2468_v40  ;;  %v871_v42 = vmul.f32 1.442695, %v799_v25 }
 0x107   : > { %v2119_v63 = vpop.eup %2118  ;;  %v1018_v0 = vadd.f32 1.0, %v2117_v60  ;;  %2144 = vpow2.f32 %v929_v54  ;;  %v712_v30 = vpop.f32.mrf.mxu1  ;;  %v721_v43 = vadd.f32 %v2024_v13, %v2468_v40  ;;  %v935_v45 = vmul.f32 1.442695, %v831_v28 }
 0x108   : > { %v2121_v2 = vpop.eup %2120  ;;  %2146 = vrcp.f32 %v986_v61  ;;  %v984_v3 = vadd.f32 1.0, %v2119_v63  ;;  %v1993_v35 = vpop.f32.mrf.mxu0  ;;  %v877_v46 = vmul.f32 1.442695, %v802_v29  ;;  %v585_v47 = vadd.f32 %v2468_v40, %v584_v17 }
 0x109   : > { %v2123_v5 = vpop.eup %2122  ;;  %2148 = vrcp.f32 %v1018_v0  ;;  %v1016_v6 = vadd.f32 1.0, %v2121_v2  ;;  %v2025_v48 = vpop.f32.mrf.mxu1  ;;  %v941_v50 = vmul.f32 1.442695, %v834_v33  ;;  %v832_v51 = vsub.f32 0.0, %v700_v34 }
 0x10a   : > { %v2125_v9 = vpop.eup %2124  ;;  %2150 = vrcp.f32 %v984_v3  ;;  %v989_v10 = vadd.f32 1.0, %v2123_v5  ;;  %v713_v52 = vadd.f32 %v2468_v40, %v712_v30  ;;  %v587_v53 = vpop.f32.mrf.mxu0  ;;  %v873_v55 = vmul.f32 1.442695, %v800_v38 }
 0x10b   : > { %v2127_v14 = vpop.eup %2126  ;;  %2152 = vrcp.f32 %v1016_v6  ;;  %v1021_v15 = vadd.f32 1.0, %v2125_v9  ;;  %v805_v56 = vsub.f32 0.0, %v593_v39  ;;  %v596_v57 = vadd.f32 %v1993_v35, %v2468_v40  ;;  %v715_v2 = vpop.f32.mrf.mxu1 }
 0x10c   : > { %v2129_v18 = vpop.eup %2128  ;;  %2154 = vrcp.f32 %v989_v10  ;;  %v987_v19 = vadd.f32 1.0, %v2127_v14  ;;  %v837_v60 = vsub.f32 0.0, %v721_v43  ;;  %v724_v61 = vadd.f32 %v2025_v48, %v2468_v40  ;;  %v1996_v7 = vpop.f32.mrf.mxu0 }
 0x10d   : > { %v2131_v22 = vpop.eup %2130  ;;  %2156 = vrcp.f32 %v1021_v15  ;;  %v1019_v23 = vadd.f32 1.0, %v2129_v18  ;;  %v803_v0 = vsub.f32 0.0, %v585_v47  ;;  %v588_v1 = vadd.f32 %v2468_v40, %v587_v53 }
 0x10e   : > { %v2133_v26 = vpop.eup %2132  ;;  %2158 = vrcp.f32 %v987_v19  ;;  %v990_v27 = vadd.f32 1.0, %v2131_v22  ;;  %v937_v5 = vmul.f32 1.442695, %v832_v51  ;;  %v835_v6 = vsub.f32 0.0, %v713_v52  ;;  %v2028_v19 = vpop.f32.mrf.mxu1 }
 0x10f   : > { %v2135_v31 = vpop.eup %2134  ;;  %2160 = vrcp.f32 %v1019_v23  ;;  %v1022_v32 = vadd.f32 1.0, %v2133_v26  ;;  %v883_v10 = vmul.f32 1.442695, %v805_v56  ;;  %v806_v11 = vsub.f32 0.0, %v596_v57  ;;  %v600_v23 = vpop.f32.mrf.mxu0 }
 0x110   : > { %v2137_v36 = vpop.eup %2136  ;;  %2162 = vrcp.f32 %v990_v27  ;;  %v988_v37 = vadd.f32 1.0, %v2135_v31  ;;  %v947_v14 = vmul.f32 1.442695, %v837_v60  ;;  %v838_v15 = vsub.f32 0.0, %v724_v61  ;;  %v728_v31 = vpop.f32.mrf.mxu1 }
 0x111   : > { %v2139_v41 = vpop.eup %2138  ;;  %2164 = vrcp.f32 %v1022_v32  ;;  %v879_v17 = vmul.f32 1.442695, %v803_v0  ;;  %v804_v18 = vsub.f32 0.0, %v588_v1  ;;  %v943_v21 = vmul.f32 1.442695, %v835_v6  ;;  %v1997_v35 = vpop.f32.mrf.mxu0 }
 0x112   : > { %v2141_v44 = vpop.eup %2140  ;;  %2166 = vrcp.f32 %v988_v37  ;;  %v716_v22 = vadd.f32 %v2468_v40, %v715_v2  ;;  %v885_v25 = vmul.f32 1.442695, %v806_v11  ;;  %v949_v27 = vmul.f32 1.442695, %v838_v15  ;;  %v2029_v43 = vpop.f32.mrf.mxu1 }
 0x113   : > { %v2143_v49 = vpop.eup %2142  ;;  %2168 = vpow2.f32 %v875_v20  ;;  %v881_v30 = vmul.f32 1.442695, %v804_v18  ;;  %v603_v47 = vpop.f32.mrf.mxu0  ;;  %v737_v53 = vadd.f32 %v2028_v19, %v2468_v40  ;;  %v601_v2 = vadd.f32 %v2468_v40, %v600_v23 }
 0x114   : > { %v2145_v54 = vpop.eup %2144  ;;  %2170 = vpow2.f32 %v939_v24  ;;  %v836_v34 = vsub.f32 0.0, %v716_v22  ;;  %v731_v56 = vpop.f32.mrf.mxu1  ;;  %v612_v6 = vadd.f32 %v1997_v35, %v2468_v40  ;;  %v604_v15 = vadd.f32 %v2468_v40, %v603_v47 }
 0x115   : > { %v2147_v58 = vpop.eup %2146  ;;  %v1020_v59 = vadd.f32 1.0, %v2145_v54  ;;  %2172 = vpow2.f32 %v871_v42  ;;  %v841_v1 = vsub.f32 0.0, %v737_v53  ;;  %v807_v19 = vsub.f32 0.0, %v601_v2 }
 0x116   : > { %v2149_v62 = vpop.eup %2148  ;;  %v1739_v63 = vpack.c.bf16 %v2147_v58, %v2137_v36  ;;  %2174 = vpow2.f32 %v935_v45  ;;  %v810_v23 = vsub.f32 0.0, %v612_v6 }
 0x117   : > { %v2151_v3 = vpop.eup %2150  ;;  %v1819_v4 = vpack.c.bf16 %v2149_v62, %v2139_v41  ;;  %2176 = vrcp.f32 %v1020_v59  ;;  %v2000_v59 = vpop.f32.mrf.mxu0  ;;  %v955_v18 = vmul.f32 1.442695, %v841_v1  ;;  %v887_v35 = vmul.f32 1.442695, %v807_v19 }
 0x118   : > { %v2153_v8 = vpop.eup %2152  ;;  %1891 = vst [vmem:[%s2504_s13 + $0x8] sm:$0xff] %v1739_v63   ;;  %v1734_v9 = vpack.c.bf16 %v2151_v3, %v2141_v44  ;;  %2178 = vpow2.f32 %v877_v46  ;;  %v945_v46 = vmul.f32 1.442695, %v836_v34 }
 0x119   : > { %v2155_v12 = vpop.eup %2154  ;;  %1907 = vst [vmem:[%s2504_s13 + $0x88] sm:$0xff] %v1819_v4   ;;  %v1814_v13 = vpack.c.bf16 %v2153_v8, %v2143_v49  ;;  %2180 = vpow2.f32 %v941_v50  ;;  %v609_v50 = vadd.f32 %v1996_v7, %v2468_v40  ;;  %v2032_v7 = vpop.f32.mrf.mxu1 }
 0x11a   : > { %v2157_v16 = vpop.eup %2156  ;;  %1735 = vst [vmem:[%s2504_s13] sm:$0xff] %v1734_v9   ;;  %2182 = vpow2.f32 %v873_v55  ;;  %v616_v11 = vpop.f32.mrf.mxu0 }
 0x11b   : > { %v2159_v20 = vpop.eup %2158  ;;  %1906 = vst [vmem:[%s2504_s13 + $0x80] sm:$0xff] %v1814_v13   ;;  %2184 = vpow2.f32 %v937_v5  ;;  %v809_v62 = vsub.f32 0.0, %v609_v50  ;;  %v729_v5 = vadd.f32 %v2468_v40, %v728_v31 }
 0x11c   : > { %v2161_v24 = vpop.eup %2160  ;;  %2186 = vpow2.f32 %v883_v10  ;;  %v740_v10 = vadd.f32 %v2029_v43, %v2468_v40 }
 0x11d   : > { %v2163_v26 = vpop.eup %2162  ;;  %2188 = vpow2.f32 %v947_v14  ;;  %v891_v14 = vmul.f32 1.442695, %v809_v62  ;;  %v839_v22 = vsub.f32 0.0, %v729_v5 }
 0x11e   : > { %v2165_v28 = vpop.eup %2164  ;;  %v1749_v29 = vpack.c.bf16 %v2163_v26, %v2155_v12  ;;  %2190 = vpow2.f32 %v879_v17 }
 0x11f   : > { %v2167_v32 = vpop.eup %2166  ;;  %v1829_v33 = vpack.c.bf16 %v2165_v28, %v2157_v16  ;;  %2192 = vpow2.f32 %v943_v21  ;;  %v732_v28 = vadd.f32 %v2468_v40, %v731_v56 }
 0x120   : > { %v2169_v36 = vpop.eup %2168  ;;  %1893 = vst [vmem:[%s2504_s13 + $0x18] sm:$0xff] %v1749_v29   ;;  %v1744_v37 = vpack.c.bf16 %v2167_v32, %v2159_v20  ;;  %2194 = vpow2.f32 %v885_v25  ;;  %v2001_v29 = vpop.f32.mrf.mxu0  ;;  %v808_v32 = vsub.f32 0.0, %v604_v15 }
 0x121   : > { %v2171_v38 = vpop.eup %2170  ;;  %1909 = vst [vmem:[%s2504_s13 + $0x98] sm:$0xff] %v1829_v33   ;;  %v993_v39 = vadd.f32 1.0, %v2169_v36  ;;  %2196 = vpow2.f32 %v949_v27  ;;  %v842_v27 = vsub.f32 0.0, %v740_v10  ;;  %v625_v33 = vadd.f32 %v2000_v59, %v2468_v40 }
 0x122   : > { %v2173_v41 = vpop.eup %2172  ;;  %1892 = vst [vmem:[%s2504_s13 + $0x10] sm:$0xff] %v1744_v37   ;;  %v1025_v42 = vadd.f32 1.0, %v2171_v38  ;;  %2198 = vpow2.f32 %v881_v30  ;;  %v753_v36 = vadd.f32 %v2032_v7, %v2468_v40  ;;  %v951_v38 = vmul.f32 1.442695, %v839_v22  ;;  %v619_v47 = vpop.f32.mrf.mxu0 }
 0x123   : > { %v2175_v44 = vpop.eup %2174  ;;  %2200 = vrcp.f32 %v993_v39  ;;  %v991_v45 = vadd.f32 1.0, %v2173_v41  ;;  %v893_v39 = vmul.f32 1.442695, %v810_v23  ;;  %v617_v41 = vadd.f32 %v2468_v40, %v616_v11 }
 0x124   : > { %v2177_v48 = vpop.eup %2176  ;;  %2202 = vrcp.f32 %v1025_v42  ;;  %v1023_v49 = vadd.f32 1.0, %v2175_v44  ;;  %v957_v44 = vmul.f32 1.442695, %v842_v27  ;;  %v813_v50 = vsub.f32 0.0, %v625_v33  ;;  %v2004_v1 = vpop.f32.mrf.mxu0 }
 0x125   : > { %v2179_v51 = vpop.eup %2178  ;;  %v1824_v52 = vpack.c.bf16 %v2177_v48, %v2161_v24  ;;  %2204 = vrcp.f32 %v991_v45  ;;  %v744_v24 = vpop.f32.mrf.mxu1  ;;  %v840_v45 = vsub.f32 0.0, %v732_v28  ;;  %v620_v59 = vadd.f32 %v2468_v40, %v619_v47 }
 0x126   : > { %v2181_v54 = vpop.eup %2180  ;;  %2206 = vrcp.f32 %v1023_v49  ;;  %v994_v55 = vadd.f32 1.0, %v2179_v51  ;;  %v889_v49 = vmul.f32 1.442695, %v808_v32  ;;  %v628_v51 = vadd.f32 %v2001_v29, %v2468_v40 }
 0x127   : > { %v2183_v57 = vpop.eup %2182  ;;  %1908 = vst [vmem:[%s2504_s13 + $0x90] sm:$0xff] %v1824_v52   ;;  %v1026_v58 = vadd.f32 1.0, %v2181_v54  ;;  %2208 = vpow2.f32 %v945_v46  ;;  %v2033_v42 = vpop.f32.mrf.mxu1  ;;  %v745_v46 = vadd.f32 %v2468_v40, %v744_v24  ;;  %v845_v54 = vsub.f32 0.0, %v753_v36 }
 0x128   : > { %v2185_v60 = vpop.eup %2184  ;;  %2210 = vrcp.f32 %v994_v55  ;;  %v992_v61 = vadd.f32 1.0, %v2183_v57  ;;  %v756_v55 = vadd.f32 %v2033_v42, %v2468_v40  ;;  %v814_v5 = vsub.f32 0.0, %v628_v51 }
 0x129   : > { %v2187_v63 = vpop.eup %2186  ;;  %2212 = vrcp.f32 %v1026_v58  ;;  %v1024_v0 = vadd.f32 1.0, %v2185_v60  ;;  %v811_v58 = vsub.f32 0.0, %v617_v41  ;;  %v747_v60 = vpop.f32.mrf.mxu1 }
 0x12a   : > { %v2189_v3 = vpop.eup %2188  ;;  %2214 = vrcp.f32 %v992_v61  ;;  %v997_v4 = vadd.f32 1.0, %v2187_v63  ;;  %v953_v63 = vmul.f32 1.442695, %v840_v45  ;;  %v901_v19 = vmul.f32 1.442695, %v814_v5 }
 0x12b   : > { %v2191_v8 = vpop.eup %2190  ;;  %2216 = vrcp.f32 %v1024_v0  ;;  %v1029_v9 = vadd.f32 1.0, %v2189_v3  ;;  %v843_v0 = vsub.f32 0.0, %v745_v46  ;;  %v895_v11 = vmul.f32 1.442695, %v811_v58 }
 0x12c   : > { %v2193_v12 = vpop.eup %2192  ;;  %2218 = vrcp.f32 %v997_v4  ;;  %v995_v13 = vadd.f32 1.0, %v2191_v8  ;;  %v899_v4 = vmul.f32 1.442695, %v813_v50  ;;  %v963_v8 = vmul.f32 1.442695, %v845_v54 }
 0x12d   : > { %v2195_v16 = vpop.eup %2194  ;;  %2220 = vrcp.f32 %v1029_v9  ;;  %v1027_v17 = vadd.f32 1.0, %v2193_v12  ;;  %v846_v9 = vsub.f32 0.0, %v756_v55  ;;  %v812_v12 = vsub.f32 0.0, %v620_v59 }
 0x12e   : > { %v2197_v20 = vpop.eup %2196  ;;  %2222 = vrcp.f32 %v995_v13  ;;  %v998_v21 = vadd.f32 1.0, %v2195_v16  ;;  %v2036_v13 = vpop.f32.mrf.mxu1  ;;  %v959_v15 = vmul.f32 1.442695, %v843_v0  ;;  %v748_v16 = vadd.f32 %v2468_v40, %v747_v60 }
 0x12f   : > { %v2199_v25 = vpop.eup %2198  ;;  %2224 = vrcp.f32 %v1027_v17  ;;  %v1030_v26 = vadd.f32 1.0, %v2197_v20  ;;  %v632_v17 = vpop.f32.mrf.mxu0  ;;  %v897_v24 = vmul.f32 1.442695, %v812_v12  ;;  %v769_v47 = vadd.f32 %v2036_v13, %v2468_v40 }
 0x130   : > { %v2201_v30 = vpop.eup %2200  ;;  %2226 = vrcp.f32 %v998_v21  ;;  %v996_v31 = vadd.f32 1.0, %v2199_v25  ;;  %v965_v21 = vmul.f32 1.442695, %v846_v9  ;;  %v760_v25 = vpop.f32.mrf.mxu1  ;;  %v844_v28 = vsub.f32 0.0, %v748_v16 }
 0x131   : > { %v2203_v34 = vpop.eup %2202  ;;  %2228 = vrcp.f32 %v1030_v26  ;;  %v2005_v29 = vpop.f32.mrf.mxu0  ;;  %v849_v59 = vsub.f32 0.0, %v769_v47  ;;  %v633_v60 = vadd.f32 %v2468_v40, %v632_v17 }
 0x132   : > { %v2205_v37 = vpop.eup %2204  ;;  %2230 = vrcp.f32 %v996_v31  ;;  %v2037_v36 = vpop.f32.mrf.mxu1  ;;  %v644_v0 = vadd.f32 %v2005_v29, %v2468_v40 }
 0x133   : > { %v2207_v43 = vpop.eup %2206  ;;  %2232 = vpow2.f32 %v891_v14  ;;  %v635_v41 = vpop.f32.mrf.mxu0  ;;  %v971_v12 = vmul.f32 1.442695, %v849_v59  ;;  %v815_v13 = vsub.f32 0.0, %v633_v60 }
 0x134   : > { %v2209_v48 = vpop.eup %2208  ;;  %2234 = vpow2.f32 %v955_v18  ;;  %v763_v50 = vpop.f32.mrf.mxu1  ;;  %v636_v9 = vadd.f32 %v2468_v40, %v635_v41  ;;  %v818_v17 = vsub.f32 0.0, %v644_v0 }
 0x135   : > { %v2211_v52 = vpop.eup %2210  ;;  %v1028_v53 = vadd.f32 1.0, %v2209_v48  ;;  %2236 = vpow2.f32 %v887_v35  ;;  %v903_v29 = vmul.f32 1.442695, %v815_v13 }
 0x136   : > { %v2213_v56 = vpop.eup %2212  ;;  %v1759_v57 = vpack.c.bf16 %v2211_v52, %v2201_v30  ;;  %2238 = vpow2.f32 %v951_v38 }
 0x137   : > { %v2215_v61 = vpop.eup %2214  ;;  %v1839_v62 = vpack.c.bf16 %v2213_v56, %v2203_v34  ;;  %2240 = vrcp.f32 %v1028_v53  ;;  %v2008_v53 = vpop.f32.mrf.mxu0 }
 0x138   : > { %v2217_v2 = vpop.eup %2216  ;;  %1895 = vst [vmem:[%s2504_s13 + $0x28] sm:$0xff] %v1759_v57   ;;  %v1754_v3 = vpack.c.bf16 %v2215_v61, %v2205_v37  ;;  %2242 = vpow2.f32 %v893_v39  ;;  %v961_v39 = vmul.f32 1.442695, %v844_v28 }
 0x139   : > { %v2219_v6 = vpop.eup %2218  ;;  %1911 = vst [vmem:[%s2504_s13 + $0xa8] sm:$0xff] %v1839_v62   ;;  %v1834_v7 = vpack.c.bf16 %v2217_v2, %v2207_v43  ;;  %2244 = vpow2.f32 %v957_v44  ;;  %v641_v44 = vadd.f32 %v2004_v1, %v2468_v40  ;;  %v2040_v1 = vpop.f32.mrf.mxu1 }
 0x13a   : > { %v2221_v10 = vpop.eup %2220  ;;  %1894 = vst [vmem:[%s2504_s13 + $0x20] sm:$0xff] %v1754_v3   ;;  %2246 = vpow2.f32 %v889_v49  ;;  %v648_v5 = vpop.f32.mrf.mxu0 }
 0x13b   : > { %v2223_v14 = vpop.eup %2222  ;;  %1910 = vst [vmem:[%s2504_s13 + $0xa0] sm:$0xff] %v1834_v7   ;;  %2248 = vpow2.f32 %v953_v63  ;;  %v817_v56 = vsub.f32 0.0, %v641_v44  ;;  %v761_v63 = vadd.f32 %v2468_v40, %v760_v25 }
 0x13c   : > { %v2225_v18 = vpop.eup %2224  ;;  %2250 = vpow2.f32 %v899_v4  ;;  %v772_v4 = vadd.f32 %v2037_v36, %v2468_v40 }
 0x13d   : > { %v2227_v20 = vpop.eup %2226  ;;  %2252 = vpow2.f32 %v963_v8  ;;  %v907_v8 = vmul.f32 1.442695, %v817_v56  ;;  %v847_v16 = vsub.f32 0.0, %v761_v63 }
 0x13e   : > { %v2229_v22 = vpop.eup %2228  ;;  %v1769_v23 = vpack.c.bf16 %v2227_v20, %v2219_v6  ;;  %2254 = vpow2.f32 %v895_v11 }
 0x13f   : > { %v2231_v26 = vpop.eup %2230  ;;  %v1849_v27 = vpack.c.bf16 %v2229_v22, %v2221_v10  ;;  %2256 = vpow2.f32 %v959_v15  ;;  %v764_v22 = vadd.f32 %v2468_v40, %v763_v50 }
 0x140   : > { %v2233_v30 = vpop.eup %2232  ;;  %1897 = vst [vmem:[%s2504_s13 + $0x38] sm:$0xff] %v1769_v23   ;;  %v1764_v31 = vpack.c.bf16 %v2231_v26, %v2223_v14  ;;  %2258 = vpow2.f32 %v901_v19  ;;  %v2009_v23 = vpop.f32.mrf.mxu0  ;;  %v816_v26 = vsub.f32 0.0, %v636_v9 }
 0x141   : > { %v2235_v32 = vpop.eup %2234  ;;  %1913 = vst [vmem:[%s2504_s13 + $0xb8] sm:$0xff] %v1849_v27   ;;  %v1001_v33 = vadd.f32 1.0, %v2233_v30  ;;  %2260 = vpow2.f32 %v965_v21  ;;  %v850_v21 = vsub.f32 0.0, %v772_v4  ;;  %v657_v27 = vadd.f32 %v2008_v53, %v2468_v40 }
 0x142   : > { %v2237_v34 = vpop.eup %2236  ;;  %1896 = vst [vmem:[%s2504_s13 + $0x30] sm:$0xff] %v1764_v31   ;;  %v1033_v35 = vadd.f32 1.0, %v2235_v32  ;;  %2262 = vpow2.f32 %v897_v24  ;;  %v785_v30 = vadd.f32 %v2040_v1, %v2468_v40  ;;  %v967_v32 = vmul.f32 1.442695, %v847_v16  ;;  %v651_v41 = vpop.f32.mrf.mxu0 }
 0x143   : > { %v2239_v37 = vpop.eup %2238  ;;  %2264 = vrcp.f32 %v1001_v33  ;;  %v999_v38 = vadd.f32 1.0, %v2237_v34  ;;  %v909_v33 = vmul.f32 1.442695, %v818_v17  ;;  %v649_v34 = vadd.f32 %v2468_v40, %v648_v5 }
 0x144   : > { %v2241_v42 = vpop.eup %2240  ;;  %2266 = vrcp.f32 %v1033_v35  ;;  %v1031_v43 = vadd.f32 1.0, %v2239_v37  ;;  %v973_v37 = vmul.f32 1.442695, %v850_v21  ;;  %v821_v44 = vsub.f32 0.0, %v657_v27 }
 0x145   : > { %v2243_v45 = vpop.eup %2242  ;;  %v1844_v46 = vpack.c.bf16 %v2241_v42, %v2225_v18  ;;  %2268 = vrcp.f32 %v999_v38  ;;  %v776_v18 = vpop.f32.mrf.mxu1  ;;  %v848_v38 = vsub.f32 0.0, %v764_v22  ;;  %v652_v53 = vadd.f32 %v2468_v40, %v651_v41 }
 0x146   : > { %v2245_v48 = vpop.eup %2244  ;;  %2270 = vrcp.f32 %v1031_v43  ;;  %v1002_v49 = vadd.f32 1.0, %v2243_v45  ;;  %v905_v43 = vmul.f32 1.442695, %v816_v26  ;;  %v660_v45 = vadd.f32 %v2009_v23, %v2468_v40 }
 0x147   : > { %v2247_v51 = vpop.eup %2246  ;;  %1912 = vst [vmem:[%s2504_s13 + $0xb0] sm:$0xff] %v1844_v46   ;;  %v1034_v52 = vadd.f32 1.0, %v2245_v48  ;;  %2272 = vpow2.f32 %v961_v39  ;;  %v2041_v35 = vpop.f32.mrf.mxu1  ;;  %v777_v39 = vadd.f32 %v2468_v40, %v776_v18  ;;  %v853_v48 = vsub.f32 0.0, %v785_v30 }
 0x148   : > { %v2249_v54 = vpop.eup %2248  ;;  %2274 = vrcp.f32 %v1002_v49  ;;  %v1000_v55 = vadd.f32 1.0, %v2247_v51  ;;  %v788_v49 = vadd.f32 %v2041_v35, %v2468_v40  ;;  %v969_v56 = vmul.f32 1.442695, %v848_v38 }
 0x149   : > { %v2251_v57 = vpop.eup %2250  ;;  %2276 = vrcp.f32 %v1034_v52  ;;  %v1032_v58 = vadd.f32 1.0, %v2249_v54  ;;  %v819_v52 = vsub.f32 0.0, %v649_v34  ;;  %v915_v60 = vmul.f32 1.442695, %v821_v44 }
 0x14a   : > { %v2253_v61 = vpop.eup %2252  ;;  %2278 = vrcp.f32 %v1000_v55  ;;  %v1005_v62 = vadd.f32 1.0, %v2251_v57  ;;  %v851_v57 = vsub.f32 0.0, %v777_v39  ;;  %v979_v1 = vmul.f32 1.442695, %v853_v48 }
 0x14b   : > { %v2255_v2 = vpop.eup %2254  ;;  %2280 = vrcp.f32 %v1032_v58  ;;  %v1037_v3 = vadd.f32 1.0, %v2253_v61  ;;  %v822_v61 = vsub.f32 0.0, %v660_v45  ;;  %v854_v40 = vsub.f32 0.0, %v788_v49 }
 0x14c   : > { %v2257_v6 = vpop.eup %2256  ;;  %2282 = vrcp.f32 %v1005_v62  ;;  %v1003_v7 = vadd.f32 1.0, %v2255_v2  ;;  %v779_v62 = vpop.f32.mrf.mxu1  ;;  %v820_v4 = vsub.f32 0.0, %v652_v53 }
 0x14d   : > { %v2259_v10 = vpop.eup %2258  ;;  %2284 = vrcp.f32 %v1037_v3  ;;  %v1035_v11 = vadd.f32 1.0, %v2257_v6  ;;  %v911_v3 = vmul.f32 1.442695, %v819_v52  ;;  %v975_v6 = vmul.f32 1.442695, %v851_v57 }
 0x14e   : > { %v2261_v14 = vpop.eup %2260  ;;  %2286 = vrcp.f32 %v1003_v7  ;;  %v1006_v15 = vadd.f32 1.0, %v2259_v10  ;;  %v2362_v7 = vld [vmem:[%s2580_s2] ss:$0 sm:$0xff]  ;;  %v917_v10 = vmul.f32 1.442695, %v822_v61 }
 0x14f   : > { %v2263_v19 = vpop.eup %2262  ;;  %2288 = vrcp.f32 %v1035_v11  ;;  %v1038_v20 = vadd.f32 1.0, %v2261_v14 }
 0x150   : > { %v2265_v24 = vpop.eup %2264  ;;  %2290 = vrcp.f32 %v1006_v15  ;;  %v1004_v25 = vadd.f32 1.0, %v2263_v19  ;;  %v913_v15 = vmul.f32 1.442695, %v820_v4 }
 0x151   : > { %v2267_v28 = vpop.eup %2266  ;;  %2292 = vrcp.f32 %v1038_v20 }
 0x152   : > { %v2269_v31 = vpop.eup %2268  ;;  %2294 = vrcp.f32 %v1004_v25 }
 0x153   : > { %v2271_v36 = vpop.eup %2270  ;;  %2296 = vpow2.f32 %v907_v8  ;;  %v780_v8 = vadd.f32 %v2362_v7, %v779_v62 }
 0x154   : > { %v2273_v42 = vpop.eup %2272  ;;  %2298 = vpow2.f32 %v971_v12  ;;  %v981_v12 = vmul.f32 1.442695, %v854_v40 }
 0x155   : > { %v2275_v46 = vpop.eup %2274  ;;  %v1036_v47 = vadd.f32 1.0, %v2273_v42  ;;  %2300 = vpow2.f32 %v903_v29  ;;  %v852_v18 = vsub.f32 0.0, %v780_v8 }
 0x156   : > { %v2277_v50 = vpop.eup %2276  ;;  %v1779_v51 = vpack.c.bf16 %v2275_v46, %v2265_v24  ;;  %2302 = vpow2.f32 %v967_v32 }
 0x157   : > { %v2279_v54 = vpop.eup %2278  ;;  %v1859_v55 = vpack.c.bf16 %v2277_v50, %v2267_v28  ;;  %2304 = vrcp.f32 %v1036_v47  ;;  %v977_v27 = vmul.f32 1.442695, %v852_v18 }
 0x158   : > { %v2281_v58 = vpop.eup %2280  ;;  %1899 = vst [vmem:[%s2504_s13 + $0x48] sm:$0xff] %v1779_v51   ;;  %v1774_v59 = vpack.c.bf16 %v2279_v54, %v2269_v31  ;;  %2306 = vpow2.f32 %v909_v33 }
 0x159   : > { %v2283_v63 = vpop.eup %2282  ;;  %1915 = vst [vmem:[%s2504_s13 + $0xc8] sm:$0xff] %v1859_v55   ;;  %v1854_v0 = vpack.c.bf16 %v2281_v58, %v2271_v36  ;;  %2308 = vpow2.f32 %v973_v37 }
 0x15a   : > { %v2285_v2 = vpop.eup %2284  ;;  %1898 = vst [vmem:[%s2504_s13 + $0x40] sm:$0xff] %v1774_v59   ;;  %2310 = vpow2.f32 %v905_v43 }
 0x15b   : > { %v2287_v5 = vpop.eup %2286  ;;  %1914 = vst [vmem:[%s2504_s13 + $0xc0] sm:$0xff] %v1854_v0   ;;  %2312 = vpow2.f32 %v969_v56 }
 0x15c   : > { %v2289_v9 = vpop.eup %2288  ;;  %2314 = vpow2.f32 %v915_v60 }
 0x15d   : > { %v2291_v11 = vpop.eup %2290  ;;  %2316 = vpow2.f32 %v979_v1 }
 0x15e   : > { %v2293_v13 = vpop.eup %2292  ;;  %v1789_v14 = vpack.c.bf16 %v2291_v11, %v2283_v63  ;;  %2318 = vpow2.f32 %v911_v3 }
 0x15f   : > { %v2295_v16 = vpop.eup %2294  ;;  %v1869_v17 = vpack.c.bf16 %v2293_v13, %v2285_v2  ;;  %2320 = vpow2.f32 %v975_v6 }
 0x160   : > { %v2297_v19 = vpop.eup %2296  ;;  %1901 = vst [vmem:[%s2504_s13 + $0x58] sm:$0xff] %v1789_v14   ;;  %v1784_v20 = vpack.c.bf16 %v2295_v16, %v2287_v5  ;;  %2322 = vpow2.f32 %v917_v10 }
 0x161   : > { %v2299_v21 = vpop.eup %2298  ;;  %1917 = vst [vmem:[%s2504_s13 + $0xd8] sm:$0xff] %v1869_v17   ;;  %v1009_v22 = vadd.f32 1.0, %v2297_v19  ;;  %2324 = vpow2.f32 %v981_v12 }
 0x162   : > { %v2301_v23 = vpop.eup %2300  ;;  %1900 = vst [vmem:[%s2504_s13 + $0x50] sm:$0xff] %v1784_v20   ;;  %v1041_v24 = vadd.f32 1.0, %v2299_v21  ;;  %2326 = vpow2.f32 %v913_v15 }
 0x163   : > { %v2303_v25 = vpop.eup %2302  ;;  %2328 = vrcp.f32 %v1009_v22  ;;  %v1007_v26 = vadd.f32 1.0, %v2301_v23 }
 0x164   : > { %v2305_v28 = vpop.eup %2304  ;;  %2330 = vrcp.f32 %v1041_v24  ;;  %v1039_v29 = vadd.f32 1.0, %v2303_v25 }
 0x165   : > { %v2307_v30 = vpop.eup %2306  ;;  %v1864_v31 = vpack.c.bf16 %v2305_v28, %v2289_v9  ;;  %2332 = vrcp.f32 %v1007_v26 }
 0x166   : > { %v2309_v32 = vpop.eup %2308  ;;  %2334 = vrcp.f32 %v1039_v29  ;;  %v1010_v33 = vadd.f32 1.0, %v2307_v30 }
 0x167   : > { %v2311_v34 = vpop.eup %2310  ;;  %1916 = vst [vmem:[%s2504_s13 + $0xd0] sm:$0xff] %v1864_v31   ;;  %v1042_v35 = vadd.f32 1.0, %v2309_v32  ;;  %2336 = vpow2.f32 %v977_v27 }
 0x168   : > { %v2313_v36 = vpop.eup %2312  ;;  %2338 = vrcp.f32 %v1010_v33  ;;  %v1008_v37 = vadd.f32 1.0, %v2311_v34 }
 0x169   : > { %v2315_v38 = vpop.eup %2314  ;;  %2340 = vrcp.f32 %v1042_v35  ;;  %v1040_v39 = vadd.f32 1.0, %v2313_v36 }
 0x16a   : > { %v2317_v41 = vpop.eup %2316  ;;  %2342 = vrcp.f32 %v1008_v37  ;;  %v1013_v42 = vadd.f32 1.0, %v2315_v38 }
 0x16b   : > { %v2319_v43 = vpop.eup %2318  ;;  %2344 = vrcp.f32 %v1040_v39  ;;  %v1045_v44 = vadd.f32 1.0, %v2317_v41 }
 0x16c   : > { %v2321_v45 = vpop.eup %2320  ;;  %v1011_v46 = vadd.f32 1.0, %v2319_v43  ;;  %2346 = vrcp.f32 %v1013_v42 }
 0x16d   : > { %v2323_v47 = vpop.eup %2322  ;;  %2348 = vrcp.f32 %v1045_v44  ;;  %v1043_v56 = vadd.f32 1.0, %v2321_v45 }
 0x16e   : > { %v2325_v48 = vpop.eup %2324  ;;  %v1014_v49 = vadd.f32 1.0, %v2323_v47  ;;  %2350 = vrcp.f32 %v1011_v46 }
 0x16f   : > { %v2327_v50 = vpop.eup %2326  ;;  %v1046_v51 = vadd.f32 1.0, %v2325_v48 }
 0x170   : > { %v2329_v52 = vpop.eup %2328  ;;  %2352 = vrcp.f32 %v1014_v49  ;;  %v1012_v53 = vadd.f32 1.0, %v2327_v50 }
 0x171   : > { %v2331_v54 = vpop.eup %2330  ;;  %2354 = vrcp.f32 %v1046_v51 }
 0x172   : > { %v2333_v55 = vpop.eup %2332  ;;  %2356 = vrcp.f32 %v1012_v53 }
 0x173   : > { %v2335_v57 = vpop.eup %2334  ;;  %2358 = vrcp.f32 %v1043_v56 }
 0x174   : > { %v2337_v58 = vpop.eup %2336 }
 0x175   : > { %v2339_v59 = vpop.eup %2338  ;;  %v1044_v60 = vadd.f32 1.0, %v2337_v58 }
 0x176   : > { %v2341_v61 = vpop.eup %2340  ;;  %v1799_v62 = vpack.c.bf16 %v2339_v59, %v2329_v52 }
 0x177   : > { %v2343_v63 = vpop.eup %2342  ;;  %v1879_v0 = vpack.c.bf16 %v2341_v61, %v2331_v54  ;;  %2360 = vrcp.f32 %v1044_v60 }
 0x178   : > { %v2345_v1 = vpop.eup %2344  ;;  %1903 = vst [vmem:[%s2504_s13 + $0x68] sm:$0xff] %v1799_v62   ;;  %v1794_v40 = vpack.c.bf16 %v2343_v63, %v2333_v55 }
 0x179   : > { %1919 = vst [vmem:[%s2504_s13 + $0xe8] sm:$0xff] %v1879_v0   ;;  %v1874_v2 = vpack.c.bf16 %v2345_v1, %v2335_v57  ;;  %v2347_v3 = vpop.eup %2346 }
 0x17a   : > { %1902 = vst [vmem:[%s2504_s13 + $0x60] sm:$0xff] %v1794_v40   ;;  %v2349_v4 = vpop.eup %2348 }
 0x17b   : > { %1918 = vst [vmem:[%s2504_s13 + $0xe0] sm:$0xff] %v1874_v2   ;;  %v2351_v5 = vpop.eup %2350 }
 0x17d   : > { %v2353_v6 = vpop.eup %2352 }
 0x17e   : > { %v2355_v7 = vpop.eup %2354  ;;  %v1809_v8 = vpack.c.bf16 %v2353_v6, %v2347_v3 }
 0x17f   : > { %v2357_v9 = vpop.eup %2356  ;;  %v1889_v10 = vpack.c.bf16 %v2355_v7, %v2349_v4 }
 0x180   : > { %1905 = vst [vmem:[%s2504_s13 + $0x78] sm:$0xff] %v1809_v8   ;;  %v1804_v11 = vpack.c.bf16 %v2357_v9, %v2351_v5  ;;  %v2359_v12 = vpop.eup %2358 }
 0x181   : > { %1921 = vst [vmem:[%s2504_s13 + $0xf8] sm:$0xff] %v1889_v10  }
 0x182   : > { %1904 = vst [vmem:[%s2504_s13 + $0x70] sm:$0xff] %v1804_v11  }
 0x184   : > { %v2361_v13 = vpop.eup %2360 }
 0x185   : > { %v1884_v14 = vpack.c.bf16 %v2361_v13, %v2359_v12 }
 0x187   : > { %1920 = vst [vmem:[%s2504_s13 + $0xf0] sm:$0xff] %v1884_v14  }
 0x188 PF: > { %s13_s12 = sadd.s32 1, %s2369_s12  }
 0x189   : > { %p10_p4 = scmp.ge.s32.totalorder %s13_s12, 7  }
 0x18b   :  { %12 = sbr.rel (!%p10_p4) target bundleno = 1 (0x1), region = 62 }

</bundles_post_ra>
